<compile_context>
chip_gen: v6e
topology: v6e:2x2x1
jax: 0.10.0
libtpu: 0.0.40
codegen_flags: <defaults>
</compile_context>

<pallas_src>
import functools

import numpy as np
import jax
import jax.numpy as jnp
from jax import lax
from jax.experimental import pallas as pl
from jax.experimental.pallas import tpu as pltpu

K = 5                                    # conv kernel size (all three convs)
# per stage: (Cin, Cout, H_in, W_in, spatial padding)
_STAGES = ((1, 10, 28, 28, 0), (10, 20, 12, 12, 0), (20, 30, 4, 4, 2))
_FLAT = 30 * 2 * 2                       # 120 features out of the last stage
_OUT_PAD = 128                           # lane-dense padded output width


def _round_up(x, m):
    return (x + m - 1) // m * m


# ----------------------------------------------------------------------------
# One-time host-side weight repacking
# ----------------------------------------------------------------------------
def _conv_band_matrix(w, w_in, pad, gp):
    """Banded (im2col-free) conv weights.

    Returns (w_in*Cin, K*gp) with
      mat[j*Cin + ci, ki*gp + jout*Cout + co] = w[co, ci, ki, j - jout + pad]
    so that for an activation slab A (rows = image row, lanes = j*Cin + ci),
    (A @ mat)[row, ki-block] is the conv contribution of kernel-row ki at every
    output column; summing the K row-shifted blocks gives the 2-D convolution.
    Column padding is folded into the band; each ki block is padded to gp
    lanes (multiple of 128) so the in-kernel slices start lane-aligned."""
    cout, cin, k, _ = w.shape
    wc = w_in + 2 * pad - k + 1
    mat = np.zeros((w_in * cin, k * gp), np.float32)
    for ki in range(k):
        for jout in range(wc):
            for kj in range(k):
                j = jout + kj - pad
                if 0 <= j < w_in:
                    mat[j * cin:(j + 1) * cin,
                        ki * gp + jout * cout: ki * gp + (jout + 1) * cout] = \
                        w[:, :, ki, kj].T
    return mat


def _pool_compact_matrix(wc, cout):
    """0/1 matrix ((wc-1)*cout, (wc//2)*cout) selecting the even-column blocks
    of the adjacent-column-max array -> finishes the 2x2 max-pool along
    columns on the MXU (no lane shuffles)."""
    wo = wc // 2
    mat = np.zeros(((wc - 1) * cout, wo * cout), np.float32)
    for oj in range(wo):
        for c in range(cout):
            mat[(2 * oj) * cout + c, oj * cout + c] = 1.0
    return mat


def _output_perm_matrices(cout, ho, wo, out_pad):
    """P[h] maps stage-3 pooled lanes (oj*cout + c) of spatial row h to the
    PyTorch NCHW .view(B, -1) feature index c*(ho*wo) + h*wo + oj."""
    p = np.zeros((ho, wo * cout, out_pad), np.float32)
    for h in range(ho):
        for oj in range(wo):
            for c in range(cout):
                p[h, oj * cout + c, c * ho * wo + h * wo + oj] = 1.0
    return p


def prepare_params(w1, w2, w3):
    """Repack the three OIHW conv weights (concrete arrays) for the kernel."""
    packed = []
    for w, (cin, cout, _, w_in, pad) in zip((w1, w2, w3), _STAGES):
        w = np.asarray(w, np.float32)
        assert w.shape == (cout, cin, K, K), w.shape
        wc = w_in + 2 * pad - K + 1
        gp = _round_up(wc * cout, 128)
        packed.append(jnp.asarray(_conv_band_matrix(w, w_in, pad, gp)))
        packed.append(jnp.asarray(_pool_compact_matrix(wc, cout)))
    packed.append(jnp.asarray(_output_perm_matrices(30, 2, 2, _OUT_PAD)))
    # NOTE: self.FC = Linear(120, 10) is defined in __init__ but never used in
    # forward(), so it is intentionally not represented here.
    return tuple(packed)


# ----------------------------------------------------------------------------
# Fused whole-network kernel
# ----------------------------------------------------------------------------
def _improved_cnn_kernel(x_ref, wb1_ref, s1_ref, wb2_ref, s2_ref, wb3_ref,
                         s3_ref, p_ref, o_ref, *, tb):
    f32 = jnp.float32

    def conv_relu_pool(a, wb_ref, s_ref, hc, wc, cout):
        g = wc * cout
        gp = wb_ref.shape[1] // K
        # conv: one wide MXU matmul, then sum the K row-shifted banded blocks.
        y = jnp.dot(a, wb_ref[...], preferred_element_type=f32)
        conv = y[0:hc * tb, 0:g]
        for ki in range(1, K):
            conv = conv + y[ki * tb:(ki + hc) * tb, ki * gp:ki * gp + g]
        conv = jnp.maximum(conv, 0.0)                        # ReLU
        # 2x2 max-pool over rows: tb-aligned slice maxima.
        ho = hc // 2
        pooled_rows = jnp.concatenate(
            [jnp.maximum(conv[(2 * oi) * tb:(2 * oi + 1) * tb, :],
                         conv[(2 * oi + 1) * tb:(2 * oi + 2) * tb, :])
             for oi in range(ho)], axis=0)                   # (ho*tb, g)
        # 2x2 max-pool over columns: adjacent-column max + compaction matmul.
        adj = jnp.maximum(pooled_rows[:, :g - cout], pooled_rows[:, cout:])
        return jnp.dot(adj, s_ref[...], preferred_element_type=f32)

    a = x_ref[...]                                                    # (28*tb, 28)
    a = conv_relu_pool(a, wb1_ref, s1_ref, hc=24, wc=24, cout=10)     # (12*tb, 120)
    a = conv_relu_pool(a, wb2_ref, s2_ref, hc=8, wc=8, cout=20)       # (4*tb, 80)
    # conv3 padding=2: columns padded inside the banded weights, rows here.
    zeros = jnp.zeros((2 * tb, a.shape[1]), f32)
    a = jnp.concatenate([zeros, a, zeros], axis=0)                    # (8*tb, 80)
    a = conv_relu_pool(a, wb3_ref, s3_ref, hc=4, wc=4, cout=30)       # (2*tb, 60)
    # PyTorch z.view(B, -1) (feature = c*4 + h*2 + w): move pooled row h from
    # sublanes to lanes with two 0/1 permutation matmuls -> (tb, 128) block.
    out = (jnp.dot(a[0:tb, :], p_ref[0], preferred_element_type=f32) +
           jnp.dot(a[tb:2 * tb, :], p_ref[1], preferred_element_type=f32))
    o_ref[...] = out.astype(o_ref.dtype)


def improved_cnn_forward(x_nchw, packed, *, tb=8):
    """Forward pass of Improved_CNN.  x_nchw: (B, 1, 28, 28) f32 -> (B, 120)."""
    assert tb % 8 == 0, "batch tile must be a multiple of the sublane tile (8)"
    wb1, s1, wb2, s2, wb3, s3, pmat = packed
    b, cin, h, w = x_nchw.shape
    assert (cin, h, w) == (1, 28, 28), x_nchw.shape

    bp = _round_up(max(b, tb), tb)
    nt = bp // tb
    x2 = x_nchw[:, 0, :, :]
    if bp != b:                                   # zero-pad batch to whole tiles
        x2 = jnp.concatenate([x2, jnp.zeros((bp - b, h, w), x2.dtype)], axis=0)
    # (nt, 28*tb, 28) slabs with rows = image_row*tb + image_in_tile.  This is
    # the only host/XLA-side layout glue; it is O(input) bytes (no im2col).
    x_slab = x2.reshape(nt, tb, h, w).transpose(0, 2, 1, 3).reshape(nt, h * tb, w)

    full = lambda arr: pl.BlockSpec(arr.shape, lambda t: (0,) * arr.ndim)
    out = pl.pallas_call(
        functools.partial(_improved_cnn_kernel, tb=tb),
        out_shape=jax.ShapeDtypeStruct((bp, _OUT_PAD), jnp.float32),
        grid=(nt,),
        in_specs=[
            pl.BlockSpec((None, h * tb, w), lambda t: (t, 0, 0)),   # batch tile
            full(wb1), full(s1), full(wb2), full(s2),               # resident
            full(wb3), full(s3), full(pmat),                        # weights
        ],
        out_specs=pl.BlockSpec((tb, _OUT_PAD), lambda t: (t, 0)),   # lane-dense
        compiler_params=pltpu.CompilerParams(
            dimension_semantics=("parallel",)),   # shard batch tiles across TCs
    )(x_slab, wb1, s1, wb2, s2, wb3, s3, pmat)
    return out[:b, :_FLAT]


# ----------------------------------------------------------------------------
# Pure-JAX reference (replicates the PyTorch forward) and self-test
# ----------------------------------------------------------------------------
def _reference_forward(x, w1, w2, w3):
    def conv(z, w, pad):
        return lax.conv_general_dilated(
            z, w, window_strides=(1, 1), padding=((pad, pad), (pad, pad)),
            dimension_numbers=('NCHW', 'OIHW', 'NCHW'),
            precision=lax.Precision.HIGHEST)

    def pool(z):
        return lax.reduce_window(z, -jnp.inf, lax.max,
                                 (1, 1, 2, 2), (1, 1, 2, 2), 'VALID')

    z = pool(jnp.maximum(conv(x, w1, 0), 0.0))
    z = pool(jnp.maximum(conv(z, w2, 0), 0.0))
    z = pool(jnp.maximum(conv(z, w3, 2), 0.0))
    return z.reshape(x.shape[0], -1)


if __name__ == "__main__":
    key = jax.random.PRNGKey(0)
    k_x, k1, k2, k3 = jax.random.split(key, 4)

    B = 16                                   # two batch tiles of 8 -> grid=(2,)
    x = jax.random.normal(k_x, (B, 1, 28, 28), dtype=jnp.float32)

    # Conv weight shapes from Improved_CNN.__init__ (bias=False).
    w1 = jax.random.normal(k1, (10, 1, 5, 5), jnp.float32) * 0.20    # conv1
    w2 = jax.random.normal(k2, (20, 10, 5, 5), jnp.float32) * 0.063  # conv2
    w3 = jax.random.normal(k3, (30, 20, 5, 5), jnp.float32) * 0.045  # conv3

    packed = prepare_params(w1, w2, w3)      # one-time host-side repack
    fwd = jax.jit(improved_cnn_forward)
    out = jax.block_until_ready(fwd(x, packed))
    assert out.shape == (B, 120), out.shape

    ref = _reference_forward(x, w1, w2, w3)
    err = float(jnp.max(jnp.abs(out - ref)))
    assert jnp.allclose(out, ref, atol=1e-3, rtol=1e-3), err

    print("KERNEL_OK")
</pallas_src>

<mosaic_0001>
module attributes {stable_mosaic.version = 11 : i64} {
  func.func @_improved_cnn_kernel(%arg0: i32, %arg1: memref<1x224x28xf32, #tpu.memory_space<vmem>>, %arg2: memref<28x1280xf32, #tpu.memory_space<vmem>>, %arg3: memref<230x120xf32, #tpu.memory_space<vmem>>, %arg4: memref<120x1280xf32, #tpu.memory_space<vmem>>, %arg5: memref<140x80xf32, #tpu.memory_space<vmem>>, %arg6: memref<80x640xf32, #tpu.memory_space<vmem>>, %arg7: memref<90x60xf32, #tpu.memory_space<vmem>>, %arg8: memref<2x60x128xf32, #tpu.memory_space<vmem>>, %arg9: memref<8x128xf32, #tpu.memory_space<vmem>>) attributes {dimension_semantics = [#tpu.dimension_semantics<parallel>], iteration_bounds = array<i64: 2>, scalar_prefetch = 0 : i64, scratch_operands = 0 : i64, tpu.core_type = #tpu.core_type<tc>, window_params = [{transform_indices = @transform_0, window_bounds = array<i64: 1, 224, 28>}, {pipeline_mode = #tpu.pipeline_mode<synchronous>, transform_indices = @transform_1, window_bounds = array<i64: 28, 1280>}, {pipeline_mode = #tpu.pipeline_mode<synchronous>, transform_indices = @transform_2, window_bounds = array<i64: 230, 120>}, {pipeline_mode = #tpu.pipeline_mode<synchronous>, transform_indices = @transform_3, window_bounds = array<i64: 120, 1280>}, {pipeline_mode = #tpu.pipeline_mode<synchronous>, transform_indices = @transform_4, window_bounds = array<i64: 140, 80>}, {pipeline_mode = #tpu.pipeline_mode<synchronous>, transform_indices = @transform_5, window_bounds = array<i64: 80, 640>}, {pipeline_mode = #tpu.pipeline_mode<synchronous>, transform_indices = @transform_6, window_bounds = array<i64: 90, 60>}, {pipeline_mode = #tpu.pipeline_mode<synchronous>, transform_indices = @transform_7, window_bounds = array<i64: 2, 60, 128>}, {transform_indices = @transform_8, window_bounds = array<i64: 8, 128>}]} {
    %c0 = arith.constant 0 : index
    %c0_0 = arith.constant 0 : index
    %c0_1 = arith.constant 0 : index
    %0 = vector.load %arg1[%c0, %c0_0, %c0_1] : memref<1x224x28xf32, #tpu.memory_space<vmem>>, vector<1x224x28xf32>
    %1 = vector.shape_cast %0 : vector<1x224x28xf32> to vector<224x28xf32>
    %c0_2 = arith.constant 0 : index
    %c0_3 = arith.constant 0 : index
    %2 = vector.load %arg2[%c0_2, %c0_3] : memref<28x1280xf32, #tpu.memory_space<vmem>>, vector<28x1280xf32>
    %cst = arith.constant dense<0.000000e+00> : vector<224x1280xf32>
    %3 = tpu.matmul %1, %2, %cst {dimension_numbers = #tpu.dot_dimension_numbers<[1], [0], [0], [1], [0, 0, 1, 1], [], []>} : vector<224x28xf32>, vector<28x1280xf32>, vector<224x1280xf32> -> vector<224x1280xf32>
    %4 = vector.extract_strided_slice %3 {offsets = [0, 0], sizes = [192, 240], strides = [1, 1]} : vector<224x1280xf32> to vector<192x240xf32>
    %5 = vector.extract_strided_slice %3 {offsets = [8, 256], sizes = [192, 240], strides = [1, 1]} : vector<224x1280xf32> to vector<192x240xf32>
    %6 = arith.addf %4, %5 : vector<192x240xf32>
    %7 = vector.extract_strided_slice %3 {offsets = [16, 512], sizes = [192, 240], strides = [1, 1]} : vector<224x1280xf32> to vector<192x240xf32>
    %8 = arith.addf %6, %7 : vector<192x240xf32>
    %9 = vector.extract_strided_slice %3 {offsets = [24, 768], sizes = [192, 240], strides = [1, 1]} : vector<224x1280xf32> to vector<192x240xf32>
    %10 = arith.addf %8, %9 : vector<192x240xf32>
    %11 = vector.extract_strided_slice %3 {offsets = [32, 1024], sizes = [192, 240], strides = [1, 1]} : vector<224x1280xf32> to vector<192x240xf32>
    %12 = arith.addf %10, %11 : vector<192x240xf32>
    %cst_4 = arith.constant 0.000000e+00 : f32
    %13 = vector.broadcast %cst_4 : f32 to vector<192x240xf32>
    %14 = arith.maximumf %12, %13 : vector<192x240xf32>
    %15 = vector.extract_strided_slice %14 {offsets = [0, 0], sizes = [8, 240], strides = [1, 1]} : vector<192x240xf32> to vector<8x240xf32>
    %16 = vector.extract_strided_slice %14 {offsets = [8, 0], sizes = [8, 240], strides = [1, 1]} : vector<192x240xf32> to vector<8x240xf32>
    %17 = arith.maximumf %15, %16 : vector<8x240xf32>
    %18 = vector.extract_strided_slice %14 {offsets = [16, 0], sizes = [8, 240], strides = [1, 1]} : vector<192x240xf32> to vector<8x240xf32>
    %19 = vector.extract_strided_slice %14 {offsets = [24, 0], sizes = [8, 240], strides = [1, 1]} : vector<192x240xf32> to vector<8x240xf32>
    %20 = arith.maximumf %18, %19 : vector<8x240xf32>
    %21 = vector.extract_strided_slice %14 {offsets = [32, 0], sizes = [8, 240], strides = [1, 1]} : vector<192x240xf32> to vector<8x240xf32>
    %22 = vector.extract_strided_slice %14 {offsets = [40, 0], sizes = [8, 240], strides = [1, 1]} : vector<192x240xf32> to vector<8x240xf32>
    %23 = arith.maximumf %21, %22 : vector<8x240xf32>
    %24 = vector.extract_strided_slice %14 {offsets = [48, 0], sizes = [8, 240], strides = [1, 1]} : vector<192x240xf32> to vector<8x240xf32>
    %25 = vector.extract_strided_slice %14 {offsets = [56, 0], sizes = [8, 240], strides = [1, 1]} : vector<192x240xf32> to vector<8x240xf32>
    %26 = arith.maximumf %24, %25 : vector<8x240xf32>
    %27 = vector.extract_strided_slice %14 {offsets = [64, 0], sizes = [8, 240], strides = [1, 1]} : vector<192x240xf32> to vector<8x240xf32>
    %28 = vector.extract_strided_slice %14 {offsets = [72, 0], sizes = [8, 240], strides = [1, 1]} : vector<192x240xf32> to vector<8x240xf32>
    %29 = arith.maximumf %27, %28 : vector<8x240xf32>
    %30 = vector.extract_strided_slice %14 {offsets = [80, 0], sizes = [8, 240], strides = [1, 1]} : vector<192x240xf32> to vector<8x240xf32>
    %31 = vector.extract_strided_slice %14 {offsets = [88, 0], sizes = [8, 240], strides = [1, 1]} : vector<192x240xf32> to vector<8x240xf32>
    %32 = arith.maximumf %30, %31 : vector<8x240xf32>
    %33 = vector.extract_strided_slice %14 {offsets = [96, 0], sizes = [8, 240], strides = [1, 1]} : vector<192x240xf32> to vector<8x240xf32>
    %34 = vector.extract_strided_slice %14 {offsets = [104, 0], sizes = [8, 240], strides = [1, 1]} : vector<192x240xf32> to vector<8x240xf32>
    %35 = arith.maximumf %33, %34 : vector<8x240xf32>
    %36 = vector.extract_strided_slice %14 {offsets = [112, 0], sizes = [8, 240], strides = [1, 1]} : vector<192x240xf32> to vector<8x240xf32>
    %37 = vector.extract_strided_slice %14 {offsets = [120, 0], sizes = [8, 240], strides = [1, 1]} : vector<192x240xf32> to vector<8x240xf32>
    %38 = arith.maximumf %36, %37 : vector<8x240xf32>
    %39 = vector.extract_strided_slice %14 {offsets = [128, 0], sizes = [8, 240], strides = [1, 1]} : vector<192x240xf32> to vector<8x240xf32>
    %40 = vector.extract_strided_slice %14 {offsets = [136, 0], sizes = [8, 240], strides = [1, 1]} : vector<192x240xf32> to vector<8x240xf32>
    %41 = arith.maximumf %39, %40 : vector<8x240xf32>
    %42 = vector.extract_strided_slice %14 {offsets = [144, 0], sizes = [8, 240], strides = [1, 1]} : vector<192x240xf32> to vector<8x240xf32>
    %43 = vector.extract_strided_slice %14 {offsets = [152, 0], sizes = [8, 240], strides = [1, 1]} : vector<192x240xf32> to vector<8x240xf32>
    %44 = arith.maximumf %42, %43 : vector<8x240xf32>
    %45 = vector.extract_strided_slice %14 {offsets = [160, 0], sizes = [8, 240], strides = [1, 1]} : vector<192x240xf32> to vector<8x240xf32>
    %46 = vector.extract_strided_slice %14 {offsets = [168, 0], sizes = [8, 240], strides = [1, 1]} : vector<192x240xf32> to vector<8x240xf32>
    %47 = arith.maximumf %45, %46 : vector<8x240xf32>
    %48 = vector.extract_strided_slice %14 {offsets = [176, 0], sizes = [8, 240], strides = [1, 1]} : vector<192x240xf32> to vector<8x240xf32>
    %49 = vector.extract_strided_slice %14 {offsets = [184, 0], sizes = [8, 240], strides = [1, 1]} : vector<192x240xf32> to vector<8x240xf32>
    %50 = arith.maximumf %48, %49 : vector<8x240xf32>
    %51 = tpu.concatenate %17, %20, %23, %26, %29, %32, %35, %38, %41, %44, %47, %50 in 0 : vector<8x240xf32>, vector<8x240xf32>, vector<8x240xf32>, vector<8x240xf32>, vector<8x240xf32>, vector<8x240xf32>, vector<8x240xf32>, vector<8x240xf32>, vector<8x240xf32>, vector<8x240xf32>, vector<8x240xf32>, vector<8x240xf32> -> vector<96x240xf32>
    %52 = vector.extract_strided_slice %51 {offsets = [0, 0], sizes = [96, 230], strides = [1, 1]} : vector<96x240xf32> to vector<96x230xf32>
    %53 = vector.extract_strided_slice %51 {offsets = [0, 10], sizes = [96, 230], strides = [1, 1]} : vector<96x240xf32> to vector<96x230xf32>
    %54 = arith.maximumf %52, %53 : vector<96x230xf32>
    %c0_5 = arith.constant 0 : index
    %c0_6 = arith.constant 0 : index
    %55 = vector.load %arg3[%c0_5, %c0_6] : memref<230x120xf32, #tpu.memory_space<vmem>>, vector<230x120xf32>
    %cst_7 = arith.constant dense<0.000000e+00> : vector<96x120xf32>
    %56 = tpu.matmul %54, %55, %cst_7 {dimension_numbers = #tpu.dot_dimension_numbers<[1], [0], [0], [1], [0, 0, 1, 1], [], []>} : vector<96x230xf32>, vector<230x120xf32>, vector<96x120xf32> -> vector<96x120xf32>
    %c0_8 = arith.constant 0 : index
    %c0_9 = arith.constant 0 : index
    %57 = vector.load %arg4[%c0_8, %c0_9] : memref<120x1280xf32, #tpu.memory_space<vmem>>, vector<120x1280xf32>
    %cst_10 = arith.constant dense<0.000000e+00> : vector<96x1280xf32>
    %58 = tpu.matmul %56, %57, %cst_10 {dimension_numbers = #tpu.dot_dimension_numbers<[1], [0], [0], [1], [0, 0, 1, 1], [], []>} : vector<96x120xf32>, vector<120x1280xf32>, vector<96x1280xf32> -> vector<96x1280xf32>
    %59 = vector.extract_strided_slice %58 {offsets = [0, 0], sizes = [64, 160], strides = [1, 1]} : vector<96x1280xf32> to vector<64x160xf32>
    %60 = vector.extract_strided_slice %58 {offsets = [8, 256], sizes = [64, 160], strides = [1, 1]} : vector<96x1280xf32> to vector<64x160xf32>
    %61 = arith.addf %59, %60 : vector<64x160xf32>
    %62 = vector.extract_strided_slice %58 {offsets = [16, 512], sizes = [64, 160], strides = [1, 1]} : vector<96x1280xf32> to vector<64x160xf32>
    %63 = arith.addf %61, %62 : vector<64x160xf32>
    %64 = vector.extract_strided_slice %58 {offsets = [24, 768], sizes = [64, 160], strides = [1, 1]} : vector<96x1280xf32> to vector<64x160xf32>
    %65 = arith.addf %63, %64 : vector<64x160xf32>
    %66 = vector.extract_strided_slice %58 {offsets = [32, 1024], sizes = [64, 160], strides = [1, 1]} : vector<96x1280xf32> to vector<64x160xf32>
    %67 = arith.addf %65, %66 : vector<64x160xf32>
    %cst_11 = arith.constant 0.000000e+00 : f32
    %68 = vector.broadcast %cst_11 : f32 to vector<64x160xf32>
    %69 = arith.maximumf %67, %68 : vector<64x160xf32>
    %70 = vector.extract_strided_slice %69 {offsets = [0, 0], sizes = [8, 160], strides = [1, 1]} : vector<64x160xf32> to vector<8x160xf32>
    %71 = vector.extract_strided_slice %69 {offsets = [8, 0], sizes = [8, 160], strides = [1, 1]} : vector<64x160xf32> to vector<8x160xf32>
    %72 = arith.maximumf %70, %71 : vector<8x160xf32>
    %73 = vector.extract_strided_slice %69 {offsets = [16, 0], sizes = [8, 160], strides = [1, 1]} : vector<64x160xf32> to vector<8x160xf32>
    %74 = vector.extract_strided_slice %69 {offsets = [24, 0], sizes = [8, 160], strides = [1, 1]} : vector<64x160xf32> to vector<8x160xf32>
    %75 = arith.maximumf %73, %74 : vector<8x160xf32>
    %76 = vector.extract_strided_slice %69 {offsets = [32, 0], sizes = [8, 160], strides = [1, 1]} : vector<64x160xf32> to vector<8x160xf32>
    %77 = vector.extract_strided_slice %69 {offsets = [40, 0], sizes = [8, 160], strides = [1, 1]} : vector<64x160xf32> to vector<8x160xf32>
    %78 = arith.maximumf %76, %77 : vector<8x160xf32>
    %79 = vector.extract_strided_slice %69 {offsets = [48, 0], sizes = [8, 160], strides = [1, 1]} : vector<64x160xf32> to vector<8x160xf32>
    %80 = vector.extract_strided_slice %69 {offsets = [56, 0], sizes = [8, 160], strides = [1, 1]} : vector<64x160xf32> to vector<8x160xf32>
    %81 = arith.maximumf %79, %80 : vector<8x160xf32>
    %82 = tpu.concatenate %72, %75, %78, %81 in 0 : vector<8x160xf32>, vector<8x160xf32>, vector<8x160xf32>, vector<8x160xf32> -> vector<32x160xf32>
    %83 = vector.extract_strided_slice %82 {offsets = [0, 0], sizes = [32, 140], strides = [1, 1]} : vector<32x160xf32> to vector<32x140xf32>
    %84 = vector.extract_strided_slice %82 {offsets = [0, 20], sizes = [32, 140], strides = [1, 1]} : vector<32x160xf32> to vector<32x140xf32>
    %85 = arith.maximumf %83, %84 : vector<32x140xf32>
    %c0_12 = arith.constant 0 : index
    %c0_13 = arith.constant 0 : index
    %86 = vector.load %arg5[%c0_12, %c0_13] : memref<140x80xf32, #tpu.memory_space<vmem>>, vector<140x80xf32>
    %cst_14 = arith.constant dense<0.000000e+00> : vector<32x80xf32>
    %87 = tpu.matmul %85, %86, %cst_14 {dimension_numbers = #tpu.dot_dimension_numbers<[1], [0], [0], [1], [0, 0, 1, 1], [], []>} : vector<32x140xf32>, vector<140x80xf32>, vector<32x80xf32> -> vector<32x80xf32>
    %cst_15 = arith.constant 0.000000e+00 : f32
    %88 = vector.broadcast %cst_15 : f32 to vector<16x80xf32>
    %89 = tpu.concatenate %88, %87, %88 in 0 : vector<16x80xf32>, vector<32x80xf32>, vector<16x80xf32> -> vector<64x80xf32>
    %c0_16 = arith.constant 0 : index
    %c0_17 = arith.constant 0 : index
    %90 = vector.load %arg6[%c0_16, %c0_17] : memref<80x640xf32, #tpu.memory_space<vmem>>, vector<80x640xf32>
    %cst_18 = arith.constant dense<0.000000e+00> : vector<64x640xf32>
    %91 = tpu.matmul %89, %90, %cst_18 {dimension_numbers = #tpu.dot_dimension_numbers<[1], [0], [0], [1], [0, 0, 1, 1], [], []>} : vector<64x80xf32>, vector<80x640xf32>, vector<64x640xf32> -> vector<64x640xf32>
    %92 = vector.extract_strided_slice %91 {offsets = [0, 0], sizes = [32, 120], strides = [1, 1]} : vector<64x640xf32> to vector<32x120xf32>
    %93 = vector.extract_strided_slice %91 {offsets = [8, 128], sizes = [32, 120], strides = [1, 1]} : vector<64x640xf32> to vector<32x120xf32>
    %94 = arith.addf %92, %93 : vector<32x120xf32>
    %95 = vector.extract_strided_slice %91 {offsets = [16, 256], sizes = [32, 120], strides = [1, 1]} : vector<64x640xf32> to vector<32x120xf32>
    %96 = arith.addf %94, %95 : vector<32x120xf32>
    %97 = vector.extract_strided_slice %91 {offsets = [24, 384], sizes = [32, 120], strides = [1, 1]} : vector<64x640xf32> to vector<32x120xf32>
    %98 = arith.addf %96, %97 : vector<32x120xf32>
    %99 = vector.extract_strided_slice %91 {offsets = [32, 512], sizes = [32, 120], strides = [1, 1]} : vector<64x640xf32> to vector<32x120xf32>
    %100 = arith.addf %98, %99 : vector<32x120xf32>
    %cst_19 = arith.constant 0.000000e+00 : f32
    %101 = vector.broadcast %cst_19 : f32 to vector<32x120xf32>
    %102 = arith.maximumf %100, %101 : vector<32x120xf32>
    %103 = vector.extract_strided_slice %102 {offsets = [0, 0], sizes = [8, 120], strides = [1, 1]} : vector<32x120xf32> to vector<8x120xf32>
    %104 = vector.extract_strided_slice %102 {offsets = [8, 0], sizes = [8, 120], strides = [1, 1]} : vector<32x120xf32> to vector<8x120xf32>
    %105 = arith.maximumf %103, %104 : vector<8x120xf32>
    %106 = vector.extract_strided_slice %102 {offsets = [16, 0], sizes = [8, 120], strides = [1, 1]} : vector<32x120xf32> to vector<8x120xf32>
    %107 = vector.extract_strided_slice %102 {offsets = [24, 0], sizes = [8, 120], strides = [1, 1]} : vector<32x120xf32> to vector<8x120xf32>
    %108 = arith.maximumf %106, %107 : vector<8x120xf32>
    %109 = tpu.concatenate %105, %108 in 0 : vector<8x120xf32>, vector<8x120xf32> -> vector<16x120xf32>
    %110 = vector.extract_strided_slice %109 {offsets = [0, 0], sizes = [16, 90], strides = [1, 1]} : vector<16x120xf32> to vector<16x90xf32>
    %111 = vector.extract_strided_slice %109 {offsets = [0, 30], sizes = [16, 90], strides = [1, 1]} : vector<16x120xf32> to vector<16x90xf32>
    %112 = arith.maximumf %110, %111 : vector<16x90xf32>
    %c0_20 = arith.constant 0 : index
    %c0_21 = arith.constant 0 : index
    %113 = vector.load %arg7[%c0_20, %c0_21] : memref<90x60xf32, #tpu.memory_space<vmem>>, vector<90x60xf32>
    %cst_22 = arith.constant dense<0.000000e+00> : vector<16x60xf32>
    %114 = tpu.matmul %112, %113, %cst_22 {dimension_numbers = #tpu.dot_dimension_numbers<[1], [0], [0], [1], [0, 0, 1, 1], [], []>} : vector<16x90xf32>, vector<90x60xf32>, vector<16x60xf32> -> vector<16x60xf32>
    %115 = vector.extract_strided_slice %114 {offsets = [0, 0], sizes = [8, 60], strides = [1, 1]} : vector<16x60xf32> to vector<8x60xf32>
    %c0_23 = arith.constant 0 : index
    %c0_24 = arith.constant 0 : index
    %c0_25 = arith.constant 0 : index
    %116 = vector.load %arg8[%c0_23, %c0_24, %c0_25] : memref<2x60x128xf32, #tpu.memory_space<vmem>>, vector<1x60x128xf32>
    %117 = vector.shape_cast %116 : vector<1x60x128xf32> to vector<60x128xf32>
    %cst_26 = arith.constant dense<0.000000e+00> : vector<8x128xf32>
    %118 = tpu.matmul %115, %117, %cst_26 {dimension_numbers = #tpu.dot_dimension_numbers<[1], [0], [0], [1], [0, 0, 1, 1], [], []>} : vector<8x60xf32>, vector<60x128xf32>, vector<8x128xf32> -> vector<8x128xf32>
    %119 = vector.extract_strided_slice %114 {offsets = [8, 0], sizes = [8, 60], strides = [1, 1]} : vector<16x60xf32> to vector<8x60xf32>
    %c1 = arith.constant 1 : index
    %c0_27 = arith.constant 0 : index
    %c0_28 = arith.constant 0 : index
    %120 = vector.load %arg8[%c1, %c0_27, %c0_28] : memref<2x60x128xf32, #tpu.memory_space<vmem>>, vector<1x60x128xf32>
    %121 = vector.shape_cast %120 : vector<1x60x128xf32> to vector<60x128xf32>
    %cst_29 = arith.constant dense<0.000000e+00> : vector<8x128xf32>
    %122 = tpu.matmul %119, %121, %cst_29 {dimension_numbers = #tpu.dot_dimension_numbers<[1], [0], [0], [1], [0, 0, 1, 1], [], []>} : vector<8x60xf32>, vector<60x128xf32>, vector<8x128xf32> -> vector<8x128xf32>
    %123 = arith.addf %118, %122 : vector<8x128xf32>
    %c0_30 = arith.constant 0 : index
    %c0_31 = arith.constant 0 : index
    %124 = vector.load %arg9[%c0_30, %c0_31] : memref<8x128xf32, #tpu.memory_space<vmem>>, vector<8x128xf32>
    tpu.vector_store %arg9[%c0_30, %c0_31], %123 {strides = array<i32>} : memref<8x128xf32, #tpu.memory_space<vmem>>, vector<8x128xf32>,
    return
  }
  func.func @transform_0(%arg0: i32) -> (i32, i32, i32) {
    %c0_i32 = arith.constant 0 : i32
    %c0_i32_0 = arith.constant 0 : i32
    %c0_i32_1 = arith.constant 0 : i32
    return %arg0, %c0_i32, %c0_i32_0 : i32, i32, i32
  }
  func.func @transform_1(%arg0: i32) -> (i32, i32) {
    %c0_i32 = arith.constant 0 : i32
    %c0_i32_0 = arith.constant 0 : i32
    %c0_i32_1 = arith.constant 0 : i32
    return %c0_i32, %c0_i32_0 : i32, i32
  }
  func.func @transform_2(%arg0: i32) -> (i32, i32) {
    %c0_i32 = arith.constant 0 : i32
    %c0_i32_0 = arith.constant 0 : i32
    %c0_i32_1 = arith.constant 0 : i32
    return %c0_i32, %c0_i32_0 : i32, i32
  }
  func.func @transform_3(%arg0: i32) -> (i32, i32) {
    %c0_i32 = arith.constant 0 : i32
    %c0_i32_0 = arith.constant 0 : i32
    %c0_i32_1 = arith.constant 0 : i32
    return %c0_i32, %c0_i32_0 : i32, i32
  }
  func.func @transform_4(%arg0: i32) -> (i32, i32) {
    %c0_i32 = arith.constant 0 : i32
    %c0_i32_0 = arith.constant 0 : i32
    %c0_i32_1 = arith.constant 0 : i32
    return %c0_i32, %c0_i32_0 : i32, i32
  }
  func.func @transform_5(%arg0: i32) -> (i32, i32) {
    %c0_i32 = arith.constant 0 : i32
    %c0_i32_0 = arith.constant 0 : i32
    %c0_i32_1 = arith.constant 0 : i32
    return %c0_i32, %c0_i32_0 : i32, i32
  }
  func.func @transform_6(%arg0: i32) -> (i32, i32) {
    %c0_i32 = arith.constant 0 : i32
    %c0_i32_0 = arith.constant 0 : i32
    %c0_i32_1 = arith.constant 0 : i32
    return %c0_i32, %c0_i32_0 : i32, i32
  }
  func.func @transform_7(%arg0: i32) -> (i32, i32, i32) {
    %c0_i32 = arith.constant 0 : i32
    %c0_i32_0 = arith.constant 0 : i32
    %c0_i32_1 = arith.constant 0 : i32
    %c0_i32_2 = arith.constant 0 : i32
    return %c0_i32, %c0_i32_0, %c0_i32_1 : i32, i32, i32
  }
  func.func @transform_8(%arg0: i32) -> (i32, i32) {
    %c0_i32 = arith.constant 0 : i32
    %c0_i32_0 = arith.constant 0 : i32
    return %arg0, %c0_i32 : i32, i32
  }
}

</mosaic_0001>

<bundles_post_ra>
// kernel: improved_cnn_forward.1
= control target key start
LH: loop header
LB: loop body
LE: loop exit
PB: predicated region body
PF: predicated region fallthrough
CT: control target
= control target key end

     0   :  { %13 = vsyncpa [#allocation3], 0  ;;  %s7166_s0 = inlined_call_operand.vmem [shape: f32[2,224,28], index: 0, kind: input, shape index: {}]   ;;  %s7167_s1 = inlined_call_operand.hbm [shape: f32[28,1280], index: 1, kind: input, shape index: {}]   ;;  %s7168_s2 = inlined_call_operand.hbm [shape: f32[230,120], index: 2, kind: input, shape index: {}]   ;;  %s7169_s3 = inlined_call_operand.vmem [shape: f32[120,1280], index: 3, kind: input, shape index: {}]   ;;  %s7170_s4 = inlined_call_operand.hbm [shape: f32[140,80], index: 4, kind: input, shape index: {}]   ;;  %s7171_s5 = inlined_call_operand.hbm [shape: f32[80,640], index: 5, kind: input, shape index: {}]   ;;  %s7172_s6 = inlined_call_operand.vmem [shape: f32[90,60], index: 6, kind: input, shape index: {}]   ;;  %s7173_s7 = inlined_call_operand.vmem [shape: f32[2,60,128], index: 7, kind: input, shape index: {}]   ;;  %s7174_s8 = inlined_call_operand.hbm [shape: f32[16,128], index: 8, kind: output, shape index: {}]  }
   0x1   :  { %14 = vsyncpa [#allocation6], 0 }
   0x2   :  { %15 = vsyncpa [#allocation9], 0 }
   0x3   :  { %16 = vsyncpa [#allocation4], 0 }
   0x4   :  { %18 = vsyncpa [#allocation4 + $0x1], 0  ;;  %s4891_s27 = smov 0   ;;  %s4893_s28 = smov 0  }
   0x5   :  { %s4895_s29 = smov 0   ;;  %s4897_s30 = smov 0  }
   0x6 LB: > { %s4912_s9 = sadd.s32 4294967295, %s4828_s30   ;;  %s4140_s10 = sadd.s32 4294967294, %s4828_s30   ;;  %s4828_s30 = sphi %s4897_s30, %s7338_s30   ;;  %s4824_s29 = sphi %s4895_s29, %s7337_s29   ;;  %s4820_s28 = sphi %s4893_s28, %s7336_s28   ;;  %s4816_s27 = sphi %s4891_s27, %s7335_s27  }
   0x7   : > { %s4916_s11 = sadd.s32 1, %s4828_s30   ;;  %s204_s12 = sadd.s32 1, %s4824_s29 }
   0x8   : > { %s201_s13 = ssub.s32 %s4828_s30, %s4916_s11  ;;  %p214_p0 = scmp.ne.s32.totalorder %s4824_s29, %s4820_s28 }
   0x9   : > { %p202_p1 = scmp.eq.s32.totalorder %s201_s13, 0  ;;  %p215_p2 = scmp.eq.s32.totalorder %s4912_s9, 1 }
   0xa   : > { %p220_p3 = scmp.ne.s32.totalorder %s4820_s28, %s4816_s27  ;;  %p221_p4 = scmp.eq.s32.totalorder %s4140_s10, 1 }
   0xb   : > { %s4927_s14 = scalar_select %p202_p1, %s4824_s29, %s204_s12  }
   0xc   : > { %p4929_p5 = por %p215_p2, %p214_p0  ;;  %p4933_p6 = por %p221_p4, %p220_p3 }
   0xd   : > { %p4141_p7 = scmp.ge.s32.totalorder %s4828_s30, 1  ;;  %p228_p8 = scmp.lt.s32.totalorder %s4828_s30, 3 }
   0xe   : > { %p7177_p9 = scmp.eq.s32.totalorder %s4912_s9, 0  ;;  %s4830_s18 = smov [#allocation5]  }
   0xf   : > { %p4940_p10 = pnand %p4141_p7, %p228_p8  ;;  %s253_s19 = sshll.u32 %s4830_s18, 4  ;;  %s254_s19 = int_to_ptr.vmem [resolvable:$true] %s253_s19 }
  0x10   : > { %s4831_s21 = smov [#allocation2]   ;;  %s4663_s23 = scalar_lea.vmem %s254_s19, 3712 }
  0x11   : > { %p4579_p11 = pneg %p4940_p10  ;;  %s240_s22 = sshll.u32 %s4831_s21, 4  ;;  %s241_s22 = int_to_ptr.vmem [resolvable:$true] %s240_s22 }
  0x12   : > { %p4664_p0 = scmp.ne.s32.totalorder %s254_s19, %s4663_s23  ;;  %p4671_p3 = scmp.lt.s32.totalorder %s254_s19, %s254_s19 }
  0x13   : > { %p4948_p12 = pnand %p7177_p9, %p4579_p11  ;;  %p4672_p4 = scmp.lt.s32.totalorder %s4663_s23, %s4663_s23 }
  0x15   : > { %p4654_p13 = pneg %p4948_p12  ;;  %p4673_p7 = por %p4672_p4, %p4671_p3 }
  0x17   : > { %p4666_p1 = pnand %p4664_p0, %p4654_p13 }
  0x19   : > { %p4667_p2 = pneg %p4666_p1 }
  0x1b   : > { %p4674_p8 = pnand %p4673_p7, %p4667_p2 }
  0x1d   : > { %4677 = shalt.err (!%p4674_p8)
}
  0x1e   : > { %s7175_s24 = smov 128   ;;  %s7176_s25 = smov 8  }
  0x1f   : > { %4585 = dma.hbm_to_vmem [thread:$0]  (!%p4948_p12), %s7168_s2, 3712, %s254_s19, [#allocation6], %s7175_s24, %s7175_s24, %s7176_s25  }
  0x20   : > { %s4689_s12 = scalar_lea.vmem %s241_s22, 5120  ;;  %p4697_p2 = scmp.lt.s32.totalorder %s241_s22, %s241_s22 }
  0x21   : > { %p4690_p11 = scmp.ne.s32.totalorder %s241_s22, %s4689_s12  ;;  %p4698_p3 = scmp.lt.s32.totalorder %s4689_s12, %s4689_s12 }
  0x23   : > { %p4692_p0 = pnand %p4690_p11, %p4654_p13  ;;  %p4699_p4 = por %p4698_p3, %p4697_p2 }
  0x25   : > { %p4693_p1 = pneg %p4692_p0 }
  0x27   : > { %p4700_p7 = pnand %p4699_p4, %p4693_p1 }
  0x29   : > { %4703 = shalt.err (!%p4700_p7)
}
  0x2a   : > { %s4834_s13 = smov 1280   ;;  %s4835_s18 = smov 80  }
  0x2b   : > { %4582 = dma.hbm_to_vmem [thread:$0]  (!%p4948_p12), %s7167_s1, 5120, %s241_s22, [#allocation3], %s4834_s13, %s4834_s13, %s4835_s18  }
  0x2c   : > { %s4836_s19 = smov [#allocation7]   ;;  %s4837_s10 = smov [#allocation8]  }
  0x2d   : > { %s269_s26 = sshll.u32 %s4836_s19, 4  ;;  %s282_s24 = sshll.u32 %s4837_s10, 4  ;;  %s270_s26 = int_to_ptr.vmem [resolvable:$true] %s269_s26  ;;  %s283_s24 = int_to_ptr.vmem [resolvable:$true] %s282_s24 }
  0x2e   : > { %s4715_s25 = scalar_lea.vmem %s270_s26, 2304  ;;  %p4723_p1 = scmp.lt.s32.totalorder %s270_s26, %s270_s26 }
  0x2f   : > { %p4716_p8 = scmp.ne.s32.totalorder %s270_s26, %s4715_s25  ;;  %p4724_p2 = scmp.lt.s32.totalorder %s4715_s25, %s4715_s25 }
  0x31   : > { %p4718_p11 = pnand %p4716_p8, %p4654_p13  ;;  %p4725_p3 = por %p4724_p2, %p4723_p1 }
  0x33   : > { %p4719_p0 = pneg %p4718_p11 }
  0x35   : > { %p4726_p4 = pnand %p4725_p3, %p4719_p0 }
  0x37   : > { %4729 = shalt.err (!%p4726_p4)
}
  0x38   : > { %s7184_s22 = smov 8   ;;  %s7185_s12 = smov 128  }
  0x39   : > { %4588 = dma.hbm_to_vmem [thread:$0]  (!%p4948_p12), %s7170_s4, 2304, %s270_s26, [#allocation6], %s7185_s12, %s7185_s12, %s7184_s22  }
  0x3a   : > { %s4741_s21 = scalar_lea.vmem %s283_s24, 6400  ;;  %p4749_p9 = scmp.lt.s32.totalorder %s283_s24, %s283_s24 }
  0x3b   : > { %p4742_p7 = scmp.ne.s32.totalorder %s283_s24, %s4741_s21  ;;  %p4750_p1 = scmp.lt.s32.totalorder %s4741_s21, %s4741_s21 }
  0x3d   : > { %p4744_p8 = pnand %p4742_p7, %p4654_p13  ;;  %p4751_p0 = por %p4750_p1, %p4749_p9 }
  0x3f   : > { %p4745_p11 = pneg %p4744_p8 }
  0x41   : > { %p4752_p2 = pnand %p4751_p0, %p4745_p11 }
  0x43   : > { %4755 = shalt.err (!%p4752_p2)
}
  0x44   : > { %s4838_s25 = smov 640   ;;  %s4839_s23 = smov 40  }
  0x45   : > { %4591 = dma.hbm_to_vmem [thread:$0]  (!%p4948_p12), %s7171_s5, 6400, %s283_s24, [#allocation9], %s4838_s25, %s4838_s25, %s4839_s23  }
  0x46   : > { %312 = sbr.rel (%p4940_p10) target bundleno = 2289 (0x8f1), region = 52 }
  0x4b   : > { %p7186_p3 = scmp.eq.s32.totalorder %s4912_s9, 0 }
  0x4d   : > { %4799 = dma.done.wait (%p7186_p3), [#allocation3], 5120   ;;  %p7187_p13 = pmov %p7186_p3 }
  0x4e   : > { %p7188_p9 = pmov %p7186_p3 }
  0x4f   : > { %4801 = vsyncadd (%p7187_p13), [#allocation3], 4294962176 }
  0x50   : > { %4803 = dma.done.wait (%p7188_p9), [#allocation6], 6016   ;;  %p7189_p4 = pmov %p7186_p3 }
  0x51   : > { %p7190_p7 = pmov %p7186_p3 }
  0x52   : > { %4805 = vsyncadd (%p7189_p4), [#allocation6], 4294961280 }
  0x53   : > { %4807 = dma.done.wait (%p7190_p7), [#allocation9], 6400   ;;  %p7191_p12 = pmov %p7186_p3 }
  0x54   : > { %p358_p10 = scmp.lt.s32.totalorder %s4912_s9, 1  ;;  %v7178_v0 = vmov 0.0   ;;  %vm516_vm0 = vcmask 1043456   ;;  %v422_v1 = vld [vmem:[#allocation2 + $0xf8] sm:$0xf]  ;;  %v412_v5 = vld [vmem:[#allocation2 + $0xa8] sm:$0xff] }
  0x55   : > { %4809 = vsyncadd (%p7191_p12), [#allocation9], 4294960896  ;;  %611 = vmatprep.mubr.f32.mxu0 %v7178_v0  ;;  %836 = vmatprep.mubr.f32.mxu1 %v7178_v0  ;;  %v424_v2 = vld [vmem:[#allocation2 + $0x108] sm:$0xf]  ;;  %v421_v3 = vld [vmem:[#allocation2 + $0xf0] sm:$0xf] }
  0x56   : > { %s359_s17 = scalar_select %p358_p10, %s4912_s9, 1  ;;  %4154 = vmatprep.subr.msk.mxu0 %vm516_vm0, %v422_v1  ;;  %4184 = vmatprep.subr.msk.mxu1 %vm516_vm0, %v424_v2  ;;  %v423_v4 = vld [vmem:[#allocation2 + $0x100] sm:$0xf]  ;;  %v414_v6 = vld [vmem:[#allocation2 + $0xb8] sm:$0xff]  ;;  %v413_v8 = vld [vmem:[#allocation2 + $0xb0] sm:$0xff]  ;;  %vm431_vm1 = vcmask 228352  }
  0x57   : > { %4155 = vmatpush1.msk.msra.mxu0 %vm516_vm0, %v421_v3  ;;  %4185 = vmatpush1.msk.msra.mxu1 %vm516_vm0, %v423_v4  ;;  %v411_v7 = vld [vmem:[#allocation2 + $0xa0] sm:$0xff]  ;;  %v402_v9 = vld [vmem:[#allocation2 + $0x58] sm:$0xff]  ;;  %v404_v10 = vld [vmem:[#allocation2 + $0x68] sm:$0xff]  ;;  %vm2135_vm2 = vcmask 1045504   ;;  %s4841_s12 = smov 118   ;;  %vm2008_vm3 = vcmask 965632  }
  0x58   : > { %s4560_s20 = smul.u32 224, %s359_s17  ;;  %573 = vmatprep.subr.mxu0 %v412_v5  ;;  %798 = vmatprep.subr.mxu1 %v414_v6  ;;  %v401_v11 = vld [vmem:[#allocation2 + $0x50] sm:$0xff]  ;;  %v403_v12 = vld [vmem:[#allocation2 + $0x60] sm:$0xff]  ;;  %v392_v13 = vld [vmem:[#allocation2 + $0x8] sm:$0xff]  ;;  %vm2098_vm4 = vcmask 834560   ;;  %vm2414_vm5 = vcmask 982016  }
  0x59   : > { %574 = vmatpush1.msra.mxu0 %v411_v7  ;;  %799 = vmatpush1.msra.mxu1 %v413_v8  ;;  %v394_v14 = vld [vmem:[#allocation2 + $0x18] sm:$0xff]  ;;  %v391_v15 = vld [vmem:[#allocation2] sm:$0xff]  ;;  %v393_v16 = vld [vmem:[#allocation2 + $0x10] sm:$0xff]  ;;  %s4842_s25 = smov 108   ;;  %vm3208_vm6 = vcmask 883712   ;;  %vm3247_vm7 = vcmask 97280  }
  0x5a   : > { %s5017_s22 = scalar_lea.vmem %s7166_s0, %s4560_s20  ;;  %575 = vmatprep.subr.mxu0 %v402_v9  ;;  %800 = vmatprep.subr.mxu1 %v404_v10  ;;  %v426_v18 = vld [vmem:[#allocation2 + $0x118] sm:$0xf]  ;;  %v425_v19 = vld [vmem:[#allocation2 + $0x110] sm:$0xf]  ;;  %v416_v20 = vld [vmem:[#allocation2 + $0xc8] sm:$0xff]  ;;  %vm3398_vm8 = vcmask 654336  }
  0x5b   : > { %576 = vmatpush1.msra.mxu0 %v401_v11  ;;  %801 = vmatpush1.msra.mxu1 %v403_v12  ;;  %v5020_v17 = vld [vmem:[%s5017_s22] sm:$0xff]  ;;  %v5029_v21 = vld [vmem:[%s5017_s22 + $0x8] sm:$0xff]  ;;  %v406_v23 = vld [vmem:[#allocation2 + $0x78] sm:$0xff]  ;;  %vm3776_vm9 = vcmask 1041408   ;;  %vm3769_vm10 = vcmask 736256   ;;  %vm4844_vm11 = vmmov 0  }
  0x5c   : > { %577 = vmatprep.subr.mxu0 %v392_v13  ;;  %802 = vmatprep.subr.mxu1 %v394_v14  ;;  %v415_v22 = vld [vmem:[#allocation2 + $0xc0] sm:$0xff]  ;;  %v5040_v24 = vld [vmem:[%s5017_s22 + $0x10] sm:$0xff]  ;;  %v396_v26 = vld [vmem:[#allocation2 + $0x28] sm:$0xff]  ;;  %vm3872_vm12 = vcmask 490496   ;;  %s355_s24 = sand.u32 1, %s4820_s28   ;;  %s4410_s26 = sshll.u32 %s4912_s9, 7 }
  0x5d   : > { %578 = vmatpush1.msra.mxu0 %v391_v15  ;;  %803 = vmatpush1.msra.mxu1 %v393_v16  ;;  %v405_v25 = vld [vmem:[#allocation2 + $0x70] sm:$0xff]  ;;  %v428_v27 = vld [vmem:[#allocation2 + $0x128] sm:$0xf]  ;;  %v427_v28 = vld [vmem:[#allocation2 + $0x120] sm:$0xf]  ;;  %s4027_s23 = scalar_lea.sflag [#allocation4], %s355_s24 }
  0x5e   : > { %4156 = vmatmul.mubr.msk.f32.vlgmr.msra.gmra.mxu0 %vm431_vm1, %v5020_v17  ;;  %4186 = vmatmul.mubr.msk.f32.vlgmr.msra.gmra.mxu1 %vm431_vm1, %v5020_v17  ;;  %v5049_v29 = vld [vmem:[%s5017_s22 + $0x18] sm:$0xff]  ;;  %v395_v30 = vld [vmem:[#allocation2 + $0x20] sm:$0xff]  ;;  %v417_v32 = vld [vmem:[#allocation2 + $0xd0] sm:$0xff]  ;;  %s4845_s9 = smov [#allocation10]  }
  0x5f   : > { %4214 = vmatprep.subr.msk.mxu0 %vm516_vm0, %v426_v18  ;;  %617 = vmatprep.mubr.f32.mxu0 %v7178_v0  ;;  %v418_v31 = vld [vmem:[#allocation2 + $0xd8] sm:$0xff]  ;;  %v5060_v34 = vld [vmem:[%s5017_s22 + $0x20] sm:$0xff]  ;;  %v408_v35 = vld [vmem:[#allocation2 + $0x88] sm:$0xff]  ;;  %s4760_s10 = sshll.u32 %s4845_s9, 4  ;;  %s4761_s10 = int_to_ptr.vmem [resolvable:$false] %s4760_s10 }
  0x60   : > { %4215 = vmatpush1.msk.msra.mxu0 %vm516_vm0, %v425_v19  ;;  %840 = vmatprep.mubr.f32.mxu1 %v7178_v0  ;;  %v430_v33 = vld [vmem:[#allocation2 + $0x138] sm:$0xf]  ;;  %v407_v36 = vld [vmem:[#allocation2 + $0x80] sm:$0xff]  ;;  %v5070_v37 = vld [vmem:[%s5017_s22 + $0x28] sm:$0xff]  ;;  %s4762_s17 = scalar_lea.vmem %s4761_s10, 256 }
  0x61   : > { %1023 = vmatprep.subr.mxu0 %v416_v20  ;;  %4244 = vmatprep.subr.msk.mxu1 %vm516_vm0, %v428_v27  ;;  %v398_v38 = vld [vmem:[#allocation2 + $0x38] sm:$0xff]  ;;  %v397_v39 = vld [vmem:[#allocation2 + $0x30] sm:$0xff]  ;;  %v5098_v42 = vld [vmem:[%s5017_s22 + $0x40] sm:$0xff] }
  0x62   : > { %4157 = vmatmul.mubr.msk.f32.gmra.mxu0 %vm431_vm1, %v5029_v21  ;;  %4187 = vmatmul.mubr.msk.f32.gmra.mxu1 %vm431_vm1, %v5029_v21  ;;  %v5079_v40 = vld [vmem:[%s5017_s22 + $0x30] sm:$0xff]  ;;  %v5088_v41 = vld [vmem:[%s5017_s22 + $0x38] sm:$0xff]  ;;  %v5107_v43 = vld [vmem:[%s5017_s22 + $0x48] sm:$0xff] }
  0x63   : > { %623 = vmatprep.mubr.f32.mxu0 %v7178_v0  ;;  %846 = vmatprep.mubr.f32.mxu1 %v7178_v0  ;;  %v5116_v44 = vld [vmem:[%s5017_s22 + $0x50] sm:$0xff]  ;;  %v5125_v45 = vld [vmem:[%s5017_s22 + $0x58] sm:$0xff]  ;;  %v5134_v46 = vld [vmem:[%s5017_s22 + $0x60] sm:$0xff] }
  0x64   : > { %1024 = vmatpush1.msra.mxu0 %v415_v22  ;;  %4245 = vmatpush1.msk.msra.mxu1 %vm516_vm0, %v427_v28  ;;  %v5143_v47 = vld [vmem:[%s5017_s22 + $0x68] sm:$0xff]  ;;  %v5152_v48 = vld [vmem:[%s5017_s22 + $0x70] sm:$0xff]  ;;  %v5161_v49 = vld [vmem:[%s5017_s22 + $0x78] sm:$0xff] }
  0x65   : > { %1025 = vmatprep.subr.mxu0 %v406_v23  ;;  %1248 = vmatprep.subr.mxu1 %v418_v31  ;;  %v5170_v50 = vld [vmem:[%s5017_s22 + $0x80] sm:$0xff]  ;;  %v5179_v51 = vld [vmem:[%s5017_s22 + $0x88] sm:$0xff]  ;;  %v5188_v52 = vld [vmem:[%s5017_s22 + $0x90] sm:$0xff] }
  0x66   : > { %4158 = vmatmul.mubr.msk.f32.gmra.mxu0 %vm431_vm1, %v5040_v24  ;;  %4188 = vmatmul.mubr.msk.f32.gmra.mxu1 %vm431_vm1, %v5040_v24  ;;  %v5197_v53 = vld [vmem:[%s5017_s22 + $0x98] sm:$0xff]  ;;  %v5206_v54 = vld [vmem:[%s5017_s22 + $0xa0] sm:$0xff]  ;;  %v5215_v55 = vld [vmem:[%s5017_s22 + $0xa8] sm:$0xff] }
  0x67   : > { %629 = vmatprep.mubr.f32.mxu0 %v7178_v0  ;;  %852 = vmatprep.mubr.f32.mxu1 %v7178_v0  ;;  %v5224_v56 = vld [vmem:[%s5017_s22 + $0xb0] sm:$0xff]  ;;  %v5233_v57 = vld [vmem:[%s5017_s22 + $0xb8] sm:$0xff]  ;;  %v5242_v58 = vld [vmem:[%s5017_s22 + $0xc0] sm:$0xff] }
  0x68   : > { %1026 = vmatpush1.msra.mxu0 %v405_v25  ;;  %1249 = vmatpush1.msra.mxu1 %v417_v32  ;;  %v5251_v59 = vld [vmem:[%s5017_s22 + $0xc8] sm:$0xff]  ;;  %v5260_v60 = vld [vmem:[%s5017_s22 + $0xd0] sm:$0xff]  ;;  %v5269_v61 = vld [vmem:[%s5017_s22 + $0xd8] sm:$0xff]  ;;  %s4843_s22 = smov 98  }
  0x69   : > { %1027 = vmatprep.subr.mxu0 %v396_v26  ;;  %1250 = vmatprep.subr.mxu1 %v408_v35  ;;  %v429_v62 = vld [vmem:[#allocation2 + $0x130] sm:$0xf]  ;;  %v420_v63 = vld [vmem:[#allocation2 + $0xe8] sm:$0xff]  ;;  %v419_v1 = vld [vmem:[#allocation2 + $0xe0] sm:$0xff] }
  0x6a   : > { %4159 = vmatmul.mubr.msk.f32.gmra.mxu0 %vm431_vm1, %v5049_v29  ;;  %4189 = vmatmul.mubr.msk.f32.gmra.mxu1 %vm431_vm1, %v5049_v29  ;;  %v410_v2 = vld [vmem:[#allocation2 + $0x98] sm:$0xff]  ;;  %v409_v3 = vld [vmem:[#allocation2 + $0x90] sm:$0xff]  ;;  %v400_v4 = vld [vmem:[#allocation2 + $0x48] sm:$0xff] }
  0x6b   : > { %635 = vmatprep.mubr.f32.mxu0 %v7178_v0  ;;  %858 = vmatprep.mubr.f32.mxu1 %v7178_v0  ;;  %v399_v5 = vld [vmem:[#allocation2 + $0x40] sm:$0xff] }
  0x6c   : > { %1028 = vmatpush1.msra.mxu0 %v395_v30  ;;  %1251 = vmatpush1.msra.mxu1 %v407_v36 }
  0x6d   : > { %4274 = vmatprep.subr.msk.mxu0 %vm516_vm0, %v430_v33  ;;  %1252 = vmatprep.subr.mxu1 %v398_v38 }
  0x6e   : > { %4160 = vmatmul.mubr.msk.f32.gmra.mxu0 %vm431_vm1, %v5060_v34  ;;  %4190 = vmatmul.mubr.msk.f32.gmra.mxu1 %vm431_vm1, %v5060_v34 }
  0x6f   : > { %641 = vmatprep.mubr.f32.mxu0 %v7178_v0  ;;  %864 = vmatprep.mubr.f32.mxu1 %v7178_v0 }
  0x70   : > { %1253 = vmatpush1.msra.mxu1 %v397_v39 }
  0x71   : > { %2139 = vmatprep.subr.mxu1 %v7178_v0 }
  0x72   : > { %4161 = vmatmul.mubr.msk.f32.gmra.mxu0 %vm431_vm1, %v5070_v37  ;;  %4191 = vmatmul.mubr.msk.f32.gmra.mxu1 %vm431_vm1, %v5070_v37 }
  0x73   : > { %647 = vmatprep.mubr.f32.mxu0 %v7178_v0  ;;  %870 = vmatprep.mubr.f32.mxu1 %v7178_v0 }
  0x76   : > { %4162 = vmatmul.mubr.msk.f32.gmra.mxu0 %vm431_vm1, %v5079_v40  ;;  %4192 = vmatmul.mubr.msk.f32.gmra.mxu1 %vm431_vm1, %v5079_v40 }
  0x77   : > { %653 = vmatprep.mubr.f32.mxu0 %v7178_v0  ;;  %876 = vmatprep.mubr.f32.mxu1 %v7178_v0 }
  0x7a   : > { %4163 = vmatmul.mubr.msk.f32.gmra.mxu0 %vm431_vm1, %v5088_v41  ;;  %4193 = vmatmul.mubr.msk.f32.gmra.mxu1 %vm431_vm1, %v5088_v41 }
  0x7b   : > { %659 = vmatprep.mubr.f32.mxu0 %v7178_v0  ;;  %882 = vmatprep.mubr.f32.mxu1 %v7178_v0 }
  0x7e   : > { %4164 = vmatmul.mubr.msk.f32.gmra.mxu0 %vm431_vm1, %v5098_v42  ;;  %4194 = vmatmul.mubr.msk.f32.gmra.mxu1 %vm431_vm1, %v5098_v42 }
  0x7f   : > { %665 = vmatprep.mubr.f32.mxu0 %v7178_v0  ;;  %888 = vmatprep.mubr.f32.mxu1 %v7178_v0 }
  0x82   : > { %4165 = vmatmul.mubr.msk.f32.gmra.mxu0 %vm431_vm1, %v5107_v43  ;;  %4195 = vmatmul.mubr.msk.f32.gmra.mxu1 %vm431_vm1, %v5107_v43 }
  0x83   : > { %671 = vmatprep.mubr.f32.mxu0 %v7178_v0  ;;  %894 = vmatprep.mubr.f32.mxu1 %v7178_v0 }
  0x86   : > { %4166 = vmatmul.mubr.msk.f32.gmra.mxu0 %vm431_vm1, %v5116_v44  ;;  %4196 = vmatmul.mubr.msk.f32.gmra.mxu1 %vm431_vm1, %v5116_v44 }
  0x87   : > { %677 = vmatprep.mubr.f32.mxu0 %v7178_v0  ;;  %900 = vmatprep.mubr.f32.mxu1 %v7178_v0 }
  0x8a   : > { %4167 = vmatmul.mubr.msk.f32.gmra.mxu0 %vm431_vm1, %v5125_v45  ;;  %4197 = vmatmul.mubr.msk.f32.gmra.mxu1 %vm431_vm1, %v5125_v45 }
  0x8b   : > { %683 = vmatprep.mubr.f32.mxu0 %v7178_v0  ;;  %906 = vmatprep.mubr.f32.mxu1 %v7178_v0 }
  0x8e   : > { %4168 = vmatmul.mubr.msk.f32.gmra.mxu0 %vm431_vm1, %v5134_v46  ;;  %4198 = vmatmul.mubr.msk.f32.gmra.mxu1 %vm431_vm1, %v5134_v46 }
  0x8f   : > { %689 = vmatprep.mubr.f32.mxu0 %v7178_v0  ;;  %912 = vmatprep.mubr.f32.mxu1 %v7178_v0 }
  0x92   : > { %4169 = vmatmul.mubr.msk.f32.gmra.mxu0 %vm431_vm1, %v5143_v47  ;;  %4199 = vmatmul.mubr.msk.f32.gmra.mxu1 %vm431_vm1, %v5143_v47 }
  0x93   : > { %695 = vmatprep.mubr.f32.mxu0 %v7178_v0  ;;  %918 = vmatprep.mubr.f32.mxu1 %v7178_v0 }
  0x96   : > { %4170 = vmatmul.mubr.msk.f32.gmra.mxu0 %vm431_vm1, %v5152_v48  ;;  %4200 = vmatmul.mubr.msk.f32.gmra.mxu1 %vm431_vm1, %v5152_v48 }
  0x97   : > { %701 = vmatprep.mubr.f32.mxu0 %v7178_v0  ;;  %924 = vmatprep.mubr.f32.mxu1 %v7178_v0 }
  0x9a   : > { %4171 = vmatmul.mubr.msk.f32.gmra.mxu0 %vm431_vm1, %v5161_v49  ;;  %4201 = vmatmul.mubr.msk.f32.gmra.mxu1 %vm431_vm1, %v5161_v49 }
  0x9b   : > { %707 = vmatprep.mubr.f32.mxu0 %v7178_v0  ;;  %930 = vmatprep.mubr.f32.mxu1 %v7178_v0 }
  0x9e   : > { %4172 = vmatmul.mubr.msk.f32.gmra.mxu0 %vm431_vm1, %v5170_v50  ;;  %4202 = vmatmul.mubr.msk.f32.gmra.mxu1 %vm431_vm1, %v5170_v50 }
  0x9f   : > { %713 = vmatprep.mubr.f32.mxu0 %v7178_v0  ;;  %936 = vmatprep.mubr.f32.mxu1 %v7178_v0 }
  0xa2   : > { %4173 = vmatmul.mubr.msk.f32.gmra.mxu0 %vm431_vm1, %v5179_v51  ;;  %4203 = vmatmul.mubr.msk.f32.gmra.mxu1 %vm431_vm1, %v5179_v51 }
  0xa3   : > { %719 = vmatprep.mubr.f32.mxu0 %v7178_v0  ;;  %942 = vmatprep.mubr.f32.mxu1 %v7178_v0 }
  0xa6   : > { %4174 = vmatmul.mubr.msk.f32.gmra.mxu0 %vm431_vm1, %v5188_v52  ;;  %4204 = vmatmul.mubr.msk.f32.gmra.mxu1 %vm431_vm1, %v5188_v52 }
  0xa7   : > { %725 = vmatprep.mubr.f32.mxu0 %v7178_v0  ;;  %948 = vmatprep.mubr.f32.mxu1 %v7178_v0 }
  0xaa   : > { %4175 = vmatmul.mubr.msk.f32.gmra.mxu0 %vm431_vm1, %v5197_v53  ;;  %4205 = vmatmul.mubr.msk.f32.gmra.mxu1 %vm431_vm1, %v5197_v53 }
  0xab   : > { %731 = vmatprep.mubr.f32.mxu0 %v7178_v0  ;;  %954 = vmatprep.mubr.f32.mxu1 %v7178_v0 }
  0xae   : > { %4176 = vmatmul.mubr.msk.f32.gmra.mxu0 %vm431_vm1, %v5206_v54  ;;  %4206 = vmatmul.mubr.msk.f32.gmra.mxu1 %vm431_vm1, %v5206_v54 }
  0xaf   : > { %737 = vmatprep.mubr.f32.mxu0 %v7178_v0  ;;  %960 = vmatprep.mubr.f32.mxu1 %v7178_v0 }
  0xb2   : > { %4177 = vmatmul.mubr.msk.f32.gmra.mxu0 %vm431_vm1, %v5215_v55  ;;  %4207 = vmatmul.mubr.msk.f32.gmra.mxu1 %vm431_vm1, %v5215_v55 }
  0xb3   : > { %743 = vmatprep.mubr.f32.mxu0 %v7178_v0  ;;  %966 = vmatprep.mubr.f32.mxu1 %v7178_v0 }
  0xb6   : > { %4178 = vmatmul.mubr.msk.f32.gmra.mxu0 %vm431_vm1, %v5224_v56  ;;  %4208 = vmatmul.mubr.msk.f32.gmra.mxu1 %vm431_vm1, %v5224_v56 }
  0xb7   : > { %749 = vmatprep.mubr.f32.mxu0 %v7178_v0  ;;  %972 = vmatprep.mubr.f32.mxu1 %v7178_v0 }
  0xba   : > { %4179 = vmatmul.mubr.msk.f32.gmra.mxu0 %vm431_vm1, %v5233_v57  ;;  %4209 = vmatmul.mubr.msk.f32.gmra.mxu1 %vm431_vm1, %v5233_v57 }
  0xbb   : > { %755 = vmatprep.mubr.f32.mxu0 %v7178_v0  ;;  %978 = vmatprep.mubr.f32.mxu1 %v7178_v0 }
  0xbe   : > { %4180 = vmatmul.mubr.msk.f32.gmra.mxu0 %vm431_vm1, %v5242_v58  ;;  %4210 = vmatmul.mubr.msk.f32.gmra.mxu1 %vm431_vm1, %v5242_v58 }
  0xbf   : > { %759 = vmatprep.mubr.f32.mxu0 %v7178_v0  ;;  %984 = vmatprep.mubr.f32.mxu1 %v7178_v0 }
  0xc2   : > { %4181 = vmatmul.mubr.msk.f32.gmra.mxu0 %vm431_vm1, %v5251_v59  ;;  %4211 = vmatmul.mubr.msk.f32.gmra.mxu1 %vm431_vm1, %v5251_v59 }
  0xc3   : > { %763 = vmatprep.mubr.f32.mxu0 %v7178_v0  ;;  %988 = vmatprep.mubr.f32.mxu1 %v7178_v0 }
  0xc6   : > { %4182 = vmatmul.mubr.msk.f32.gmra.mxu0 %vm431_vm1, %v5260_v60  ;;  %4212 = vmatmul.mubr.msk.f32.gmra.mxu1 %vm431_vm1, %v5260_v60 }
  0xc7   : > { %767 = vmatprep.mubr.f32.mxu0 %v7178_v0  ;;  %992 = vmatprep.mubr.f32.mxu1 %v7178_v0 }
  0xca   : > { %4183 = vmatmul.mubr.msk.f32.gmra.mxu0 %vm431_vm1, %v5269_v61  ;;  %4213 = vmatmul.mubr.msk.f32.gmra.mxu1 %vm431_vm1, %v5269_v61 }
  0xcb   : > { %1061 = vmatprep.mubr.f32.mxu0 %v7178_v0  ;;  %1286 = vmatprep.mubr.f32.mxu1 %v7178_v0 }
  0xce   : > { %4216 = vmatmul.mubr.msk.f32.vlgmr.msra.gmra.mxu0 %vm431_vm1, %v5020_v17  ;;  %4246 = vmatmul.mubr.msk.f32.vlgmr.msra.gmra.mxu1 %vm431_vm1, %v5020_v17 }
  0xcf   : > { %4275 = vmatpush1.msk.msra.mxu0 %vm516_vm0, %v429_v62  ;;  %1065 = vmatprep.mubr.f32.mxu0 %v7178_v0 }
  0xd0   : > { %1290 = vmatprep.mubr.f32.mxu1 %v7178_v0  ;;  %1473 = vmatprep.subr.mxu0 %v420_v63 }
  0xd1   : > { %1474 = vmatpush1.msra.mxu0 %v419_v1 }
  0xd2   : > { %4217 = vmatmul.mubr.msk.f32.gmra.mxu0 %vm431_vm1, %v5029_v21  ;;  %4247 = vmatmul.mubr.msk.f32.gmra.mxu1 %vm431_vm1, %v5029_v21 }
  0xd3   : > { %1069 = vmatprep.mubr.f32.mxu0 %v7178_v0  ;;  %1294 = vmatprep.mubr.f32.mxu1 %v7178_v0 }
  0xd4   : > { %1475 = vmatprep.subr.mxu0 %v410_v2 }
  0xd5   : > { %1476 = vmatpush1.msra.mxu0 %v409_v3 }
  0xd6   : > { %4218 = vmatmul.mubr.msk.f32.gmra.mxu0 %vm431_vm1, %v5040_v24  ;;  %4248 = vmatmul.mubr.msk.f32.gmra.mxu1 %vm431_vm1, %v5040_v24 }
  0xd7   : > { %1075 = vmatprep.mubr.f32.mxu0 %v7178_v0  ;;  %1298 = vmatprep.mubr.f32.mxu1 %v7178_v0 }
  0xd8   : > { %1477 = vmatprep.subr.mxu0 %v400_v4 }
  0xd9   : > { %1478 = vmatpush1.msra.mxu0 %v399_v5 }
  0xda   : > { %4219 = vmatmul.mubr.msk.f32.gmra.mxu0 %vm431_vm1, %v5049_v29  ;;  %4249 = vmatmul.mubr.msk.f32.gmra.mxu1 %vm431_vm1, %v5049_v29 }
  0xdb   : > { %1081 = vmatprep.mubr.f32.mxu0 %v7178_v0  ;;  %1304 = vmatprep.mubr.f32.mxu1 %v7178_v0 }
  0xde   : > { %4220 = vmatmul.mubr.msk.f32.gmra.mxu0 %vm431_vm1, %v5060_v34  ;;  %4250 = vmatmul.mubr.msk.f32.gmra.mxu1 %vm431_vm1, %v5060_v34 }
  0xdf   : > { %1087 = vmatprep.mubr.f32.mxu0 %v7178_v0  ;;  %1310 = vmatprep.mubr.f32.mxu1 %v7178_v0 }
  0xe2   : > { %4221 = vmatmul.mubr.msk.f32.gmra.mxu0 %vm431_vm1, %v5070_v37  ;;  %4251 = vmatmul.mubr.msk.f32.gmra.mxu1 %vm431_vm1, %v5070_v37 }
  0xe3   : > { %1093 = vmatprep.mubr.f32.mxu0 %v7178_v0  ;;  %1316 = vmatprep.mubr.f32.mxu1 %v7178_v0 }
  0xe6   : > { %4222 = vmatmul.mubr.msk.f32.gmra.mxu0 %vm431_vm1, %v5079_v40  ;;  %4252 = vmatmul.mubr.msk.f32.gmra.mxu1 %vm431_vm1, %v5079_v40 }
  0xe7   : > { %1099 = vmatprep.mubr.f32.mxu0 %v7178_v0  ;;  %1322 = vmatprep.mubr.f32.mxu1 %v7178_v0 }
  0xea   : > { %4223 = vmatmul.mubr.msk.f32.gmra.mxu0 %vm431_vm1, %v5088_v41  ;;  %4253 = vmatmul.mubr.msk.f32.gmra.mxu1 %vm431_vm1, %v5088_v41 }
  0xeb   : > { %1105 = vmatprep.mubr.f32.mxu0 %v7178_v0  ;;  %1328 = vmatprep.mubr.f32.mxu1 %v7178_v0 }
  0xee   : > { %4224 = vmatmul.mubr.msk.f32.gmra.mxu0 %vm431_vm1, %v5098_v42  ;;  %4254 = vmatmul.mubr.msk.f32.gmra.mxu1 %vm431_vm1, %v5098_v42 }
  0xef   : > { %1111 = vmatprep.mubr.f32.mxu0 %v7178_v0  ;;  %1334 = vmatprep.mubr.f32.mxu1 %v7178_v0 }
  0xf2   : > { %4225 = vmatmul.mubr.msk.f32.gmra.mxu0 %vm431_vm1, %v5107_v43  ;;  %4255 = vmatmul.mubr.msk.f32.gmra.mxu1 %vm431_vm1, %v5107_v43 }
  0xf3   : > { %1117 = vmatprep.mubr.f32.mxu0 %v7178_v0  ;;  %1340 = vmatprep.mubr.f32.mxu1 %v7178_v0 }
  0xf6   : > { %4226 = vmatmul.mubr.msk.f32.gmra.mxu0 %vm431_vm1, %v5116_v44  ;;  %4256 = vmatmul.mubr.msk.f32.gmra.mxu1 %vm431_vm1, %v5116_v44 }
  0xf7   : > { %1123 = vmatprep.mubr.f32.mxu0 %v7178_v0  ;;  %1346 = vmatprep.mubr.f32.mxu1 %v7178_v0 }
  0xfa   : > { %4227 = vmatmul.mubr.msk.f32.gmra.mxu0 %vm431_vm1, %v5125_v45  ;;  %4257 = vmatmul.mubr.msk.f32.gmra.mxu1 %vm431_vm1, %v5125_v45 }
  0xfb   : > { %1129 = vmatprep.mubr.f32.mxu0 %v7178_v0  ;;  %1352 = vmatprep.mubr.f32.mxu1 %v7178_v0 }
  0xfe   : > { %4228 = vmatmul.mubr.msk.f32.gmra.mxu0 %vm431_vm1, %v5134_v46  ;;  %4258 = vmatmul.mubr.msk.f32.gmra.mxu1 %vm431_vm1, %v5134_v46 }
  0xff   : > { %1135 = vmatprep.mubr.f32.mxu0 %v7178_v0  ;;  %1358 = vmatprep.mubr.f32.mxu1 %v7178_v0 }
 0x102   : > { %4229 = vmatmul.mubr.msk.f32.gmra.mxu0 %vm431_vm1, %v5143_v47  ;;  %4259 = vmatmul.mubr.msk.f32.gmra.mxu1 %vm431_vm1, %v5143_v47 }
 0x103   : > { %1141 = vmatprep.mubr.f32.mxu0 %v7178_v0  ;;  %1364 = vmatprep.mubr.f32.mxu1 %v7178_v0 }
 0x106   : > { %4230 = vmatmul.mubr.msk.f32.gmra.mxu0 %vm431_vm1, %v5152_v48  ;;  %4260 = vmatmul.mubr.msk.f32.gmra.mxu1 %vm431_vm1, %v5152_v48 }
 0x107   : > { %1147 = vmatprep.mubr.f32.mxu0 %v7178_v0  ;;  %1370 = vmatprep.mubr.f32.mxu1 %v7178_v0 }
 0x10a   : > { %4231 = vmatmul.mubr.msk.f32.gmra.mxu0 %vm431_vm1, %v5161_v49  ;;  %4261 = vmatmul.mubr.msk.f32.gmra.mxu1 %vm431_vm1, %v5161_v49 }
 0x10b   : > { %1153 = vmatprep.mubr.f32.mxu0 %v7178_v0  ;;  %1376 = vmatprep.mubr.f32.mxu1 %v7178_v0 }
 0x10e   : > { %4232 = vmatmul.mubr.msk.f32.gmra.mxu0 %vm431_vm1, %v5170_v50  ;;  %4262 = vmatmul.mubr.msk.f32.gmra.mxu1 %vm431_vm1, %v5170_v50 }
 0x10f   : > { %1159 = vmatprep.mubr.f32.mxu0 %v7178_v0  ;;  %1382 = vmatprep.mubr.f32.mxu1 %v7178_v0 }
 0x112   : > { %4233 = vmatmul.mubr.msk.f32.gmra.mxu0 %vm431_vm1, %v5179_v51  ;;  %4263 = vmatmul.mubr.msk.f32.gmra.mxu1 %vm431_vm1, %v5179_v51 }
 0x113   : > { %1165 = vmatprep.mubr.f32.mxu0 %v7178_v0  ;;  %1388 = vmatprep.mubr.f32.mxu1 %v7178_v0 }
 0x116   : > { %4234 = vmatmul.mubr.msk.f32.gmra.mxu0 %vm431_vm1, %v5188_v52  ;;  %4264 = vmatmul.mubr.msk.f32.gmra.mxu1 %vm431_vm1, %v5188_v52 }
 0x117   : > { %1171 = vmatprep.mubr.f32.mxu0 %v7178_v0  ;;  %1394 = vmatprep.mubr.f32.mxu1 %v7178_v0 }
 0x11a   : > { %4235 = vmatmul.mubr.msk.f32.gmra.mxu0 %vm431_vm1, %v5197_v53  ;;  %4265 = vmatmul.mubr.msk.f32.gmra.mxu1 %vm431_vm1, %v5197_v53 }
 0x11b   : > { %1177 = vmatprep.mubr.f32.mxu0 %v7178_v0  ;;  %1400 = vmatprep.mubr.f32.mxu1 %v7178_v0 }
 0x11e   : > { %v613_v6 = vpop.f32.mrf.mxu0  ;;  %v838_v7 = vpop.f32.mrf.mxu1  ;;  %4236 = vmatmul.mubr.msk.f32.gmra.mxu0 %vm431_vm1, %v5206_v54  ;;  %4266 = vmatmul.mubr.msk.f32.gmra.mxu1 %vm431_vm1, %v5206_v54 }
 0x11f   : > { %1183 = vmatprep.mubr.f32.mxu0 %v7178_v0  ;;  %1406 = vmatprep.mubr.f32.mxu1 %v7178_v0 }
 0x120   : > { %v5404_v8 = vpop.f32.mrf.mxu0  ;;  %v839_v9 = vpop.f32.mrf.mxu1 }
 0x122   : > { %v619_v10 = vpop.f32.mrf.mxu0  ;;  %v842_v11 = vpop.f32.mrf.mxu1  ;;  %4237 = vmatmul.mubr.msk.f32.gmra.mxu0 %vm431_vm1, %v5215_v55  ;;  %4267 = vmatmul.mubr.msk.f32.gmra.mxu1 %vm431_vm1, %v5215_v55 }
 0x123   : > { %v5410_v12 = vadd.f32 %v842_v11, %v613_v6  ;;  %1189 = vmatprep.mubr.f32.mxu0 %v7178_v0  ;;  %1412 = vmatprep.mubr.f32.mxu1 %v7178_v0 }
 0x124   : > { %v5414_v13 = vpop.f32.mrf.mxu0  ;;  %v5416_v14 = vpop.f32.mrf.mxu1 }
 0x126   : > { %v625_v15 = vpop.f32.mrf.mxu0  ;;  %v848_v16 = vpop.f32.mrf.mxu1  ;;  %4238 = vmatmul.mubr.msk.f32.gmra.mxu0 %vm431_vm1, %v5224_v56  ;;  %4268 = vmatmul.mubr.msk.f32.gmra.mxu1 %vm431_vm1, %v5224_v56 }
 0x127   : > { %v5422_v18 = vadd.f32 %v848_v16, %v619_v10  ;;  %1195 = vmatprep.mubr.f32.mxu0 %v7178_v0  ;;  %1418 = vmatprep.mubr.f32.mxu1 %v7178_v0 }
 0x128   : > { %v5426_v19 = vpop.f32.mrf.mxu0  ;;  %v5428_v20 = vpop.f32.mrf.mxu1 }
 0x12a   : > { %v631_v22 = vpop.f32.mrf.mxu0  ;;  %v854_v23 = vpop.f32.mrf.mxu1  ;;  %4239 = vmatmul.mubr.msk.f32.gmra.mxu0 %vm431_vm1, %v5233_v57  ;;  %4269 = vmatmul.mubr.msk.f32.gmra.mxu1 %vm431_vm1, %v5233_v57 }
 0x12b   : > { %v5434_v25 = vadd.f32 %v854_v23, %v625_v15  ;;  %1201 = vmatprep.mubr.f32.mxu0 %v7178_v0  ;;  %1424 = vmatprep.mubr.f32.mxu1 %v7178_v0 }
 0x12c   : > { %v5438_v26 = vpop.f32.mrf.mxu0  ;;  %v5440_v27 = vpop.f32.mrf.mxu1 }
 0x12e   : > { %v637_v28 = vpop.f32.mrf.mxu0  ;;  %v860_v30 = vpop.f32.mrf.mxu1  ;;  %4240 = vmatmul.mubr.msk.f32.gmra.mxu0 %vm431_vm1, %v5242_v58  ;;  %4270 = vmatmul.mubr.msk.f32.gmra.mxu1 %vm431_vm1, %v5242_v58 }
 0x12f   : > { %v5446_v31 = vadd.f32 %v860_v30, %v631_v22  ;;  %1207 = vmatprep.mubr.f32.mxu0 %v7178_v0  ;;  %1430 = vmatprep.mubr.f32.mxu1 %v7178_v0 }
 0x130   : > { %v5450_v32 = vpop.f32.mrf.mxu0  ;;  %v5452_v33 = vpop.f32.mrf.mxu1 }
 0x132   : > { %v643_v35 = vpop.f32.mrf.mxu0  ;;  %v866_v36 = vpop.f32.mrf.mxu1  ;;  %4241 = vmatmul.mubr.msk.f32.gmra.mxu0 %vm431_vm1, %v5251_v59  ;;  %4271 = vmatmul.mubr.msk.f32.gmra.mxu1 %vm431_vm1, %v5251_v59 }
 0x133   : > { %v5458_v38 = vadd.f32 %v866_v36, %v637_v28  ;;  %1213 = vmatprep.mubr.f32.mxu0 %v7178_v0  ;;  %1436 = vmatprep.mubr.f32.mxu1 %v7178_v0 }
 0x134   : > { %v5462_v39 = vpop.f32.mrf.mxu0  ;;  %v5464_v62 = vpop.f32.mrf.mxu1 }
 0x136   : > { %v649_v63 = vpop.f32.mrf.mxu0  ;;  %v872_v1 = vpop.f32.mrf.mxu1  ;;  %4242 = vmatmul.mubr.msk.f32.gmra.mxu0 %vm431_vm1, %v5260_v60  ;;  %4272 = vmatmul.mubr.msk.f32.gmra.mxu1 %vm431_vm1, %v5260_v60 }
 0x137   : > { %v5470_v2 = vadd.f32 %v872_v1, %v643_v35  ;;  %1217 = vmatprep.mubr.f32.mxu0 %v7178_v0  ;;  %1442 = vmatprep.mubr.f32.mxu1 %v7178_v0 }
 0x138   : > { %v5474_v3 = vpop.f32.mrf.mxu0  ;;  %v5476_v4 = vpop.f32.mrf.mxu1 }
 0x13a   : > { %v655_v5 = vpop.f32.mrf.mxu0  ;;  %v878_v6 = vpop.f32.mrf.mxu1  ;;  %4243 = vmatmul.mubr.msk.f32.gmra.mxu0 %vm431_vm1, %v5269_v61  ;;  %4273 = vmatmul.mubr.msk.f32.gmra.mxu1 %vm431_vm1, %v5269_v61 }
 0x13b   : > { %v5482_v7 = vadd.f32 %v878_v6, %v649_v63  ;;  %1511 = vmatprep.mubr.f32.mxu0 %v7178_v0 }
 0x13c   : > { %v5485_v9 = vpop.f32.mrf.mxu0  ;;  %v5487_v10 = vpop.f32.mrf.mxu1 }
 0x13d   : > { %7192 = vst [vmem:[#allocation15_spill] sm:$0xff] %v5485_v9 }
 0x13e   : > { %v661_v11 = vpop.f32.mrf.mxu0  ;;  %v884_v15 = vpop.f32.mrf.mxu1  ;;  %4276 = vmatmul.mubr.msk.f32.vlgmr.msra.gmra.mxu0 %vm431_vm1, %v5020_v17 }
 0x13f   : > { %v5491_v16 = vadd.f32 %v884_v15, %v655_v5  ;;  %1515 = vmatprep.mubr.f32.mxu0 %v7178_v0 }
 0x140   : > { %v5494_v22 = vpop.f32.mrf.mxu0  ;;  %v5496_v23 = vpop.f32.mrf.mxu1 }
 0x141   : > { %7193 = vst [vmem:[#allocation16_spill] sm:$0xff] %v5494_v22  ;;  %7194 = vst [vmem:[#allocation17_spill] sm:$0xff] %v5496_v23 }
 0x142   : > { %v667_v28 = vpop.f32.mrf.mxu0  ;;  %v890_v30 = vpop.f32.mrf.mxu1  ;;  %4277 = vmatmul.mubr.msk.f32.gmra.mxu0 %vm431_vm1, %v5029_v21 }
 0x143   : > { %v5500_v35 = vadd.f32 %v890_v30, %v661_v11  ;;  %1519 = vmatprep.mubr.f32.mxu0 %v7178_v0 }
 0x144   : > { %v5503_v36 = vpop.f32.mrf.mxu0  ;;  %v5505_v17 = vpop.f32.mrf.mxu1 }
 0x145   : > { %7195 = vst [vmem:[#allocation18_spill] sm:$0xff] %v5503_v36  ;;  %7196 = vst [vmem:[#allocation19_spill] sm:$0xff] %v5505_v17 }
 0x146   : > { %v673_v63 = vpop.f32.mrf.mxu0  ;;  %v896_v1 = vpop.f32.mrf.mxu1  ;;  %4278 = vmatmul.mubr.msk.f32.gmra.mxu0 %vm431_vm1, %v5040_v24 }
 0x147   : > { %v5509_v5 = vadd.f32 %v896_v1, %v667_v28  ;;  %1523 = vmatprep.mubr.f32.mxu0 %v7178_v0 }
 0x148   : > { %v5512_v6 = vpop.f32.mrf.mxu0  ;;  %v5514_v21 = vpop.f32.mrf.mxu1 }
 0x149   : > { %7197 = vst [vmem:[#allocation20_spill] sm:$0xff] %v5512_v6  ;;  %7198 = vst [vmem:[#allocation21_spill] sm:$0xff] %v5514_v21 }
 0x14a   : > { %v679_v11 = vpop.f32.mrf.mxu0  ;;  %v902_v15 = vpop.f32.mrf.mxu1  ;;  %4279 = vmatmul.mubr.msk.f32.gmra.mxu0 %vm431_vm1, %v5049_v29 }
 0x14b   : > { %v5518_v30 = vadd.f32 %v902_v15, %v673_v63  ;;  %1527 = vmatprep.mubr.f32.mxu0 %v7178_v0 }
 0x14c   : > { %v5521_v36 = vpop.f32.mrf.mxu0  ;;  %v5523_v24 = vpop.f32.mrf.mxu1 }
 0x14d   : > { %7199 = vst [vmem:[#allocation22_spill] sm:$0xff] %v5521_v36  ;;  %7200 = vst [vmem:[#allocation23_spill] sm:$0xff] %v5523_v24 }
 0x14e   : > { %v685_v28 = vpop.f32.mrf.mxu0  ;;  %v908_v1 = vpop.f32.mrf.mxu1  ;;  %4280 = vmatmul.mubr.msk.f32.gmra.mxu0 %vm431_vm1, %v5060_v34 }
 0x14f   : > { %v5527_v6 = vadd.f32 %v908_v1, %v679_v11  ;;  %1533 = vmatprep.mubr.f32.mxu0 %v7178_v0 }
 0x150   : > { %v5530_v21 = vpop.f32.mrf.mxu0  ;;  %v5532_v29 = vpop.f32.mrf.mxu1 }
 0x151   : > { %7201 = vst [vmem:[#allocation24_spill] sm:$0xff] %v5530_v21  ;;  %7202 = vst [vmem:[#allocation25_spill] sm:$0xff] %v5532_v29 }
 0x152   : > { %v691_v63 = vpop.f32.mrf.mxu0  ;;  %v914_v15 = vpop.f32.mrf.mxu1  ;;  %4281 = vmatmul.mubr.msk.f32.gmra.mxu0 %vm431_vm1, %v5070_v37 }
 0x153   : > { %v5536_v36 = vadd.f32 %v914_v15, %v685_v28  ;;  %1539 = vmatprep.mubr.f32.mxu0 %v7178_v0 }
 0x154   : > { %v5539_v24 = vpop.f32.mrf.mxu0  ;;  %v5541_v34 = vpop.f32.mrf.mxu1 }
 0x155   : > { %7203 = vst [vmem:[#allocation26_spill] sm:$0xff] %v5539_v24  ;;  %7204 = vst [vmem:[#allocation27_spill] sm:$0xff] %v5541_v34 }
 0x156   : > { %v697_v11 = vpop.f32.mrf.mxu0  ;;  %v920_v1 = vpop.f32.mrf.mxu1  ;;  %4282 = vmatmul.mubr.msk.f32.gmra.mxu0 %vm431_vm1, %v5079_v40 }
 0x157   : > { %v5545_v21 = vadd.f32 %v920_v1, %v691_v63  ;;  %1545 = vmatprep.mubr.f32.mxu0 %v7178_v0 }
 0x158   : > { %v5548_v29 = vpop.f32.mrf.mxu0  ;;  %v5550_v37 = vpop.f32.mrf.mxu1 }
 0x159   : > { %7205 = vst [vmem:[#allocation28_spill] sm:$0xff] %v5548_v29  ;;  %7206 = vst [vmem:[#allocation29_spill] sm:$0xff] %v5550_v37 }
 0x15a   : > { %v703_v28 = vpop.f32.mrf.mxu0  ;;  %v926_v15 = vpop.f32.mrf.mxu1  ;;  %4283 = vmatmul.mubr.msk.f32.gmra.mxu0 %vm431_vm1, %v5088_v41 }
 0x15b   : > { %v5554_v24 = vadd.f32 %v926_v15, %v697_v11  ;;  %1551 = vmatprep.mubr.f32.mxu0 %v7178_v0 }
 0x15c   : > { %v5557_v34 = vpop.f32.mrf.mxu0  ;;  %v5559_v40 = vpop.f32.mrf.mxu1 }
 0x15d   : > { %7207 = vst [vmem:[#allocation30_spill] sm:$0xff] %v5557_v34  ;;  %7208 = vst [vmem:[#allocation31_spill] sm:$0xff] %v5559_v40 }
 0x15e   : > { %v709_v63 = vpop.f32.mrf.mxu0  ;;  %v932_v1 = vpop.f32.mrf.mxu1  ;;  %4284 = vmatmul.mubr.msk.f32.gmra.mxu0 %vm431_vm1, %v5098_v42 }
 0x15f   : > { %v5563_v29 = vadd.f32 %v932_v1, %v703_v28  ;;  %1557 = vmatprep.mubr.f32.mxu0 %v7178_v0 }
 0x160   : > { %v5566_v37 = vpop.f32.mrf.mxu0  ;;  %v5568_v41 = vpop.f32.mrf.mxu1 }
 0x161   : > { %7209 = vst [vmem:[#allocation32_spill] sm:$0xff] %v5566_v37  ;;  %7210 = vst [vmem:[#allocation33_spill] sm:$0xff] %v5568_v41 }
 0x162   : > { %v715_v11 = vpop.f32.mrf.mxu0  ;;  %v938_v15 = vpop.f32.mrf.mxu1  ;;  %4285 = vmatmul.mubr.msk.f32.gmra.mxu0 %vm431_vm1, %v5107_v43 }
 0x163   : > { %v5572_v34 = vadd.f32 %v938_v15, %v709_v63  ;;  %1563 = vmatprep.mubr.f32.mxu0 %v7178_v0 }
 0x164   : > { %v5575_v40 = vpop.f32.mrf.mxu0  ;;  %v5577_v42 = vpop.f32.mrf.mxu1 }
 0x165   : > { %7211 = vst [vmem:[#allocation34_spill] sm:$0xff] %v5575_v40  ;;  %7212 = vst [vmem:[#allocation35_spill] sm:$0xff] %v5577_v42 }
 0x166   : > { %v721_v28 = vpop.f32.mrf.mxu0  ;;  %v944_v1 = vpop.f32.mrf.mxu1  ;;  %4286 = vmatmul.mubr.msk.f32.gmra.mxu0 %vm431_vm1, %v5116_v44 }
 0x167   : > { %v5581_v37 = vadd.f32 %v944_v1, %v715_v11  ;;  %1569 = vmatprep.mubr.f32.mxu0 %v7178_v0 }
 0x168   : > { %v5584_v41 = vpop.f32.mrf.mxu0  ;;  %v5586_v43 = vpop.f32.mrf.mxu1 }
 0x169   : > { %7213 = vst [vmem:[#allocation36_spill] sm:$0xff] %v5584_v41  ;;  %7214 = vst [vmem:[#allocation37_spill] sm:$0xff] %v5586_v43 }
 0x16a   : > { %v727_v63 = vpop.f32.mrf.mxu0  ;;  %v950_v15 = vpop.f32.mrf.mxu1  ;;  %4287 = vmatmul.mubr.msk.f32.gmra.mxu0 %vm431_vm1, %v5125_v45 }
 0x16b   : > { %v5590_v40 = vadd.f32 %v950_v15, %v721_v28  ;;  %1575 = vmatprep.mubr.f32.mxu0 %v7178_v0 }
 0x16c   : > { %v5593_v42 = vpop.f32.mrf.mxu0  ;;  %v5595_v44 = vpop.f32.mrf.mxu1 }
 0x16d   : > { %7215 = vst [vmem:[#allocation38_spill] sm:$0xff] %v5593_v42  ;;  %7216 = vst [vmem:[#allocation39_spill] sm:$0xff] %v5595_v44 }
 0x16e   : > { %v733_v11 = vpop.f32.mrf.mxu0  ;;  %v956_v1 = vpop.f32.mrf.mxu1  ;;  %4288 = vmatmul.mubr.msk.f32.gmra.mxu0 %vm431_vm1, %v5134_v46 }
 0x16f   : > { %v5599_v41 = vadd.f32 %v956_v1, %v727_v63  ;;  %1581 = vmatprep.mubr.f32.mxu0 %v7178_v0 }
 0x170   : > { %v5602_v43 = vpop.f32.mrf.mxu0  ;;  %v5604_v45 = vpop.f32.mrf.mxu1 }
 0x171   : > { %7217 = vst [vmem:[#allocation40_spill] sm:$0xff] %v5602_v43  ;;  %7218 = vst [vmem:[#allocation41_spill] sm:$0xff] %v5604_v45 }
 0x172   : > { %v739_v28 = vpop.f32.mrf.mxu0  ;;  %v962_v15 = vpop.f32.mrf.mxu1  ;;  %4289 = vmatmul.mubr.msk.f32.gmra.mxu0 %vm431_vm1, %v5143_v47 }
 0x173   : > { %v5608_v42 = vadd.f32 %v962_v15, %v733_v11  ;;  %1587 = vmatprep.mubr.f32.mxu0 %v7178_v0 }
 0x174   : > { %v5611_v44 = vpop.f32.mrf.mxu0  ;;  %v5613_v46 = vpop.f32.mrf.mxu1 }
 0x175   : > { %7219 = vst [vmem:[#allocation42_spill] sm:$0xff] %v5611_v44  ;;  %7220 = vst [vmem:[#allocation43_spill] sm:$0xff] %v5613_v46 }
 0x176   : > { %v745_v63 = vpop.f32.mrf.mxu0  ;;  %v968_v1 = vpop.f32.mrf.mxu1  ;;  %4290 = vmatmul.mubr.msk.f32.gmra.mxu0 %vm431_vm1, %v5152_v48 }
 0x177   : > { %v5617_v43 = vadd.f32 %v968_v1, %v739_v28  ;;  %1593 = vmatprep.mubr.f32.mxu0 %v7178_v0 }
 0x178   : > { %v5620_v45 = vpop.f32.mrf.mxu0  ;;  %v5622_v47 = vpop.f32.mrf.mxu1 }
 0x179   : > { %7221 = vst [vmem:[#allocation44_spill] sm:$0xff] %v5620_v45  ;;  %7222 = vst [vmem:[#allocation45_spill] sm:$0xff] %v5622_v47 }
 0x17a   : > { %v751_v11 = vpop.f32.mrf.mxu0  ;;  %v974_v15 = vpop.f32.mrf.mxu1  ;;  %4291 = vmatmul.mubr.msk.f32.gmra.mxu0 %vm431_vm1, %v5161_v49 }
 0x17b   : > { %v5626_v44 = vadd.f32 %v974_v15, %v745_v63  ;;  %1599 = vmatprep.mubr.f32.mxu0 %v7178_v0 }
 0x17c   : > { %v5629_v46 = vpop.f32.mrf.mxu0  ;;  %v5631_v48 = vpop.f32.mrf.mxu1 }
 0x17d   : > { %7223 = vst [vmem:[#allocation46_spill] sm:$0xff] %v5629_v46  ;;  %7224 = vst [vmem:[#allocation47_spill] sm:$0xff] %v5631_v48 }
 0x17e   : > { %v757_v28 = vpop.f32.mrf.mxu0  ;;  %v980_v1 = vpop.f32.mrf.mxu1  ;;  %4292 = vmatmul.mubr.msk.f32.gmra.mxu0 %vm431_vm1, %v5170_v50 }
 0x17f   : > { %v5635_v45 = vadd.f32 %v980_v1, %v751_v11  ;;  %1605 = vmatprep.mubr.f32.mxu0 %v7178_v0 }
 0x180   : > { %v758_v47 = vpop.f32.mrf.mxu0  ;;  %v5638_v17 = vpop.f32.mrf.mxu1 }
 0x181   : > { %7225 = vst [vmem:[#allocation48_spill] sm:$0xff] %v5638_v17 }
 0x182   : > { %v761_v49 = vpop.f32.mrf.mxu0  ;;  %v986_v63 = vpop.f32.mrf.mxu1  ;;  %4293 = vmatmul.mubr.msk.f32.gmra.mxu0 %vm431_vm1, %v5179_v51 }
 0x183   : > { %1611 = vmatprep.mubr.f32.mxu0 %v7178_v0 }
 0x184   : > { %v762_v15 = vpop.f32.mrf.mxu0  ;;  %v987_v28 = vpop.f32.mrf.mxu1 }
 0x186   : > { %v765_v46 = vpop.f32.mrf.mxu0  ;;  %v990_v48 = vpop.f32.mrf.mxu1  ;;  %4294 = vmatmul.mubr.msk.f32.gmra.mxu0 %vm431_vm1, %v5188_v52 }
 0x187   : > { %1617 = vmatprep.mubr.f32.mxu0 %v7178_v0 }
 0x188   : > { %v766_v50 = vpop.f32.mrf.mxu0  ;;  %v991_v47 = vpop.f32.mrf.mxu1 }
 0x18a   : > { %v769_v11 = vpop.f32.mrf.mxu0  ;;  %v994_v1 = vpop.f32.mrf.mxu1  ;;  %4295 = vmatmul.mubr.msk.f32.gmra.mxu0 %vm431_vm1, %v5197_v53 }
 0x18b   : > { %1623 = vmatprep.mubr.f32.mxu0 %v7178_v0 }
 0x18c   : > { %v770_v51 = vpop.f32.mrf.mxu0  ;;  %v995_v49 = vpop.f32.mrf.mxu1 }
 0x18e   : > { %v1063_v63 = vpop.f32.mrf.mxu0  ;;  %v1288_v15 = vpop.f32.mrf.mxu1  ;;  %4296 = vmatmul.mubr.msk.f32.gmra.mxu0 %vm431_vm1, %v5206_v54 }
 0x18f   : > { %1629 = vmatprep.mubr.f32.mxu0 %v7178_v0 }
 0x190   : > { %v1064_v52 = vpop.f32.mrf.mxu0  ;;  %v1289_v46 = vpop.f32.mrf.mxu1 }
 0x192   : > { %v1067_v48 = vpop.f32.mrf.mxu0  ;;  %v1292_v28 = vpop.f32.mrf.mxu1  ;;  %4297 = vmatmul.mubr.msk.f32.gmra.mxu0 %vm431_vm1, %v5215_v55 }
 0x193   : > { %1635 = vmatprep.mubr.f32.mxu0 %v7178_v0 }
 0x194   : > { %v1068_v53 = vpop.f32.mrf.mxu0  ;;  %v1293_v50 = vpop.f32.mrf.mxu1 }
 0x196   : > { %v1071_v47 = vpop.f32.mrf.mxu0  ;;  %v1296_v11 = vpop.f32.mrf.mxu1  ;;  %4298 = vmatmul.mubr.msk.f32.gmra.mxu0 %vm431_vm1, %v5224_v56 }
 0x197   : > { %v1720_v54 = vadd.f32 %v5410_v12, %v1071_v47  ;;  %1641 = vmatprep.mubr.f32.mxu0 %v7178_v0 }
 0x198   : > { %v5659_v1 = vpop.f32.mrf.mxu0  ;;  %v1297_v51 = vpop.f32.mrf.mxu1 }
 0x19a   : > { %v1077_v49 = vpop.f32.mrf.mxu0  ;;  %v1300_v63 = vpop.f32.mrf.mxu1  ;;  %4299 = vmatmul.mubr.msk.f32.gmra.mxu0 %vm431_vm1, %v5233_v57 }
 0x19b   : > { %v1722_v55 = vadd.f32 %v5422_v18, %v1077_v49  ;;  %v5664_v15 = vadd.f32 %v1720_v54, %v1300_v63  ;;  %1647 = vmatprep.mubr.f32.mxu0 %v7178_v0 }
 0x19c   : > { %v5667_v52 = vpop.f32.mrf.mxu0  ;;  %v5669_v56 = vpop.f32.mrf.mxu1 }
 0x19e   : > { %v1083_v12 = vpop.f32.mrf.mxu0  ;;  %v1306_v46 = vpop.f32.mrf.mxu1  ;;  %4300 = vmatmul.mubr.msk.f32.gmra.mxu0 %vm431_vm1, %v5242_v58 }
 0x19f   : > { %v1724_v48 = vadd.f32 %v5434_v25, %v1083_v12  ;;  %v5674_v28 = vadd.f32 %v1722_v55, %v1306_v46  ;;  %1653 = vmatprep.mubr.f32.mxu0 %v7178_v0 }
 0x1a0   : > { %v5677_v57 = vpop.f32.mrf.mxu0  ;;  %v5679_v18 = vpop.f32.mrf.mxu1 }
 0x1a2   : > { %v1089_v53 = vpop.f32.mrf.mxu0  ;;  %v1312_v50 = vpop.f32.mrf.mxu1  ;;  %4301 = vmatmul.mubr.msk.f32.gmra.mxu0 %vm431_vm1, %v5251_v59 }
 0x1a3   : > { %v1726_v47 = vadd.f32 %v5446_v31, %v1089_v53  ;;  %v5684_v11 = vadd.f32 %v1724_v48, %v1312_v50  ;;  %1659 = vmatprep.mubr.f32.mxu0 %v7178_v0 }
 0x1a4   : > { %v5687_v58 = vpop.f32.mrf.mxu0  ;;  %v5689_v25 = vpop.f32.mrf.mxu1 }
 0x1a6   : > { %v1095_v54 = vpop.f32.mrf.mxu0  ;;  %v1318_v51 = vpop.f32.mrf.mxu1  ;;  %4302 = vmatmul.mubr.msk.f32.gmra.mxu0 %vm431_vm1, %v5260_v60 }
 0x1a7   : > { %v1728_v49 = vadd.f32 %v5458_v38, %v1095_v54  ;;  %v5694_v63 = vadd.f32 %v1726_v47, %v1318_v51  ;;  %1665 = vmatprep.mubr.f32.mxu0 %v7178_v0 }
 0x1a8   : > { %v5697_v59 = vpop.f32.mrf.mxu0  ;;  %v5699_v31 = vpop.f32.mrf.mxu1 }
 0x1aa   : > { %v1101_v55 = vpop.f32.mrf.mxu0  ;;  %v1324_v12 = vpop.f32.mrf.mxu1  ;;  %4303 = vmatmul.mubr.msk.f32.gmra.mxu0 %vm431_vm1, %v5269_v61 }
 0x1ab   : > { %v1730_v46 = vadd.f32 %v5470_v2, %v1101_v55  ;;  %v5704_v48 = vadd.f32 %v1728_v49, %v1324_v12  ;;  %2773 = vmatprep.mubr.f32.mxu0 %v7178_v0 }
 0x1ac   : > { %v5707_v60 = vpop.f32.mrf.mxu0  ;;  %v5709_v38 = vpop.f32.mrf.mxu1 }
 0x1ae   : > { %v1107_v53 = vpop.f32.mrf.mxu0  ;;  %v1330_v50 = vpop.f32.mrf.mxu1 }
 0x1af   : > { %v1732_v47 = vadd.f32 %v5482_v7, %v1107_v53  ;;  %v5712_v54 = vadd.f32 %v1730_v46, %v1330_v50 }
 0x1b0   : > { %v5714_v51 = vpop.f32.mrf.mxu0  ;;  %v5716_v17 = vpop.f32.mrf.mxu1 }
 0x1b1   : > { %7226 = vst [vmem:[#allocation49_spill] sm:$0xff] %v5714_v51 }
 0x1b2   : > { %v1113_v61 = vpop.f32.mrf.mxu0  ;;  %v1336_v2 = vpop.f32.mrf.mxu1 }
 0x1b3   : > { %v1734_v49 = vadd.f32 %v5491_v16, %v1113_v61  ;;  %v5719_v55 = vadd.f32 %v1732_v47, %v1336_v2 }
 0x1b4   : > { %v5721_v12 = vpop.f32.mrf.mxu0  ;;  %v5723_v0 = vpop.f32.mrf.mxu1 }
 0x1b5   : > { %7227 = vst [vmem:[#allocation50_spill] sm:$0xff] %v5719_v55  ;;  %7228 = vst [vmem:[#allocation51_spill] sm:$0xff] %v5723_v0 }
 0x1b6   : > { %v1119_v22 = vpop.f32.mrf.mxu0  ;;  %v1342_v23 = vpop.f32.mrf.mxu1 }
 0x1b7   : > { %v1736_v7 = vadd.f32 %v5500_v35, %v1119_v22  ;;  %v5726_v46 = vadd.f32 %v1734_v49, %v1342_v23 }
 0x1b8   : > { %v5728_v53 = vpop.f32.mrf.mxu0  ;;  %v5730_v50 = vpop.f32.mrf.mxu1 }
 0x1b9   : > { %7229 = vst [vmem:[#allocation52_spill] sm:$0xff] %v5726_v46  ;;  %7230 = vst [vmem:[#allocation53_spill] sm:$0xff] %v5728_v53 }
 0x1ba   : > { %v1125_v51 = vpop.f32.mrf.mxu0  ;;  %v1348_v9 = vpop.f32.mrf.mxu1 }
 0x1bb   : > { %v1738_v16 = vadd.f32 %v5509_v5, %v1125_v51  ;;  %v5733_v47 = vadd.f32 %v1736_v7, %v1348_v9 }
 0x1bc   : > { %v5735_v61 = vpop.f32.mrf.mxu0  ;;  %v5737_v2 = vpop.f32.mrf.mxu1 }
 0x1bd   : > { %7231 = vst [vmem:[#allocation54_spill] sm:$0xff] %v5733_v47  ;;  %7232 = vst [vmem:[#allocation55_spill] sm:$0xff] %v5737_v2 }
 0x1be   : > { %v1131_v55 = vpop.f32.mrf.mxu0  ;;  %v1354_v0 = vpop.f32.mrf.mxu1 }
 0x1bf   : > { %v1740_v22 = vadd.f32 %v5518_v30, %v1131_v55  ;;  %v5740_v23 = vadd.f32 %v1738_v16, %v1354_v0 }
 0x1c0   : > { %v5742_v35 = vpop.f32.mrf.mxu0  ;;  %v5744_v49 = vpop.f32.mrf.mxu1 }
 0x1c1   : > { %7233 = vst [vmem:[#allocation56_spill] sm:$0xff] %v5740_v23  ;;  %7234 = vst [vmem:[#allocation57_spill] sm:$0xff] %v5742_v35 }
 0x1c2   : > { %v1137_v53 = vpop.f32.mrf.mxu0  ;;  %v1360_v46 = vpop.f32.mrf.mxu1 }
 0x1c3   : > { %v1742_v5 = vadd.f32 %v5527_v6, %v1137_v53  ;;  %v5747_v9 = vadd.f32 %v1740_v22, %v1360_v46 }
 0x1c4   : > { %v5749_v51 = vpop.f32.mrf.mxu0  ;;  %v5751_v7 = vpop.f32.mrf.mxu1 }
 0x1c5   : > { %7235 = vst [vmem:[#allocation58_spill] sm:$0xff] %v5747_v9  ;;  %7236 = vst [vmem:[#allocation59_spill] sm:$0xff] %v5751_v7 }
 0x1c6   : > { %v1143_v47 = vpop.f32.mrf.mxu0  ;;  %v1366_v2 = vpop.f32.mrf.mxu1 }
 0x1c7   : > { %v1744_v30 = vadd.f32 %v5536_v36, %v1143_v47  ;;  %v5754_v0 = vadd.f32 %v1742_v5, %v1366_v2 }
 0x1c8   : > { %v5756_v55 = vpop.f32.mrf.mxu0  ;;  %v5758_v16 = vpop.f32.mrf.mxu1 }
 0x1c9   : > { %7237 = vst [vmem:[#allocation60_spill] sm:$0xff] %v5754_v0  ;;  %7238 = vst [vmem:[#allocation61_spill] sm:$0xff] %v5756_v55  ;;  %v2084_v55 = vld [vmem:[#allocation5 + $0x78] sm:$0xff] }
 0x1ca   : > { %7239 = vst [vmem:[#allocation62_spill] sm:$0xff] %v5758_v16  ;;  %v1149_v35 = vpop.f32.mrf.mxu0  ;;  %v1372_v23 = vpop.f32.mrf.mxu1  ;;  %2140 = vmatpush1.msra.mxu1 %v2084_v55 }
 0x1cb   : > { %v1746_v6 = vadd.f32 %v5545_v21, %v1149_v35  ;;  %v5761_v46 = vadd.f32 %v1744_v30, %v1372_v23  ;;  %v7244_v35 = vmov 0.0  }
 0x1cc   : > { %v5763_v53 = vpop.f32.mrf.mxu0  ;;  %v5765_v22 = vpop.f32.mrf.mxu1  ;;  %2141 = vmatprep.subr.mxu1 %v7244_v35 }
 0x1cd   : > { %7240 = vst [vmem:[#allocation63_spill] sm:$0xff] %v5761_v46 }
 0x1ce   : > { %v1155_v9 = vpop.f32.mrf.mxu0  ;;  %v1378_v7 = vpop.f32.mrf.mxu1 }
 0x1cf   : > { %v1748_v36 = vadd.f32 %v5554_v24, %v1155_v9  ;;  %v5768_v47 = vadd.f32 %v1746_v6, %v1378_v7 }
 0x1d0   : > { %v5770_v2 = vpop.f32.mrf.mxu0  ;;  %v5772_v5 = vpop.f32.mrf.mxu1 }
 0x1d1   : > { %7241 = vst [vmem:[#allocation64_spill] sm:$0xff] %v5768_v47  ;;  %7242 = vst [vmem:[#allocation65_spill] sm:$0xff] %v5770_v2  ;;  %v2083_v2 = vld [vmem:[#allocation5 + $0x70] sm:$0xff] }
 0x1d2   : > { %v1161_v0 = vpop.f32.mrf.mxu0  ;;  %v1384_v16 = vpop.f32.mrf.mxu1  ;;  %2142 = vmatpush1.msra.mxu1 %v2083_v2 }
 0x1d3   : > { %v1750_v21 = vadd.f32 %v5563_v29, %v1161_v0  ;;  %v5775_v23 = vadd.f32 %v1748_v36, %v1384_v16  ;;  %2143 = vmatprep.subr.mxu1 %v7244_v35  ;;  %v2082_v29 = vld [vmem:[#allocation5 + $0x68] sm:$0xff] }
 0x1d4   : > { %v5778_v30 = vpop.f32.mrf.mxu0  ;;  %v5780_v46 = vpop.f32.mrf.mxu1  ;;  %2144 = vmatpush1.msra.mxu1 %v2082_v29 }
 0x1d5   : > { %7243 = vst [vmem:[#allocation66_spill] sm:$0xff] %v5775_v23  ;;  %2145 = vmatprep.subr.mxu1 %v7244_v35 }
 0x1d6   : > { %v1167_v24 = vpop.f32.mrf.mxu0  ;;  %v1390_v9 = vpop.f32.mrf.mxu1 }
 0x1d7   : > { %v1752_v7 = vadd.f32 %v5572_v34, %v1167_v24  ;;  %v5783_v6 = vadd.f32 %v1750_v21, %v1390_v9 }
 0x1d8   : > { %v5785_v47 = vpop.f32.mrf.mxu0  ;;  %v5787_v55 = vpop.f32.mrf.mxu1 }
 0x1d9   : > { %7245 = vst [vmem:[#allocation67_spill] sm:$0xff] %v5783_v6  ;;  %7246 = vst [vmem:[#allocation68_spill] sm:$0xff] %v5785_v47  ;;  %v2081_v6 = vld [vmem:[#allocation5 + $0x60] sm:$0xff] }
 0x1da   : > { %7247 = vst [vmem:[#allocation69_spill] sm:$0xff] %v5787_v55  ;;  %v1173_v0 = vpop.f32.mrf.mxu0  ;;  %v1396_v16 = vpop.f32.mrf.mxu1  ;;  %2146 = vmatpush1.msra.mxu1 %v2081_v6  ;;  %v2078_v6 = vld [vmem:[#allocation5 + $0x48] sm:$0xff] }
 0x1db   : > { %v1754_v36 = vadd.f32 %v5581_v37, %v1173_v0  ;;  %v5791_v23 = vadd.f32 %v1752_v7, %v1396_v16  ;;  %2147 = vmatprep.subr.mxu1 %v7244_v35  ;;  %v2080_v37 = vld [vmem:[#allocation5 + $0x58] sm:$0xff] }
 0x1dc   : > { %v5794_v34 = vpop.f32.mrf.mxu0  ;;  %v5796_v21 = vpop.f32.mrf.mxu1  ;;  %2148 = vmatpush1.msra.mxu1 %v2080_v37 }
 0x1dd   : > { %7248 = vst [vmem:[#allocation70_spill] sm:$0xff] %v5791_v23  ;;  %2149 = vmatprep.subr.mxu1 %v7244_v35 }
 0x1de   : > { %v1179_v24 = vpop.f32.mrf.mxu0  ;;  %v1402_v9 = vpop.f32.mrf.mxu1 }
 0x1df   : > { %v1756_v2 = vadd.f32 %v5590_v40, %v1179_v24  ;;  %v5799_v47 = vadd.f32 %v1754_v36, %v1402_v9  ;;  %v2079_v40 = vld [vmem:[#allocation5 + $0x50] sm:$0xff] }
 0x1e0   : > { %v5801_v55 = vpop.f32.mrf.mxu0  ;;  %v5803_v29 = vpop.f32.mrf.mxu1  ;;  %2150 = vmatpush1.msra.mxu1 %v2079_v40 }
 0x1e1   : > { %7249 = vst [vmem:[#allocation71_spill] sm:$0xff] %v5799_v47  ;;  %7250 = vst [vmem:[#allocation72_spill] sm:$0xff] %v5801_v55  ;;  %2151 = vmatprep.subr.mxu1 %v7244_v35 }
 0x1e2   : > { %v1185_v7 = vpop.f32.mrf.mxu0  ;;  %v1408_v0 = vpop.f32.mrf.mxu1  ;;  %2152 = vmatpush1.msra.mxu1 %v2078_v6 }
 0x1e3   : > { %v1758_v16 = vadd.f32 %v5599_v41, %v1185_v7  ;;  %v5807_v23 = vadd.f32 %v1756_v2, %v1408_v0  ;;  %2153 = vmatprep.subr.mxu1 %v7244_v35  ;;  %v2077_v41 = vld [vmem:[#allocation5 + $0x40] sm:$0xff]  ;;  %v2076_v0 = vld [vmem:[#allocation5 + $0x38] sm:$0xff] }
 0x1e4   : > { %v5810_v36 = vpop.f32.mrf.mxu0  ;;  %v5812_v24 = vpop.f32.mrf.mxu1  ;;  %2154 = vmatpush1.msra.mxu1 %v2077_v41 }
 0x1e5   : > { %7251 = vst [vmem:[#allocation73_spill] sm:$0xff] %v5807_v23  ;;  %7252 = vst [vmem:[#allocation74_spill] sm:$0xff] %v5812_v24  ;;  %2155 = vmatprep.subr.mxu1 %v7244_v35 }
 0x1e6   : > { %v1191_v9 = vpop.f32.mrf.mxu0  ;;  %v1414_v55 = vpop.f32.mrf.mxu1  ;;  %2156 = vmatpush1.msra.mxu1 %v2076_v0 }
 0x1e7   : > { %v1760_v37 = vadd.f32 %v5608_v42, %v1191_v9  ;;  %v5816_v47 = vadd.f32 %v1758_v16, %v1414_v55  ;;  %2157 = vmatprep.subr.mxu1 %v7244_v35  ;;  %v2075_v42 = vld [vmem:[#allocation5 + $0x30] sm:$0xff]  ;;  %v2074_v9 = vld [vmem:[#allocation5 + $0x28] sm:$0xff] }
 0x1e8   : > { %v5819_v2 = vpop.f32.mrf.mxu0  ;;  %v5821_v7 = vpop.f32.mrf.mxu1  ;;  %2158 = vmatpush1.msra.mxu1 %v2075_v42 }
 0x1e9   : > { %7253 = vst [vmem:[#allocation75_spill] sm:$0xff] %v5816_v47  ;;  %7254 = vst [vmem:[#allocation76_spill] sm:$0xff] %v5819_v2  ;;  %2159 = vmatprep.subr.mxu1 %v7244_v35 }
 0x1ea   : > { %v1197_v40 = vpop.f32.mrf.mxu0  ;;  %v1420_v23 = vpop.f32.mrf.mxu1  ;;  %2160 = vmatpush1.msra.mxu1 %v2074_v9 }
 0x1eb   : > { %v1762_v6 = vadd.f32 %v5617_v43, %v1197_v40  ;;  %v5825_v24 = vadd.f32 %v1760_v37, %v1420_v23  ;;  %2161 = vmatprep.subr.mxu1 %v7244_v35  ;;  %v2073_v43 = vld [vmem:[#allocation5 + $0x20] sm:$0xff]  ;;  %v2072_v40 = vld [vmem:[#allocation5 + $0x18] sm:$0xff] }
 0x1ec   : > { %v5828_v55 = vpop.f32.mrf.mxu0  ;;  %v5830_v16 = vpop.f32.mrf.mxu1  ;;  %2162 = vmatpush1.msra.mxu1 %v2073_v43  ;;  %v2069_v43 = vld [vmem:[#allocation5] sm:$0xff] }
 0x1ed   : > { %7255 = vst [vmem:[#allocation77_spill] sm:$0xff] %v5825_v24  ;;  %7256 = vst [vmem:[#allocation78_spill] sm:$0xff] %v5830_v16  ;;  %2163 = vmatprep.subr.mxu1 %v7244_v35 }
 0x1ee   : > { %v1203_v41 = vpop.f32.mrf.mxu0  ;;  %v1426_v2 = vpop.f32.mrf.mxu1  ;;  %2164 = vmatpush1.msra.mxu1 %v2072_v40 }
 0x1ef   : > { %v1764_v0 = vadd.f32 %v5626_v44, %v1203_v41  ;;  %v5834_v47 = vadd.f32 %v1762_v6, %v1426_v2  ;;  %2165 = vmatprep.subr.mxu1 %v7244_v35  ;;  %v2071_v44 = vld [vmem:[#allocation5 + $0x10] sm:$0xff]  ;;  %v2070_v2 = vld [vmem:[#allocation5 + $0x8] sm:$0xff] }
 0x1f0   : > { %v5837_v23 = vpop.f32.mrf.mxu0  ;;  %v5839_v37 = vpop.f32.mrf.mxu1  ;;  %2166 = vmatpush1.msra.mxu1 %v2071_v44 }
 0x1f1   : > { %7257 = vst [vmem:[#allocation79_spill] sm:$0xff] %v5834_v47  ;;  %7258 = vst [vmem:[#allocation80_spill] sm:$0xff] %v5837_v23  ;;  %2167 = vmatprep.subr.mxu1 %v7244_v35 }
 0x1f2   : > { %v1209_v42 = vpop.f32.mrf.mxu0  ;;  %v1432_v24 = vpop.f32.mrf.mxu1  ;;  %2168 = vmatpush1.msra.mxu1 %v2070_v2 }
 0x1f3   : > { %v1766_v9 = vadd.f32 %v5635_v45, %v1209_v42  ;;  %v5843_v16 = vadd.f32 %v1764_v0, %v1432_v24  ;;  %2169 = vmatprep.subr.mxu1 %v7244_v35  ;;  %v2097_v45 = vld [vmem:[#allocation5 + $0xe0] sm:$0x3f]  ;;  %v2096_v42 = vld [vmem:[#allocation5 + $0xd8] sm:$0xff] }
 0x1f4   : > { %v5846_v6 = vpop.f32.mrf.mxu0  ;;  %v5848_v41 = vpop.f32.mrf.mxu1  ;;  %2170 = vmatpush1.msra.mxu1 %v2069_v43  ;;  %v2093_v43 = vld [vmem:[#allocation5 + $0xc0] sm:$0xff] }
 0x1f5   : > { %7259 = vst [vmem:[#allocation81_spill] sm:$0xff] %v5843_v16  ;;  %2177 = vmatprep.subr.mxu1 %v7244_v35 }
 0x1f6   : > { %v1215_v23 = vpop.f32.mrf.mxu0  ;;  %v1438_v47 = vpop.f32.mrf.mxu1  ;;  %4304 = vmatpush2.msk.msra.mxu1 %vm2135_vm2, %v2097_v45  ;;  %v2092_v45 = vld [vmem:[#allocation5 + $0xb8] sm:$0xff] }
 0x1f7   : > { %v5851_v40 = vadd.f32 %v1766_v9, %v1438_v47  ;;  %2179 = vmatprep.subr.mxu1 %v7244_v35  ;;  %v2095_v23 = vld [vmem:[#allocation5 + $0xd0] sm:$0xff]  ;;  %v2094_v9 = vld [vmem:[#allocation5 + $0xc8] sm:$0xff] }
 0x1f8   : > { %v1216_v24 = vpop.f32.mrf.mxu0  ;;  %v5854_v0 = vpop.f32.mrf.mxu1  ;;  %2180 = vmatpush2.msra.mxu1 %v2096_v42 }
 0x1f9   : > { %7260 = vst [vmem:[#allocation82_spill] sm:$0xff] %v5851_v40  ;;  %2181 = vmatprep.subr.mxu1 %v7244_v35 }
 0x1fa   : > { %v1219_v44 = vpop.f32.mrf.mxu0  ;;  %v1444_v16 = vpop.f32.mrf.mxu1  ;;  %2182 = vmatpush2.msra.mxu1 %v2095_v23  ;;  %v2089_v23 = vld [vmem:[#allocation5 + $0xa0] sm:$0xff] }
 0x1fb   : > { %2183 = vmatprep.subr.mxu1 %v7244_v35  ;;  %v2091_v44 = vld [vmem:[#allocation5 + $0xb0] sm:$0xff] }
 0x1fc   : > { %v1220_v2 = vpop.f32.mrf.mxu0  ;;  %v1445_v47 = vpop.f32.mrf.mxu1  ;;  %2184 = vmatpush2.msra.mxu1 %v2094_v9 }
 0x1fd   : > { %2185 = vmatprep.subr.mxu1 %v7244_v35  ;;  %v2090_v2 = vld [vmem:[#allocation5 + $0xa8] sm:$0xff] }
 0x1fe   : > { %v1513_v40 = vpop.f32.mrf.mxu0  ;;  %2186 = vmatpush2.msra.mxu1 %v2093_v43  ;;  %v2088_v43 = vld [vmem:[#allocation5 + $0x98] sm:$0xff] }
 0x1ff   : > { %2187 = vmatprep.subr.mxu1 %v7244_v35 }
 0x200   : > { %v1514_v24 = vpop.f32.mrf.mxu0  ;;  %2188 = vmatpush2.msra.mxu1 %v2092_v45  ;;  %v1673_v45 = vadd.f32 %v5416_v14, %v5404_v8  ;;  %v2085_v14 = vld [vmem:[#allocation5 + $0x80] sm:$0xff] }
 0x201   : > { %2189 = vmatprep.subr.mxu1 %v7244_v35  ;;  %v2087_v24 = vld [vmem:[#allocation5 + $0x90] sm:$0xff] }
 0x202   : > { %v1517_v16 = vpop.f32.mrf.mxu0  ;;  %2190 = vmatpush2.msra.mxu1 %v2091_v44 }
 0x203   : > { %2191 = vmatprep.subr.mxu1 %v7244_v35 }
 0x204   : > { %v1518_v42 = vpop.f32.mrf.mxu0  ;;  %2192 = vmatpush2.msra.mxu1 %v2090_v2  ;;  %v1721_v2 = vadd.f32 %v1673_v45, %v5659_v1 }
 0x205   : > { %2193 = vmatprep.subr.mxu1 %v7244_v35  ;;  %v1675_v42 = vadd.f32 %v5428_v20, %v5414_v13 }
 0x206   : > { %v1521_v40 = vpop.f32.mrf.mxu0  ;;  %2194 = vmatpush2.msra.mxu1 %v2089_v23 }
 0x207   : > { %2195 = vmatprep.subr.mxu1 %v7244_v35  ;;  %v2086_v40 = vld [vmem:[#allocation5 + $0x88] sm:$0xff] }
 0x208   : > { %v1522_v47 = vpop.f32.mrf.mxu0  ;;  %2196 = vmatpush2.msra.mxu1 %v2088_v43 }
 0x209   : > { %2197 = vmatprep.subr.mxu1 %v7244_v35  ;;  %v1723_v47 = vadd.f32 %v1675_v42, %v5667_v52 }
 0x20a   : > { %v1525_v9 = vpop.f32.mrf.mxu0  ;;  %2198 = vmatpush2.msra.mxu1 %v2087_v24 }
 0x20b   : > { %2199 = vmatprep.subr.mxu1 %v7244_v35  ;;  %v1769_v9 = vadd.f32 %v1721_v2, %v5669_v56  ;;  %v1771_v13 = vadd.f32 %v1723_v47, %v5679_v18 }
 0x20c   : > { %v1526_v16 = vpop.f32.mrf.mxu0  ;;  %2200 = vmatpush2.msra.mxu1 %v2086_v40 }
 0x20d   : > { %2201 = vmatprep.subr.mxu1 %v7244_v35  ;;  %v1677_v16 = vadd.f32 %v5440_v27, %v5426_v19 }
 0x20e   : > { %v1529_v44 = vpop.f32.mrf.mxu0  ;;  %2202 = vmatpush2.msra.mxu1 %v2085_v14 }
 0x20f   : > { %v1816_v8 = vadd.f32 %v5664_v15, %v1529_v44  ;;  %v1679_v15 = vadd.f32 %v5452_v33, %v5438_v26  ;;  %v1725_v44 = vadd.f32 %v1677_v16, %v5677_v57 }
 0x210   : > { %v1531_v23 = vpop.f32.mrf.mxu0 }
 0x211   : > { %v1817_v20 = vadd.f32 %v1769_v9, %v1531_v23  ;;  %v1864_v45 = vmax.f32 %v1816_v8, 0.0  ;;  %v1773_v23 = vadd.f32 %v1725_v44, %v5689_v25  ;;  %v7262_v44 = vld [vmem:[#allocation17_spill] sm:$0xff] }
 0x212   : > { %v1535_v43 = vpop.f32.mrf.mxu0 }
 0x213   : > { %v1818_v1 = vadd.f32 %v5674_v28, %v1535_v43  ;;  %v1865_v2 = vmax.f32 %v1817_v20, 0.0  ;;  %v1727_v28 = vadd.f32 %v1679_v15, %v5687_v58  ;;  %v1681_v58 = vadd.f32 %v5464_v62, %v5450_v32 }
 0x214   : > { %v1537_v24 = vpop.f32.mrf.mxu0  ;;  %v1685_v15 = vadd.f32 %v5487_v10, %v5474_v3  ;;  %v7264_v3 = vld [vmem:[#allocation51_spill] sm:$0xff] }
 0x215   : > { %v1866_v52 = vmax.f32 %v1818_v1, 0.0  ;;  %v1819_v42 = vadd.f32 %v1771_v13, %v1537_v24  ;;  %v1775_v33 = vadd.f32 %v1727_v28, %v5699_v31  ;;  %v1729_v20 = vadd.f32 %v1681_v58, %v5697_v59 }
 0x216   : > { %v1541_v56 = vpop.f32.mrf.mxu0 }
 0x217   : > { %v1867_v40 = vmax.f32 %v1819_v42, 0.0  ;;  %v5884_v14 = vmax.f32 %v1864_v45, %v1866_v52  ;;  %v1820_v19 = vadd.f32 %v5684_v11, %v1541_v56  ;;  %v1683_v11 = vadd.f32 %v5476_v4, %v5462_v39 }
 0x218   : > { %v1543_v18 = vpop.f32.mrf.mxu0  ;;  %v1777_v32 = vadd.f32 %v1729_v20, %v5709_v38 }
 0x219   : > { %1960 = vrot.lane.b32.xlu0 %v5884_v14, %s4841_s12  ;;  %v5891_v27 = vmax.f32 %v1865_v2, %v1867_v40  ;;  %v1821_v57 = vadd.f32 %v1773_v23, %v1543_v18  ;;  %v1868_v8 = vmax.f32 %v1820_v19, 0.0  ;;  %v1731_v16 = vadd.f32 %v1683_v11, %v5707_v60  ;;  %v7263_v18 = vld [vmem:[#allocation49_spill] sm:$0xff] }
 0x21a   : > { %v1547_v26 = vpop.f32.mrf.mxu0  ;;  %v1733_v28 = vadd.f32 %v1685_v15, %v7263_v18 }
 0x21b   : > { %v1822_v47 = vadd.f32 %v5694_v63, %v1547_v26  ;;  %v1869_v31 = vmax.f32 %v1821_v57, 0.0  ;;  %v1779_v4 = vadd.f32 %v1731_v16, %v5716_v17  ;;  %v7265_v57 = vld [vmem:[#allocation50_spill] sm:$0xff] }
 0x21c   : > { %v1549_v9 = vpop.f32.mrf.mxu0  ;;  %v1781_v10 = vadd.f32 %v1733_v28, %v7264_v3  ;;  %v7269_v16 = vld [vmem:[#allocation18_spill] sm:$0xff] }
 0x21d   : > { %v1870_v25 = vmax.f32 %v1822_v47, 0.0  ;;  %v1823_v43 = vadd.f32 %v1775_v33, %v1549_v9  ;;  %1962 = vrot.lane.b32.xlu0 %v5891_v27, %s4841_s12 }
 0x21e   : > { %v1553_v13 = vpop.f32.mrf.mxu0 }
 0x21f   : > { %v1871_v1 = vmax.f32 %v1823_v43, 0.0  ;;  %v5902_v24 = vmax.f32 %v1868_v8, %v1870_v25  ;;  %v1824_v62 = vadd.f32 %v5704_v48, %v1553_v13  ;;  %v7261_v48 = vld [vmem:[#allocation15_spill] sm:$0xff]  ;;  %v7266_v25 = vld [vmem:[#allocation52_spill] sm:$0xff] }
 0x220   : > { %v1555_v63 = vpop.f32.mrf.mxu0  ;;  %v1687_v2 = vadd.f32 %v7262_v44, %v7261_v48  ;;  %v7268_v13 = vld [vmem:[#allocation19_spill] sm:$0xff]  ;;  %v7273_v44 = vld [vmem:[#allocation54_spill] sm:$0xff] }
 0x221   : > { %1964 = vrot.lane.b32.xlu1 %v5902_v24, %s4841_s12  ;;  %v5909_v45 = vmax.f32 %v1869_v31, %v1871_v1  ;;  %v1825_v59 = vadd.f32 %v1777_v32, %v1555_v63  ;;  %v1872_v60 = vmax.f32 %v1824_v62, 0.0  ;;  %v7270_v32 = vld [vmem:[#allocation21_spill] sm:$0xff] }
 0x222   : > { %v1559_v39 = vpop.f32.mrf.mxu0  ;;  %v1735_v26 = vadd.f32 %v1687_v2, %v5721_v12  ;;  %v7267_v12 = vld [vmem:[#allocation16_spill] sm:$0xff]  ;;  %v1691_v62 = vadd.f32 %v7270_v32, %v7269_v16  ;;  %v7281_v32 = vld [vmem:[#allocation58_spill] sm:$0xff] }
 0x223   : > { %v1826_v52 = vadd.f32 %v5712_v54, %v1559_v39  ;;  %v1873_v17 = vmax.f32 %v1825_v59, 0.0  ;;  %v1689_v20 = vadd.f32 %v7268_v13, %v7267_v12 }
 0x224   : > { %v1561_v42 = vpop.f32.mrf.mxu0  ;;  %v1783_v58 = vadd.f32 %v1735_v26, %v5730_v50  ;;  %v7276_v26 = vld [vmem:[#allocation23_spill] sm:$0xff] }
 0x225   : > { %v1874_v56 = vmax.f32 %v1826_v52, 0.0  ;;  %v1827_v38 = vadd.f32 %v1779_v4, %v1561_v42  ;;  %1966 = vrot.lane.b32.xlu1 %v5909_v45, %s4841_s12  ;;  %v7271_v4 = vld [vmem:[#allocation53_spill] sm:$0xff] }
 0x226   : > { %v1565_v40 = vpop.f32.mrf.mxu0  ;;  %v1737_v59 = vadd.f32 %v1689_v20, %v7271_v4  ;;  %v7282_v4 = vld [vmem:[#allocation62_spill] sm:$0xff] }
 0x227   : > { %v5920_v23 = vmax.f32 %v1872_v60, %v1874_v56  ;;  %v1875_v54 = vmax.f32 %v1827_v38, 0.0  ;;  %v1828_v47 = vadd.f32 %v7265_v57, %v1565_v40  ;;  %v1739_v60 = vadd.f32 %v1691_v62, %v5735_v61  ;;  %v7272_v56 = vld [vmem:[#allocation55_spill] sm:$0xff]  ;;  %v7275_v61 = vld [vmem:[#allocation20_spill] sm:$0xff] }
 0x228   : > { %v1567_v19 = vpop.f32.mrf.mxu0  ;;  %v1785_v38 = vadd.f32 %v1737_v59, %v7272_v56  ;;  %v1693_v3 = vadd.f32 %v7276_v26, %v7275_v61  ;;  %v7285_v56 = vld [vmem:[#allocation27_spill] sm:$0xff] }
 0x229   : > { %v5924_v33 = vmax.f32 %v1873_v17, %v1875_v54  ;;  %1968 = vrot.lane.b32.xlu0 %v5920_v23, %s4841_s12  ;;  %v1829_v8 = vadd.f32 %v1781_v10, %v1567_v19  ;;  %v1876_v31 = vmax.f32 %v1828_v47, 0.0  ;;  %v1787_v18 = vadd.f32 %v1739_v60, %v5744_v49  ;;  %v7274_v17 = vld [vmem:[#allocation56_spill] sm:$0xff] }
 0x22a   : > { %v1571_v9 = vpop.f32.mrf.mxu0 }
 0x22b   : > { %v1830_v43 = vadd.f32 %v7266_v25, %v1571_v9  ;;  %1970 = vrot.lane.b32.xlu1 %v5924_v33, %s4841_s12  ;;  %v1877_v50 = vmax.f32 %v1829_v8, 0.0  ;;  %v7277_v9 = vld [vmem:[#allocation22_spill] sm:$0xff] }
 0x22c   : > { %v1573_v11 = vpop.f32.mrf.mxu0 }
 0x22d   : > { %v1878_v1 = vmax.f32 %v1830_v43, 0.0  ;;  %v1831_v63 = vadd.f32 %v1783_v58, %v1573_v11  ;;  %v7278_v58 = vld [vmem:[#allocation25_spill] sm:$0xff] }
 0x22e   : > { %v1577_v39 = vpop.f32.mrf.mxu0  ;;  %v1695_v8 = vadd.f32 %v7278_v58, %v7277_v9  ;;  %v7279_v43 = vld [vmem:[#allocation57_spill] sm:$0xff] }
 0x22f   : > { %v5938_v52 = vmax.f32 %v1876_v31, %v1878_v1  ;;  %v1879_v42 = vmax.f32 %v1831_v63, 0.0  ;;  %v1832_v2 = vadd.f32 %v7273_v44, %v1577_v39  ;;  %v1741_v11 = vadd.f32 %v1693_v3, %v7279_v43  ;;  %v7280_v1 = vld [vmem:[#allocation59_spill] sm:$0xff] }
 0x230   : > { %v1579_v15 = vpop.f32.mrf.mxu0  ;;  %v1743_v31 = vadd.f32 %v1695_v8, %v5749_v51  ;;  %v7284_v51 = vld [vmem:[#allocation24_spill] sm:$0xff]  ;;  %v7289_v8 = vld [vmem:[#allocation63_spill] sm:$0xff] }
 0x231   : > { %v5942_v48 = vmax.f32 %v1877_v50, %v1879_v42  ;;  %1972 = vrot.lane.b32.xlu0 %v5938_v52, %s4841_s12  ;;  %v1833_v28 = vadd.f32 %v1785_v38, %v1579_v15  ;;  %v1880_v10 = vmax.f32 %v1832_v2, 0.0  ;;  %v1789_v63 = vadd.f32 %v1741_v11, %v7280_v1  ;;  %v7283_v42 = vld [vmem:[#allocation60_spill] sm:$0xff]  ;;  %v7292_v1 = vld [vmem:[#allocation31_spill] sm:$0xff] }
 0x232   : > { %v1583_v40 = vpop.f32.mrf.mxu0  ;;  %v1791_v59 = vadd.f32 %v1743_v31, %v7282_v4  ;;  %v1697_v38 = vadd.f32 %v7285_v56, %v7284_v51  ;;  %v7294_v4 = vld [vmem:[#allocation33_spill] sm:$0xff] }
 0x233   : > { %v1834_v54 = vadd.f32 %v7274_v17, %v1583_v40  ;;  %1974 = vrot.lane.b32.xlu1 %v5942_v48, %s4841_s12  ;;  %v1881_v49 = vmax.f32 %v1833_v28, 0.0  ;;  %v7287_v28 = vld [vmem:[#allocation29_spill] sm:$0xff] }
 0x234   : > { %v1585_v19 = vpop.f32.mrf.mxu0 }
 0x235   : > { %v1882_v57 = vmax.f32 %v1834_v54, 0.0  ;;  %v1835_v47 = vadd.f32 %v1787_v18, %v1585_v19  ;;  %v7286_v18 = vld [vmem:[#allocation26_spill] sm:$0xff]  ;;  %v7288_v19 = vld [vmem:[#allocation61_spill] sm:$0xff] }
 0x236   : > { %v1589_v25 = vpop.f32.mrf.mxu0  ;;  %v1699_v17 = vadd.f32 %v7287_v28, %v7286_v18  ;;  %v1745_v61 = vadd.f32 %v1697_v38, %v7288_v19 }
 0x237   : > { %v5956_v12 = vmax.f32 %v1880_v10, %v1882_v57  ;;  %v1883_v13 = vmax.f32 %v1835_v47, 0.0  ;;  %v1836_v62 = vadd.f32 %v7281_v32, %v1589_v25 }
 0x238   : > { %v1591_v20 = vpop.f32.mrf.mxu0  ;;  %v1747_v47 = vadd.f32 %v1699_v17, %v5763_v53  ;;  %v1793_v9 = vadd.f32 %v1745_v61, %v5765_v22  ;;  %v7291_v53 = vld [vmem:[#allocation28_spill] sm:$0xff]  ;;  %v7297_v17 = vld [vmem:[#allocation69_spill] sm:$0xff]  ;;  %v7298_v61 = vld [vmem:[#allocation67_spill] sm:$0xff] }
 0x239   : > { %v5960_v16 = vmax.f32 %v1881_v49, %v1883_v13  ;;  %1976 = vrot.lane.b32.xlu0 %v5956_v12, %s4841_s12  ;;  %v1837_v50 = vadd.f32 %v1789_v63, %v1591_v20  ;;  %v1884_v44 = vmax.f32 %v1836_v62, 0.0  ;;  %v7290_v13 = vld [vmem:[#allocation64_spill] sm:$0xff]  ;;  %v1701_v22 = vadd.f32 %v7292_v1, %v7291_v53 }
 0x23a   : > { %v1595_v39 = vpop.f32.mrf.mxu0  ;;  %v1795_v11 = vadd.f32 %v1747_v47, %v5772_v5 }
 0x23b   : > { %v1838_v15 = vadd.f32 %v7283_v42, %v1595_v39  ;;  %1978 = vrot.lane.b32.xlu1 %v5960_v16, %s4841_s12  ;;  %v1885_v26 = vmax.f32 %v1837_v50, 0.0  ;;  %v7293_v39 = vld [vmem:[#allocation30_spill] sm:$0xff]  ;;  %v7295_v42 = vld [vmem:[#allocation65_spill] sm:$0xff] }
 0x23c   : > { %v1597_v60 = vpop.f32.mrf.mxu0 }
 0x23d   : > { %v1886_v2 = vmax.f32 %v1838_v15, 0.0  ;;  %v1839_v40 = vadd.f32 %v1791_v59, %v1597_v60  ;;  %v1703_v59 = vadd.f32 %v7294_v4, %v7293_v39  ;;  %v1749_v15 = vadd.f32 %v1701_v22, %v7295_v42  ;;  %v7304_v39 = vld [vmem:[#allocation70_spill] sm:$0xff] }
 0x23e   : > { %v1601_v54 = vpop.f32.mrf.mxu0 }
 0x23f   : > { %v5974_v3 = vmax.f32 %v1884_v44, %v1886_v2  ;;  %v1887_v10 = vmax.f32 %v1839_v40, 0.0  ;;  %v1840_v25 = vadd.f32 %v7289_v8, %v1601_v54  ;;  %v1751_v38 = vadd.f32 %v1703_v59, %v5778_v30  ;;  %v7296_v40 = vld [vmem:[#allocation66_spill] sm:$0xff]  ;;  %v7299_v30 = vld [vmem:[#allocation32_spill] sm:$0xff] }
 0x240   : > { %v1603_v57 = vpop.f32.mrf.mxu0  ;;  %v1797_v44 = vadd.f32 %v1749_v15, %v5780_v46  ;;  %v7305_v15 = vld [vmem:[#allocation71_spill] sm:$0xff] }
 0x241   : > { %v5978_v58 = vmax.f32 %v1885_v26, %v1887_v10  ;;  %1980 = vrot.lane.b32.xlu0 %v5974_v3, %s4841_s12  ;;  %v1841_v49 = vadd.f32 %v1793_v9, %v1603_v57  ;;  %v1888_v63 = vmax.f32 %v1840_v25, 0.0  ;;  %v1799_v54 = vadd.f32 %v1751_v38, %v7297_v17  ;;  %v7300_v57 = vld [vmem:[#allocation35_spill] sm:$0xff]  ;;  %v7301_v25 = vld [vmem:[#allocation34_spill] sm:$0xff] }
 0x242   : > { %v1607_v43 = vpop.f32.mrf.mxu0  ;;  %v1705_v46 = vadd.f32 %v7300_v57, %v7299_v30 }
 0x243   : > { %v1842_v20 = vadd.f32 %v7290_v13, %v1607_v43  ;;  %1982 = vrot.lane.b32.xlu1 %v5978_v58, %s4841_s12  ;;  %v1889_v5 = vmax.f32 %v1841_v49, 0.0  ;;  %v7302_v43 = vld [vmem:[#allocation37_spill] sm:$0xff]  ;;  %v7303_v13 = vld [vmem:[#allocation68_spill] sm:$0xff] }
 0x244   : > { %v1609_v31 = vpop.f32.mrf.mxu0 }
 0x245   : > { %v1890_v32 = vmax.f32 %v1842_v20, 0.0  ;;  %v1843_v62 = vadd.f32 %v1795_v11, %v1609_v31  ;;  %v1707_v11 = vadd.f32 %v7302_v43, %v7301_v25  ;;  %v1753_v20 = vadd.f32 %v1705_v46, %v7303_v13  ;;  %v7311_v46 = vld [vmem:[#allocation74_spill] sm:$0xff]  ;;  %v7313_v13 = vld [vmem:[#allocation75_spill] sm:$0xff] }
 0x246   : > { %v1613_v50 = vpop.f32.mrf.mxu0 }
 0x247   : > { %v5992_v60 = vmax.f32 %v1888_v63, %v1890_v32  ;;  %v1891_v51 = vmax.f32 %v1843_v62, 0.0  ;;  %v1844_v18 = vadd.f32 %v7296_v40, %v1613_v50  ;;  %v1755_v63 = vadd.f32 %v1707_v11, %v5794_v34  ;;  %v7306_v34 = vld [vmem:[#allocation36_spill] sm:$0xff] }
 0x248   : > { %v1615_v56 = vpop.f32.mrf.mxu0  ;;  %v1801_v32 = vadd.f32 %v1753_v20, %v5796_v21 }
 0x249   : > { %v5996_v2 = vmax.f32 %v1889_v5, %v1891_v51  ;;  %1984 = vrot.lane.b32.xlu0 %v5992_v60, %s4841_s12  ;;  %v1845_v19 = vadd.f32 %v1797_v44, %v1615_v56  ;;  %v1892_v47 = vmax.f32 %v1844_v18, 0.0  ;;  %v1803_v50 = vadd.f32 %v1755_v63, %v5803_v29  ;;  %v7307_v56 = vld [vmem:[#allocation39_spill] sm:$0xff]  ;;  %v7308_v18 = vld [vmem:[#allocation38_spill] sm:$0xff] }
 0x24a   : > { %v1619_v28 = vpop.f32.mrf.mxu0  ;;  %v1709_v21 = vadd.f32 %v7307_v56, %v7306_v34 }
 0x24b   : > { %v1846_v26 = vadd.f32 %v7298_v61, %v1619_v28  ;;  %1986 = vrot.lane.b32.xlu1 %v5996_v2, %s4841_s12  ;;  %v1893_v31 = vmax.f32 %v1845_v19, 0.0  ;;  %v7309_v28 = vld [vmem:[#allocation41_spill] sm:$0xff]  ;;  %v7310_v19 = vld [vmem:[#allocation72_spill] sm:$0xff] }
 0x24c   : > { %v1621_v10 = vpop.f32.mrf.mxu0  ;;  %v1711_v17 = vadd.f32 %v7309_v28, %v7308_v18  ;;  %v1757_v61 = vadd.f32 %v1709_v21, %v7310_v19  ;;  %v7320_v18 = vld [vmem:[#allocation77_spill] sm:$0xff] }
 0x24d   : > { %v1894_v9 = vmax.f32 %v1846_v26, 0.0  ;;  %v1847_v8 = vadd.f32 %v1799_v54, %v1621_v10 }
 0x24e   : > { %v1625_v49 = vpop.f32.mrf.mxu0  ;;  %v1759_v57 = vadd.f32 %v1711_v17, %v5810_v36  ;;  %v7314_v36 = vld [vmem:[#allocation40_spill] sm:$0xff] }
 0x24f   : > { %v6010_v53 = vmax.f32 %v1892_v47, %v1894_v9  ;;  %v1895_v1 = vmax.f32 %v1847_v8, 0.0  ;;  %v1848_v4 = vadd.f32 %v7304_v39, %v1625_v49  ;;  %v1805_v47 = vadd.f32 %v1757_v61, %v7311_v46  ;;  %v7312_v8 = vld [vmem:[#allocation73_spill] sm:$0xff]  ;;  %v7321_v61 = vld [vmem:[#allocation79_spill] sm:$0xff] }
 0x250   : > { %v1627_v22 = vpop.f32.mrf.mxu0  ;;  %v1807_v11 = vadd.f32 %v1759_v57, %v5821_v7 }
 0x251   : > { %v6014_v62 = vmax.f32 %v1893_v31, %v1895_v1  ;;  %1988 = vrot.lane.b32.xlu0 %v6010_v53, %s4841_s12  ;;  %v1849_v42 = vadd.f32 %v1801_v32, %v1627_v22  ;;  %v1896_v38 = vmax.f32 %v1848_v4, 0.0  ;;  %v7315_v1 = vld [vmem:[#allocation43_spill] sm:$0xff]  ;;  %v7316_v4 = vld [vmem:[#allocation42_spill] sm:$0xff] }
 0x252   : > { %v1631_v59 = vpop.f32.mrf.mxu0  ;;  %v1713_v22 = vadd.f32 %v7315_v1, %v7314_v36 }
 0x253   : > { %v1850_v5 = vadd.f32 %v7305_v15, %v1631_v59  ;;  %1990 = vrot.lane.b32.xlu1 %v6014_v62, %s4841_s12  ;;  %v1897_v29 = vmax.f32 %v1849_v42, 0.0  ;;  %v7317_v59 = vld [vmem:[#allocation45_spill] sm:$0xff]  ;;  %v7318_v15 = vld [vmem:[#allocation76_spill] sm:$0xff] }
 0x254   : > { %v1633_v51 = vpop.f32.mrf.mxu0 }
 0x255   : > { %v1898_v44 = vmax.f32 %v1850_v5, 0.0  ;;  %v1851_v40 = vadd.f32 %v1803_v50, %v1633_v51  ;;  %v1715_v50 = vadd.f32 %v7317_v59, %v7316_v4  ;;  %v1761_v5 = vadd.f32 %v1713_v22, %v7318_v15  ;;  %v2405_v59 = vld [vmem:[%s7169_s3 + $0x468] sm:$0xff] }
 0x256   : > { %v1637_v54 = vpop.f32.mrf.mxu0  ;;  %2453 = vmatprep.subr.mxu1 %v2405_v59  ;;  %v2278_v59 = vld [vmem:[%s7169_s3 + $0x70] sm:$0xff] }
 0x257   : > { %v6028_v26 = vmax.f32 %v1896_v38, %v1898_v44  ;;  %v1899_v10 = vmax.f32 %v1851_v40, 0.0  ;;  %v1852_v25 = vadd.f32 %v7312_v8, %v1637_v54  ;;  %v1763_v21 = vadd.f32 %v1715_v50, %v5828_v55  ;;  %v7319_v38 = vld [vmem:[#allocation78_spill] sm:$0xff]  ;;  %v7322_v55 = vld [vmem:[#allocation44_spill] sm:$0xff]  ;;  %v2409_v50 = vld [vmem:[%s7169_s3 + $0x488] sm:$0xff] }
 0x258   : > { %v1639_v30 = vpop.f32.mrf.mxu0  ;;  %v1809_v44 = vadd.f32 %v1761_v5, %v7319_v38  ;;  %2711 = vmatprep.subr.mxu0 %v2409_v50  ;;  %v2389_v38 = vld [vmem:[%s7169_s3 + $0x3e8] sm:$0xff] }
 0x259   : > { %v6032_v9 = vmax.f32 %v1897_v29, %v1899_v10  ;;  %1992 = vrot.lane.b32.xlu0 %v6028_v26, %s4841_s12  ;;  %v1853_v49 = vadd.f32 %v1805_v47, %v1639_v30  ;;  %v1900_v63 = vmax.f32 %v1852_v25, 0.0  ;;  %v1811_v54 = vadd.f32 %v1763_v21, %v5839_v37  ;;  %v7323_v30 = vld [vmem:[#allocation47_spill] sm:$0xff]  ;;  %v7324_v25 = vld [vmem:[#allocation46_spill] sm:$0xff]  ;;  %v2269_v50 = vld [vmem:[%s7169_s3 + $0x28] sm:$0xff] }
 0x25a   : > { %v1643_v43 = vpop.f32.mrf.mxu0  ;;  %v1717_v57 = vadd.f32 %v7323_v30, %v7322_v55  ;;  %v2368_v55 = vld [vmem:[%s7169_s3 + $0x340] sm:$0xff] }
 0x25b   : > { %v1854_v20 = vadd.f32 %v7313_v13, %v1643_v43  ;;  %1994 = vrot.lane.b32.xlu1 %v6032_v9, %s4841_s12  ;;  %v1901_v7 = vmax.f32 %v1853_v49, 0.0  ;;  %v7325_v43 = vld [vmem:[#allocation48_spill] sm:$0xff] }
 0x25c   : > { %v1645_v31 = vpop.f32.mrf.mxu0  ;;  %v7326_v13 = vld [vmem:[#allocation80_spill] sm:$0xff] }
 0x25d   : > { %v1902_v32 = vmax.f32 %v1854_v20, 0.0  ;;  %v1855_v39 = vadd.f32 %v1807_v11, %v1645_v31  ;;  %v1719_v11 = vadd.f32 %v7325_v43, %v7324_v25  ;;  %v1765_v20 = vadd.f32 %v1717_v57, %v7326_v13  ;;  %v2359_v57 = vld [vmem:[%s7169_s3 + $0x2f8] sm:$0xff]  ;;  %v2338_v43 = vld [vmem:[%s7169_s3 + $0x250] sm:$0xff] }
 0x25e   : > { %v1649_v42 = vpop.f32.mrf.mxu0  ;;  %v2339_v25 = vld [vmem:[%s7169_s3 + $0x258] sm:$0xff] }
 0x25f   : > { %v6046_v51 = vmax.f32 %v1900_v63, %v1902_v32  ;;  %v1903_v34 = vmax.f32 %v1855_v39, 0.0  ;;  %v1856_v28 = vadd.f32 %v7320_v18, %v1649_v42  ;;  %v1767_v22 = vadd.f32 %v1719_v11, %v5846_v6  ;;  %v7327_v39 = vld [vmem:[#allocation81_spill] sm:$0xff]  ;;  %v2408_v6 = vld [vmem:[%s7169_s3 + $0x480] sm:$0xff]  ;;  %v2319_v13 = vld [vmem:[%s7169_s3 + $0x1b8] sm:$0xff] }
 0x260   : > { %v1651_v56 = vpop.f32.mrf.mxu0  ;;  %v1813_v63 = vadd.f32 %v1765_v20, %v5848_v41  ;;  %v2399_v41 = vld [vmem:[%s7169_s3 + $0x438] sm:$0xff]  ;;  %2712 = vmatpush1.msra.mxu0 %v2408_v6  ;;  %v2329_v11 = vld [vmem:[%s7169_s3 + $0x208] sm:$0xff]  ;;  %v2318_v20 = vld [vmem:[%s7169_s3 + $0x1b0] sm:$0xff] }
 0x261   : > { %v6050_v40 = vmax.f32 %v1901_v7, %v1903_v34  ;;  %1996 = vrot.lane.b32.xlu0 %v6046_v51, %s4841_s12  ;;  %v1857_v19 = vadd.f32 %v1809_v44, %v1651_v56  ;;  %v1904_v46 = vmax.f32 %v1856_v28, 0.0  ;;  %v1815_v15 = vadd.f32 %v1767_v22, %v5854_v0  ;;  %v7328_v7 = vld [vmem:[#allocation82_spill] sm:$0xff]  ;;  %2713 = vmatprep.subr.mxu0 %v2399_v41  ;;  %v2388_v0 = vld [vmem:[%s7169_s3 + $0x3e0] sm:$0xff] }
 0x262   : > { %v1655_v17 = vpop.f32.mrf.mxu0  ;;  %v2398_v56 = vld [vmem:[%s7169_s3 + $0x430] sm:$0xff] }
 0x263   : > { %v1858_v29 = vadd.f32 %v7321_v61, %v1655_v17  ;;  %1998 = vrot.lane.b32.xlu1 %v6050_v40, %s4841_s12  ;;  %v1905_v37 = vmax.f32 %v1857_v19, 0.0  ;;  %2714 = vmatpush1.msra.mxu0 %v2398_v56  ;;  %v2379_v17 = vld [vmem:[%s7169_s3 + $0x398] sm:$0xff]  ;;  %v2298_v22 = vld [vmem:[%s7169_s3 + $0x110] sm:$0xff] }
 0x264   : > { %v1657_v10 = vpop.f32.mrf.mxu0  ;;  %2715 = vmatprep.subr.mxu0 %v2389_v38  ;;  %v2375_v38 = vld [vmem:[%s7169_s3 + $0x378] sm:$0xff] }
 0x265   : > { %v1906_v47 = vmax.f32 %v1858_v29, 0.0  ;;  %v1859_v8 = vadd.f32 %v1811_v54, %v1657_v10  ;;  %v2378_v54 = vld [vmem:[%s7169_s3 + $0x390] sm:$0xff]  ;;  %2716 = vmatpush1.msra.mxu0 %v2388_v0  ;;  %v2369_v10 = vld [vmem:[%s7169_s3 + $0x348] sm:$0xff] }
 0x266   : > { %v1661_v49 = vpop.f32.mrf.mxu0  ;;  %2717 = vmatprep.subr.mxu0 %v2379_v17  ;;  %v2365_v17 = vld [vmem:[%s7169_s3 + $0x328] sm:$0xff] }
 0x267   : > { %v6064_v31 = vmax.f32 %v1904_v46, %v1906_v47  ;;  %v1907_v36 = vmax.f32 %v1859_v8, 0.0  ;;  %v1860_v4 = vadd.f32 %v7327_v39, %v1661_v49  ;;  %2718 = vmatpush1.msra.mxu0 %v2378_v54  ;;  %v2358_v46 = vld [vmem:[%s7169_s3 + $0x2f0] sm:$0xff]  ;;  %v2349_v47 = vld [vmem:[%s7169_s3 + $0x2a8] sm:$0xff]  ;;  %v2348_v8 = vld [vmem:[%s7169_s3 + $0x2a0] sm:$0xff] }
 0x268   : > { %v1663_v1 = vpop.f32.mrf.mxu0  ;;  %2719 = vmatprep.subr.mxu0 %v2369_v10  ;;  %v2328_v49 = vld [vmem:[%s7169_s3 + $0x200] sm:$0xff] }
 0x269   : > { %v6068_v32 = vmax.f32 %v1905_v37, %v1907_v36  ;;  %2000 = vrot.lane.b32.xlu0 %v6064_v31, %s4841_s12  ;;  %v1861_v5 = vadd.f32 %v1813_v63, %v1663_v1  ;;  %v1908_v44 = vmax.f32 %v1860_v4, 0.0  ;;  %2720 = vmatpush1.msra.mxu0 %v2368_v55  ;;  %v2309_v37 = vld [vmem:[%s7169_s3 + $0x168] sm:$0xff]  ;;  %v2308_v36 = vld [vmem:[%s7169_s3 + $0x160] sm:$0xff]  ;;  %v2299_v1 = vld [vmem:[%s7169_s3 + $0x118] sm:$0xff] }
 0x26a   : > { %v1667_v42 = vpop.f32.mrf.mxu0  ;;  %2721 = vmatprep.subr.mxu0 %v2359_v57  ;;  %v2289_v63 = vld [vmem:[%s7169_s3 + $0xc8] sm:$0xff]  ;;  %v2288_v39 = vld [vmem:[%s7169_s3 + $0xc0] sm:$0xff]  ;;  %v2279_v4 = vld [vmem:[%s7169_s3 + $0x78] sm:$0xff] }
 0x26b   : > { %v1862_v34 = vadd.f32 %v7328_v7, %v1667_v42  ;;  %2002 = vrot.lane.b32.xlu1 %v6068_v32, %s4841_s12  ;;  %v1909_v19 = vmax.f32 %v1861_v5, 0.0  ;;  %2722 = vmatpush1.msra.mxu0 %v2358_v46  ;;  %v2404_v7 = vld [vmem:[%s7169_s3 + $0x460] sm:$0xff] }
 0x26c   : > { %v1669_v21 = vpop.f32.mrf.mxu0  ;;  %2723 = vmatprep.subr.mxu0 %v2349_v47  ;;  %v2344_v57 = vld [vmem:[%s7169_s3 + $0x280] sm:$0xff] }
 0x26d   : > { %v1910_v18 = vmax.f32 %v1862_v34, 0.0  ;;  %v1863_v28 = vadd.f32 %v1815_v15, %v1669_v21  ;;  %2724 = vmatpush1.msra.mxu0 %v2348_v8  ;;  %v2395_v34 = vld [vmem:[%s7169_s3 + $0x418] sm:$0xff]  ;;  %v2394_v21 = vld [vmem:[%s7169_s3 + $0x410] sm:$0xff] }
 0x26e   : > { %2725 = vmatprep.subr.mxu0 %v2339_v25  ;;  %v2335_v8 = vld [vmem:[%s7169_s3 + $0x238] sm:$0xff] }
 0x26f   : > { %v6104_v61 = vmax.f32 %v1908_v44, %v1910_v18  ;;  %v1911_v29 = vmax.f32 %v1863_v28, 0.0  ;;  %2726 = vmatpush1.msra.mxu0 %v2338_v43  ;;  %v2374_v44 = vld [vmem:[%s7169_s3 + $0x370] sm:$0xff] }
 0x270   : > { %2727 = vmatprep.subr.mxu0 %v2329_v11  ;;  %v2334_v43 = vld [vmem:[%s7169_s3 + $0x230] sm:$0xff]  ;;  %v2325_v11 = vld [vmem:[%s7169_s3 + $0x1e8] sm:$0xff] }
 0x271   : > { %v6112_v30 = vmax.f32 %v1909_v19, %v1911_v29  ;;  %2004 = vrot.lane.b32.xlu0 %v6104_v61, %s4841_s12  ;;  %2728 = vmatpush1.msra.mxu0 %v2328_v49  ;;  %v2364_v19 = vld [vmem:[%s7169_s3 + $0x320] sm:$0xff]  ;;  %v2355_v29 = vld [vmem:[%s7169_s3 + $0x2d8] sm:$0xff]  ;;  %v2314_v49 = vld [vmem:[%s7169_s3 + $0x190] sm:$0xff] }
 0x272   : > { %2729 = vmatprep.subr.mxu0 %v2319_v13  ;;  %v2305_v13 = vld [vmem:[%s7169_s3 + $0x148] sm:$0xff] }
 0x273   : > { %2006 = vrot.lane.b32.xlu1 %v6112_v30, %s4841_s12  ;;  %2730 = vmatpush1.msra.mxu0 %v2318_v20  ;;  %s4152_s12 = sshll.u32 %s355_s24, 3 }
 0x274   : > { %2731 = vmatprep.subr.mxu0 %v2309_v37 }
 0x275   : > { %2732 = vmatpush1.msra.mxu0 %v2308_v36  ;;  %v2304_v36 = vld [vmem:[%s7169_s3 + $0x140] sm:$0xff] }
 0x276   : > { %2733 = vmatprep.subr.mxu0 %v2299_v1 }
 0x277   : > { %2734 = vmatpush1.msra.mxu0 %v2298_v22 }
 0x278   : > { %2735 = vmatprep.subr.mxu0 %v2289_v63  ;;  %v2295_v63 = vld [vmem:[%s7169_s3 + $0xf8] sm:$0xff] }
 0x279   : > { %2736 = vmatpush1.msra.mxu0 %v2288_v39 }
 0x27a   : > { %2737 = vmatprep.subr.mxu0 %v2279_v4  ;;  %v2294_v4 = vld [vmem:[%s7169_s3 + $0xf0] sm:$0xff] }
 0x27b   : > { %2738 = vmatpush1.msra.mxu0 %v2278_v59  ;;  %v2285_v59 = vld [vmem:[%s7169_s3 + $0xa8] sm:$0xff] }
 0x27c   : > { %2739 = vmatprep.subr.mxu0 %v2269_v50  ;;  %v2274_v50 = vld [vmem:[%s7169_s3 + $0x50] sm:$0xff] }
 0x28b   : > { %v1961_v42 = vpop.permute.xlu0 %1960 }
 0x28f   : > { %v1963_v6 = vpop.permute.xlu0 %1962 }
 0x290   : > { %v2009_v41 = vsel %vm2008_vm3, %v1961_v42, %v1963_v6  ;;  %v2046_v15 = vmax.f32 %v5891_v27, %v1963_v6  ;;  %v2384_v27 = vld [vmem:[%s7169_s3 + $0x3c0] sm:$0xff]  ;;  %v2265_v42 = vld [vmem:[%s7169_s3 + $0x8] sm:$0xff] }
 0x291   : > { %v2045_v5 = vmax.f32 %v5884_v14, %v2009_v41  ;;  %v2385_v14 = vld [vmem:[%s7169_s3 + $0x3c8] sm:$0xff] }
 0x292   : > { %4305 = vmatprep.mubr.msk.f32.mxu1 %vm2098_vm4, %v2046_v15 }
 0x293   : > { %2204 = vmatmul.mubr.f32.vlgmr.msra.gmra.mxu1 %v2045_v5  ;;  %v1965_v56 = vpop.permute.xlu1 %1964 }
 0x294   : > { %2454 = vmatpush1.msra.mxu1 %v2404_v7 }
 0x295   : > { %2455 = vmatprep.subr.mxu1 %v2395_v34 }
 0x296   : > { %2456 = vmatpush1.msra.mxu1 %v2394_v21 }
 0x297   : > { %v1967_v0 = vpop.permute.xlu1 %1966  ;;  %2457 = vmatprep.subr.mxu1 %v2385_v14 }
 0x298   : > { %v2010_v18 = vsel %vm2008_vm3, %v1965_v56, %v1967_v0  ;;  %v2048_v28 = vmax.f32 %v5909_v45, %v1967_v0  ;;  %2458 = vmatpush1.msra.mxu1 %v2384_v27  ;;  %v2354_v45 = vld [vmem:[%s7169_s3 + $0x2d0] sm:$0xff] }
 0x299   : > { %v2047_v54 = vmax.f32 %v5902_v24, %v2010_v18  ;;  %2459 = vmatprep.subr.mxu1 %v2375_v38  ;;  %v2345_v24 = vld [vmem:[%s7169_s3 + $0x288] sm:$0xff] }
 0x29a   : > { %4306 = vmatprep.mubr.msk.f32.mxu1 %vm2098_vm4, %v2048_v28  ;;  %2460 = vmatpush1.msra.mxu1 %v2374_v44 }
 0x29b   : > { %2209 = vmatmul.mubr.f32.gmra.mxu1 %v2047_v54  ;;  %2461 = vmatprep.subr.mxu1 %v2365_v17  ;;  %v1969_v10 = vpop.permute.xlu0 %1968 }
 0x29c   : > { %2462 = vmatpush1.msra.mxu1 %v2364_v19 }
 0x29d   : > { %v1971_v55 = vpop.permute.xlu1 %1970  ;;  %2463 = vmatprep.subr.mxu1 %v2355_v29 }
 0x29e   : > { %v2011_v46 = vsel %vm2008_vm3, %v1969_v10, %v1971_v55  ;;  %v2050_v47 = vmax.f32 %v5924_v33, %v1971_v55  ;;  %2464 = vmatpush1.msra.mxu1 %v2354_v45  ;;  %v2324_v33 = vld [vmem:[%s7169_s3 + $0x1e0] sm:$0xff] }
 0x29f   : > { %v2049_v25 = vmax.f32 %v5920_v23, %v2011_v46  ;;  %2465 = vmatprep.subr.mxu1 %v2345_v24  ;;  %v2315_v23 = vld [vmem:[%s7169_s3 + $0x198] sm:$0xff] }
 0x2a0   : > { %4307 = vmatprep.mubr.msk.f32.mxu1 %vm2098_vm4, %v2050_v47  ;;  %2466 = vmatpush1.msra.mxu1 %v2344_v57 }
 0x2a1   : > { %2214 = vmatmul.mubr.f32.gmra.mxu1 %v2049_v25  ;;  %2467 = vmatprep.subr.mxu1 %v2335_v8 }
 0x2a2   : > { %2468 = vmatpush1.msra.mxu1 %v2334_v43 }
 0x2a3   : > { %2469 = vmatprep.subr.mxu1 %v2325_v11  ;;  %v1973_v20 = vpop.permute.xlu0 %1972 }
 0x2a4   : > { %2470 = vmatpush1.msra.mxu1 %v2324_v33 }
 0x2a5   : > { %v1975_v37 = vpop.permute.xlu1 %1974  ;;  %2471 = vmatprep.subr.mxu1 %v2315_v23  ;;  %v2397_v23 = vld [vmem:[%s7169_s3 + $0x428] sm:$0xff] }
 0x2a6   : > { %v2012_v1 = vsel %vm2008_vm3, %v1973_v20, %v1975_v37  ;;  %v2052_v22 = vmax.f32 %v5942_v48, %v1975_v37  ;;  %2472 = vmatpush1.msra.mxu1 %v2314_v49  ;;  %v2284_v48 = vld [vmem:[%s7169_s3 + $0xa0] sm:$0xff]  ;;  %v2403_v49 = vld [vmem:[%s7169_s3 + $0x458] sm:$0xff]  ;;  %v2402_v37 = vld [vmem:[%s7169_s3 + $0x450] sm:$0xff] }
 0x2a7   : > { %v2051_v39 = vmax.f32 %v5938_v52, %v2012_v1  ;;  %2473 = vmatprep.subr.mxu1 %v2305_v13  ;;  %v2275_v52 = vld [vmem:[%s7169_s3 + $0x58] sm:$0xff]  ;;  %v2396_v20 = vld [vmem:[%s7169_s3 + $0x420] sm:$0xff]  ;;  %v2393_v1 = vld [vmem:[%s7169_s3 + $0x408] sm:$0xff] }
 0x2a8   : > { %4308 = vmatprep.mubr.msk.f32.mxu1 %vm2098_vm4, %v2052_v22  ;;  %2474 = vmatpush1.msra.mxu1 %v2304_v36  ;;  %v2387_v36 = vld [vmem:[%s7169_s3 + $0x3d8] sm:$0xff]  ;;  %v2386_v22 = vld [vmem:[%s7169_s3 + $0x3d0] sm:$0xff] }
 0x2a9   : > { %2219 = vmatmul.mubr.f32.gmra.mxu1 %v2051_v39  ;;  %2475 = vmatprep.subr.mxu1 %v2295_v63  ;;  %v2392_v63 = vld [vmem:[%s7169_s3 + $0x400] sm:$0xff]  ;;  %v2377_v39 = vld [vmem:[%s7169_s3 + $0x388] sm:$0xff] }
 0x2aa   : > { %2476 = vmatpush1.msra.mxu1 %v2294_v4  ;;  %v2383_v4 = vld [vmem:[%s7169_s3 + $0x3b8] sm:$0xff] }
 0x2ab   : > { %2477 = vmatprep.subr.mxu1 %v2285_v59  ;;  %v1977_v6 = vpop.permute.xlu0 %1976 }
 0x2ac   : > { %2478 = vmatpush1.msra.mxu1 %v2284_v48  ;;  %v2376_v48 = vld [vmem:[%s7169_s3 + $0x380] sm:$0xff] }
 0x2ad   : > { %v1979_v41 = vpop.permute.xlu1 %1978  ;;  %2479 = vmatprep.subr.mxu1 %v2275_v52  ;;  %v2382_v52 = vld [vmem:[%s7169_s3 + $0x3b0] sm:$0xff] }
 0x2ae   : > { %v2013_v15 = vsel %vm2008_vm3, %v1977_v6, %v1979_v41  ;;  %v2054_v5 = vmax.f32 %v5960_v16, %v1979_v41  ;;  %2480 = vmatpush1.msra.mxu1 %v2274_v50  ;;  %v2367_v50 = vld [vmem:[%s7169_s3 + $0x338] sm:$0xff]  ;;  %v2366_v41 = vld [vmem:[%s7169_s3 + $0x330] sm:$0xff] }
 0x2af   : > { %v2053_v7 = vmax.f32 %v5956_v12, %v2013_v15  ;;  %2481 = vmatprep.subr.mxu1 %v2265_v42  ;;  %v2373_v42 = vld [vmem:[%s7169_s3 + $0x368] sm:$0xff]  ;;  %v2372_v15 = vld [vmem:[%s7169_s3 + $0x360] sm:$0xff] }
 0x2b0   : > { %4309 = vmatprep.mubr.msk.f32.mxu1 %vm2098_vm4, %v2054_v5  ;;  %v2357_v5 = vld [vmem:[%s7169_s3 + $0x2e8] sm:$0xff] }
 0x2b1   : > { %2224 = vmatmul.mubr.f32.gmra.mxu1 %v2053_v7  ;;  %v2363_v7 = vld [vmem:[%s7169_s3 + $0x318] sm:$0xff] }
 0x2b3   : > { %v1981_v34 = vpop.permute.xlu0 %1980 }
 0x2b5   : > { %v1983_v56 = vpop.permute.xlu1 %1982 }
 0x2b6   : > { %v2014_v21 = vsel %vm2008_vm3, %v1981_v34, %v1983_v56  ;;  %v2056_v14 = vmax.f32 %v5978_v58, %v1983_v56  ;;  %v2356_v56 = vld [vmem:[%s7169_s3 + $0x2e0] sm:$0xff] }
 0x2b7   : > { %v2055_v27 = vmax.f32 %v5974_v3, %v2014_v21  ;;  %v2362_v21 = vld [vmem:[%s7169_s3 + $0x310] sm:$0xff] }
 0x2b8   : > { %4310 = vmatprep.mubr.msk.f32.mxu1 %vm2098_vm4, %v2056_v14  ;;  %v2347_v14 = vld [vmem:[%s7169_s3 + $0x298] sm:$0xff] }
 0x2b9   : > { %2229 = vmatmul.mubr.f32.gmra.mxu1 %v2055_v27  ;;  %v2353_v27 = vld [vmem:[%s7169_s3 + $0x2c8] sm:$0xff] }
 0x2bb   : > { %v1985_v38 = vpop.permute.xlu0 %1984 }
 0x2bd   : > { %v1987_v16 = vpop.permute.xlu1 %1986 }
 0x2be   : > { %v2015_v0 = vsel %vm2008_vm3, %v1985_v38, %v1987_v16  ;;  %v2058_v12 = vmax.f32 %v5996_v2, %v1987_v16  ;;  %v2346_v16 = vld [vmem:[%s7169_s3 + $0x290] sm:$0xff] }
 0x2bf   : > { %v2057_v44 = vmax.f32 %v5992_v60, %v2015_v0  ;;  %v2352_v0 = vld [vmem:[%s7169_s3 + $0x2c0] sm:$0xff] }
 0x2c0   : > { %4311 = vmatprep.mubr.msk.f32.mxu1 %vm2098_vm4, %v2058_v12  ;;  %v2337_v12 = vld [vmem:[%s7169_s3 + $0x248] sm:$0xff] }
 0x2c1   : > { %2234 = vmatmul.mubr.f32.gmra.mxu1 %v2057_v44  ;;  %v2343_v44 = vld [vmem:[%s7169_s3 + $0x278] sm:$0xff] }
 0x2c3   : > { %v1989_v18 = vpop.permute.xlu0 %1988 }
 0x2c5   : > { %v1991_v28 = vpop.permute.xlu1 %1990 }
 0x2c6   : > { %v2016_v58 = vsel %vm2008_vm3, %v1989_v18, %v1991_v28  ;;  %v2060_v3 = vmax.f32 %v6014_v62, %v1991_v28  ;;  %v2264_v62 = vld [vmem:[%s7169_s3] sm:$0xff]  ;;  %v2342_v28 = vld [vmem:[%s7169_s3 + $0x270] sm:$0xff] }
 0x2c7   : > { %v2059_v17 = vmax.f32 %v6010_v53, %v2016_v58  ;;  %v2268_v53 = vld [vmem:[%s7169_s3 + $0x20] sm:$0xff]  ;;  %2482 = vmatpush1.msra.mxu1 %v2264_v62  ;;  %v2327_v58 = vld [vmem:[%s7169_s3 + $0x1f8] sm:$0xff] }
 0x2c8   : > { %4312 = vmatprep.mubr.msk.f32.mxu1 %vm2098_vm4, %v2060_v3  ;;  %2740 = vmatpush1.msra.mxu0 %v2268_v53  ;;  %v2336_v18 = vld [vmem:[%s7169_s3 + $0x240] sm:$0xff]  ;;  %v2333_v3 = vld [vmem:[%s7169_s3 + $0x228] sm:$0xff]  ;;  %v2322_v53 = vld [vmem:[%s7169_s3 + $0x1d0] sm:$0xff] }
 0x2c9   : > { %2239 = vmatmul.mubr.f32.gmra.mxu1 %v2059_v17  ;;  %v2316_v62 = vld [vmem:[%s7169_s3 + $0x1a0] sm:$0xff] }
 0x2cb   : > { %v1993_v54 = vpop.permute.xlu0 %1992 }
 0x2cd   : > { %v1995_v19 = vpop.permute.xlu1 %1994 }
 0x2ce   : > { %v2017_v2 = vsel %vm2008_vm3, %v1993_v54, %v1995_v19  ;;  %v2062_v60 = vmax.f32 %v6032_v9, %v1995_v19  ;;  %v2326_v54 = vld [vmem:[%s7169_s3 + $0x1f0] sm:$0xff]  ;;  %v2332_v19 = vld [vmem:[%s7169_s3 + $0x220] sm:$0xff] }
 0x2cf   : > { %v2061_v29 = vmax.f32 %v6028_v26, %v2017_v2  ;;  %v2317_v2 = vld [vmem:[%s7169_s3 + $0x1a8] sm:$0xff] }
 0x2d0   : > { %4313 = vmatprep.mubr.msk.f32.mxu1 %vm2098_vm4, %v2062_v60  ;;  %v2323_v60 = vld [vmem:[%s7169_s3 + $0x1d8] sm:$0xff] }
 0x2d1   : > { %2244 = vmatmul.mubr.f32.gmra.mxu1 %v2061_v29 }
 0x2d3   : > { %v1997_v45 = vpop.permute.xlu0 %1996 }
 0x2d5   : > { %v1999_v24 = vpop.permute.xlu1 %1998 }
 0x2d6   : > { %v2018_v10 = vsel %vm2008_vm3, %v1997_v45, %v1999_v24  ;;  %v2064_v9 = vmax.f32 %v6050_v40, %v1999_v24  ;;  %v2307_v45 = vld [vmem:[%s7169_s3 + $0x158] sm:$0xff]  ;;  %v2313_v24 = vld [vmem:[%s7169_s3 + $0x188] sm:$0xff] }
 0x2d7   : > { %v2063_v26 = vmax.f32 %v6046_v51, %v2018_v10  ;;  %v2306_v10 = vld [vmem:[%s7169_s3 + $0x150] sm:$0xff] }
 0x2d8   : > { %4314 = vmatprep.mubr.msk.f32.mxu1 %vm2098_vm4, %v2064_v9  ;;  %v2312_v9 = vld [vmem:[%s7169_s3 + $0x180] sm:$0xff] }
 0x2d9   : > { %2249 = vmatmul.mubr.f32.gmra.mxu1 %v2063_v26  ;;  %v2297_v26 = vld [vmem:[%s7169_s3 + $0x108] sm:$0xff] }
 0x2db   : > { %v2001_v55 = vpop.permute.xlu0 %2000 }
 0x2dd   : > { %v2003_v57 = vpop.permute.xlu1 %2002 }
 0x2de   : > { %v2019_v46 = vsel %vm2008_vm3, %v2001_v55, %v2003_v57  ;;  %v2066_v47 = vmax.f32 %v6068_v32, %v2003_v57  ;;  %v2413_v32 = vld [vmem:[%s7169_s3 + $0x4a8] sm:$0xff]  ;;  %v2303_v55 = vld [vmem:[%s7169_s3 + $0x138] sm:$0xff] }
 0x2df   : > { %v2065_v8 = vmax.f32 %v6064_v31, %v2019_v46  ;;  %v2407_v31 = vld [vmem:[%s7169_s3 + $0x478] sm:$0xff]  ;;  %2969 = vmatprep.subr.mxu0 %v2413_v32  ;;  %v2296_v46 = vld [vmem:[%s7169_s3 + $0x100] sm:$0xff] }
 0x2e0   : > { %4315 = vmatprep.mubr.msk.f32.mxu1 %vm2098_vm4, %v2066_v47  ;;  %2582 = vmatprep.subr.mxu1 %v2407_v31  ;;  %v2302_v47 = vld [vmem:[%s7169_s3 + $0x130] sm:$0xff]  ;;  %v2283_v31 = vld [vmem:[%s7169_s3 + $0x98] sm:$0xff]  ;;  %v2276_v32 = vld [vmem:[%s7169_s3 + $0x60] sm:$0xff] }
 0x2e1   : > { %2254 = vmatmul.mubr.f32.gmra.mxu1 %v2065_v8  ;;  %v2287_v8 = vld [vmem:[%s7169_s3 + $0xb8] sm:$0xff] }
 0x2e3   : > { %v2005_v25 = vpop.permute.xlu0 %2004 }
 0x2e5   : > { %v2007_v43 = vpop.permute.xlu1 %2006 }
 0x2e6   : > { %v2020_v40 = vsel %vm2008_vm3, %v2005_v25, %v2007_v43  ;;  %v2068_v51 = vmax.f32 %v6112_v30, %v2007_v43  ;;  %v2412_v30 = vld [vmem:[%s7169_s3 + $0x4a0] sm:$0xff]  ;;  %v2293_v25 = vld [vmem:[%s7169_s3 + $0xe8] sm:$0xff] }
 0x2e7   : > { %v2067_v11 = vmax.f32 %v6104_v61, %v2020_v40  ;;  %v2406_v61 = vld [vmem:[%s7169_s3 + $0x470] sm:$0xff] }
 0x2e8   : > { %4316 = vmatprep.mubr.msk.f32.mxu1 %vm2098_vm4, %v2068_v51  ;;  %v2286_v40 = vld [vmem:[%s7169_s3 + $0xb0] sm:$0xff]  ;;  %v2292_v51 = vld [vmem:[%s7169_s3 + $0xe0] sm:$0xff] }
 0x2e9   : > { %2259 = vmatmul.mubr.f32.gmra.mxu1 %v2067_v11  ;;  %v2277_v11 = vld [vmem:[%s7169_s3 + $0x68] sm:$0xff] }
 0x2ea   : > { %2515 = vmatprep.mubr.f32.mxu1 %v7244_v35 }
 0x353   : > { %v6320_v33 = vpop.f32.mrf.mxu1 }
 0x354   : > { %4317 = vmatmul.mubr.msk.f32.vlgmr.msra.gmra.mxu1 %vm2414_vm5, %v6320_v33  ;;  %4341 = vmatmul.mubr.msk.f32.vlgmr.msra.gmra.mxu0 %vm2414_vm5, %v6320_v33 }
 0x355   : > { %v2207_v13 = vpop.f32.mrf.mxu1  ;;  %2521 = vmatprep.mubr.f32.mxu1 %v7244_v35  ;;  %2777 = vmatprep.mubr.f32.mxu0 %v7244_v35 }
 0x356   : > { %2583 = vmatpush1.msra.mxu1 %v2406_v61  ;;  %2970 = vmatpush1.msra.mxu0 %v2412_v30  ;;  %v2282_v61 = vld [vmem:[%s7169_s3 + $0x90] sm:$0xff]  ;;  %v2267_v30 = vld [vmem:[%s7169_s3 + $0x18] sm:$0xff] }
 0x357   : > { %2584 = vmatprep.subr.mxu1 %v2397_v23  ;;  %2971 = vmatprep.subr.mxu0 %v2403_v49  ;;  %v2273_v23 = vld [vmem:[%s7169_s3 + $0x48] sm:$0xff]  ;;  %v2266_v13 = vld [vmem:[%s7169_s3 + $0x10] sm:$0xff] }
 0x358   : > { %2585 = vmatpush1.msra.mxu1 %v2396_v20  ;;  %2972 = vmatpush1.msra.mxu0 %v2402_v37  ;;  %v2272_v20 = vld [vmem:[%s7169_s3 + $0x40] sm:$0xff]  ;;  %v2411_v37 = vld [vmem:[%s7169_s3 + $0x498] sm:$0xff] }
 0x359   : > { %2586 = vmatprep.subr.mxu1 %v2387_v36  ;;  %2973 = vmatprep.subr.mxu0 %v2393_v1 }
 0x35a   : > { %2587 = vmatpush1.msra.mxu1 %v2386_v22  ;;  %2974 = vmatpush1.msra.mxu0 %v2392_v63 }
 0x35b   : > { %v6364_v59 = vpop.f32.mrf.mxu1  ;;  %2588 = vmatprep.subr.mxu1 %v2377_v39  ;;  %2975 = vmatprep.subr.mxu0 %v2383_v4 }
 0x35c   : > { %4318 = vmatmul.mubr.msk.f32.gmra.mxu1 %vm2414_vm5, %v6364_v59  ;;  %4342 = vmatmul.mubr.msk.f32.gmra.mxu0 %vm2414_vm5, %v6364_v59 }
 0x35d   : > { %v2212_v6 = vpop.f32.mrf.mxu1  ;;  %2527 = vmatprep.mubr.f32.mxu1 %v7244_v35  ;;  %2781 = vmatprep.mubr.f32.mxu0 %v7244_v35 }
 0x35e   : > { %2589 = vmatpush1.msra.mxu1 %v2376_v48  ;;  %2976 = vmatpush1.msra.mxu0 %v2382_v52 }
 0x35f   : > { %2590 = vmatprep.subr.mxu1 %v2367_v50  ;;  %2977 = vmatprep.subr.mxu0 %v2373_v42 }
 0x360   : > { %2591 = vmatpush1.msra.mxu1 %v2366_v41  ;;  %2978 = vmatpush1.msra.mxu0 %v2372_v15 }
 0x361   : > { %v6396_v34 = vpop.f32.mrf.mxu1  ;;  %2592 = vmatprep.subr.mxu1 %v2357_v5  ;;  %2979 = vmatprep.subr.mxu0 %v2363_v7  ;;  %v2410_v5 = vld [vmem:[%s7169_s3 + $0x490] sm:$0xff]  ;;  %v2401_v7 = vld [vmem:[%s7169_s3 + $0x448] sm:$0xff] }
 0x362   : > { %4319 = vmatmul.mubr.msk.f32.gmra.mxu1 %vm2414_vm5, %v6396_v34  ;;  %4343 = vmatmul.mubr.msk.f32.gmra.mxu0 %vm2414_vm5, %v6396_v34 }
 0x363   : > { %v2217_v38 = vpop.f32.mrf.mxu1  ;;  %2533 = vmatprep.mubr.f32.mxu1 %v7244_v35  ;;  %2787 = vmatprep.mubr.f32.mxu0 %v7244_v35 }
 0x364   : > { %2593 = vmatpush1.msra.mxu1 %v2356_v56  ;;  %2980 = vmatpush1.msra.mxu0 %v2362_v21  ;;  %v2400_v56 = vld [vmem:[%s7169_s3 + $0x440] sm:$0xff]  ;;  %v2391_v21 = vld [vmem:[%s7169_s3 + $0x3f8] sm:$0xff] }
 0x365   : > { %2594 = vmatprep.subr.mxu1 %v2347_v14  ;;  %2981 = vmatprep.subr.mxu0 %v2353_v27  ;;  %v2390_v14 = vld [vmem:[%s7169_s3 + $0x3f0] sm:$0xff]  ;;  %v2381_v27 = vld [vmem:[%s7169_s3 + $0x3a8] sm:$0xff]  ;;  %v2380_v38 = vld [vmem:[%s7169_s3 + $0x3a0] sm:$0xff] }
 0x366   : > { %2595 = vmatpush1.msra.mxu1 %v2346_v16  ;;  %2982 = vmatpush1.msra.mxu0 %v2352_v0  ;;  %v2371_v16 = vld [vmem:[%s7169_s3 + $0x358] sm:$0xff]  ;;  %v2370_v0 = vld [vmem:[%s7169_s3 + $0x350] sm:$0xff] }
 0x367   : > { %2596 = vmatprep.subr.mxu1 %v2337_v12  ;;  %2983 = vmatprep.subr.mxu0 %v2343_v44  ;;  %v2361_v12 = vld [vmem:[%s7169_s3 + $0x308] sm:$0xff]  ;;  %v2360_v44 = vld [vmem:[%s7169_s3 + $0x300] sm:$0xff] }
 0x368   : > { %2597 = vmatpush1.msra.mxu1 %v2336_v18  ;;  %2984 = vmatpush1.msra.mxu0 %v2342_v28  ;;  %v2351_v18 = vld [vmem:[%s7169_s3 + $0x2b8] sm:$0xff]  ;;  %v2350_v28 = vld [vmem:[%s7169_s3 + $0x2b0] sm:$0xff] }
 0x369   : > { %v6440_v17 = vpop.f32.mrf.mxu1  ;;  %2598 = vmatprep.subr.mxu1 %v2327_v58  ;;  %2985 = vmatprep.subr.mxu0 %v2333_v3  ;;  %v2341_v58 = vld [vmem:[%s7169_s3 + $0x268] sm:$0xff]  ;;  %v2340_v3 = vld [vmem:[%s7169_s3 + $0x260] sm:$0xff] }
 0x36a   : > { %4320 = vmatmul.mubr.msk.f32.gmra.mxu1 %vm2414_vm5, %v6440_v17  ;;  %4344 = vmatmul.mubr.msk.f32.gmra.mxu0 %vm2414_vm5, %v6440_v17 }
 0x36b   : > { %v2222_v29 = vpop.f32.mrf.mxu1  ;;  %2539 = vmatprep.mubr.f32.mxu1 %v7244_v35  ;;  %2793 = vmatprep.mubr.f32.mxu0 %v7244_v35 }
 0x36c   : > { %2599 = vmatpush1.msra.mxu1 %v2326_v54  ;;  %2986 = vmatpush1.msra.mxu0 %v2332_v19  ;;  %v2331_v54 = vld [vmem:[%s7169_s3 + $0x218] sm:$0xff]  ;;  %v2330_v19 = vld [vmem:[%s7169_s3 + $0x210] sm:$0xff] }
 0x36d   : > { %2600 = vmatprep.subr.mxu1 %v2317_v2  ;;  %2987 = vmatprep.subr.mxu0 %v2323_v60  ;;  %v2321_v2 = vld [vmem:[%s7169_s3 + $0x1c8] sm:$0xff]  ;;  %v2320_v60 = vld [vmem:[%s7169_s3 + $0x1c0] sm:$0xff]  ;;  %v2311_v29 = vld [vmem:[%s7169_s3 + $0x178] sm:$0xff] }
 0x36e   : > { %2601 = vmatpush1.msra.mxu1 %v2316_v62  ;;  %2988 = vmatpush1.msra.mxu0 %v2322_v53  ;;  %v2310_v62 = vld [vmem:[%s7169_s3 + $0x170] sm:$0xff]  ;;  %v2301_v53 = vld [vmem:[%s7169_s3 + $0x128] sm:$0xff] }
 0x36f   : > { %2602 = vmatprep.subr.mxu1 %v2307_v45  ;;  %2989 = vmatprep.subr.mxu0 %v2313_v24  ;;  %v2300_v45 = vld [vmem:[%s7169_s3 + $0x120] sm:$0xff]  ;;  %v2291_v24 = vld [vmem:[%s7169_s3 + $0xd8] sm:$0xff] }
 0x370   : > { %2603 = vmatpush1.msra.mxu1 %v2306_v10  ;;  %2990 = vmatpush1.msra.mxu0 %v2312_v9  ;;  %v2290_v10 = vld [vmem:[%s7169_s3 + $0xd0] sm:$0xff]  ;;  %v2281_v9 = vld [vmem:[%s7169_s3 + $0x88] sm:$0xff] }
 0x371   : > { %v6484_v57 = vpop.f32.mrf.mxu1  ;;  %2604 = vmatprep.subr.mxu1 %v2297_v26  ;;  %2991 = vmatprep.subr.mxu0 %v2303_v55  ;;  %v2280_v26 = vld [vmem:[%s7169_s3 + $0x80] sm:$0xff]  ;;  %v2271_v55 = vld [vmem:[%s7169_s3 + $0x38] sm:$0xff] }
 0x372   : > { %4321 = vmatmul.mubr.msk.f32.gmra.mxu1 %vm2414_vm5, %v6484_v57  ;;  %4345 = vmatmul.mubr.msk.f32.gmra.mxu0 %vm2414_vm5, %v6484_v57 }
 0x373   : > { %v2227_v43 = vpop.f32.mrf.mxu1  ;;  %2545 = vmatprep.mubr.f32.mxu1 %v7244_v35  ;;  %2799 = vmatprep.mubr.f32.mxu0 %v7244_v35 }
 0x374   : > { %2605 = vmatpush1.msra.mxu1 %v2296_v46  ;;  %2992 = vmatpush1.msra.mxu0 %v2302_v47  ;;  %v2270_v46 = vld [vmem:[%s7169_s3 + $0x30] sm:$0xff] }
 0x375   : > { %2606 = vmatprep.subr.mxu1 %v2287_v8  ;;  %2993 = vmatprep.subr.mxu0 %v2293_v25 }
 0x376   : > { %2607 = vmatpush1.msra.mxu1 %v2286_v40  ;;  %2994 = vmatpush1.msra.mxu0 %v2292_v51 }
 0x377   : > { %2608 = vmatprep.subr.mxu1 %v2277_v11  ;;  %2995 = vmatprep.subr.mxu0 %v2283_v31 }
 0x378   : > { %2609 = vmatpush1.msra.mxu1 %v2276_v32  ;;  %2996 = vmatpush1.msra.mxu0 %v2282_v61 }
 0x379   : > { %v6528_v49 = vpop.f32.mrf.mxu1  ;;  %2610 = vmatprep.subr.mxu1 %v2267_v30  ;;  %2997 = vmatprep.subr.mxu0 %v2273_v23 }
 0x37a   : > { %4322 = vmatmul.mubr.msk.f32.gmra.mxu1 %vm2414_vm5, %v6528_v49  ;;  %4346 = vmatmul.mubr.msk.f32.gmra.mxu0 %vm2414_vm5, %v6528_v49 }
 0x37b   : > { %v2232_v36 = vpop.f32.mrf.mxu1  ;;  %2551 = vmatprep.mubr.f32.mxu1 %v7244_v35  ;;  %2805 = vmatprep.mubr.f32.mxu0 %v7244_v35 }
 0x37c   : > { %2611 = vmatpush1.msra.mxu1 %v2266_v13  ;;  %2998 = vmatpush1.msra.mxu0 %v2272_v20 }
 0x37d   : > { %2840 = vmatprep.subr.mxu1 %v2411_v37 }
 0x381   : > { %v6545_v1 = vpop.f32.mrf.mxu1 }
 0x382   : > { %4323 = vmatmul.mubr.msk.f32.gmra.mxu1 %vm2414_vm5, %v6545_v1  ;;  %4347 = vmatmul.mubr.msk.f32.gmra.mxu0 %vm2414_vm5, %v6545_v1 }
 0x383   : > { %v2237_v22 = vpop.f32.mrf.mxu1  ;;  %2557 = vmatprep.mubr.f32.mxu1 %v7244_v35  ;;  %2811 = vmatprep.mubr.f32.mxu0 %v7244_v35 }
 0x389   : > { %v6553_v63 = vpop.f32.mrf.mxu1 }
 0x38a   : > { %4324 = vmatmul.mubr.msk.f32.gmra.mxu1 %vm2414_vm5, %v6553_v63  ;;  %4348 = vmatmul.mubr.msk.f32.gmra.mxu0 %vm2414_vm5, %v6553_v63 }
 0x38b   : > { %v2242_v39 = vpop.f32.mrf.mxu1  ;;  %2563 = vmatprep.mubr.f32.mxu1 %v7244_v35  ;;  %2817 = vmatprep.mubr.f32.mxu0 %v7244_v35 }
 0x391   : > { %v6561_v4 = vpop.f32.mrf.mxu1 }
 0x392   : > { %4325 = vmatmul.mubr.msk.f32.gmra.mxu1 %vm2414_vm5, %v6561_v4  ;;  %4349 = vmatmul.mubr.msk.f32.gmra.mxu0 %vm2414_vm5, %v6561_v4 }
 0x393   : > { %v2247_v48 = vpop.f32.mrf.mxu1  ;;  %2567 = vmatprep.mubr.f32.mxu1 %v7244_v35  ;;  %2823 = vmatprep.mubr.f32.mxu0 %v7244_v35 }
 0x399   : > { %v6569_v52 = vpop.f32.mrf.mxu1 }
 0x39a   : > { %4326 = vmatmul.mubr.msk.f32.gmra.mxu1 %vm2414_vm5, %v6569_v52  ;;  %4350 = vmatmul.mubr.msk.f32.gmra.mxu0 %vm2414_vm5, %v6569_v52 }
 0x39b   : > { %v2252_v50 = vpop.f32.mrf.mxu1  ;;  %2571 = vmatprep.mubr.f32.mxu1 %v7244_v35  ;;  %2829 = vmatprep.mubr.f32.mxu0 %v7244_v35 }
 0x3a1   : > { %v6577_v42 = vpop.f32.mrf.mxu1 }
 0x3a2   : > { %4327 = vmatmul.mubr.msk.f32.gmra.mxu1 %vm2414_vm5, %v6577_v42  ;;  %4351 = vmatmul.mubr.msk.f32.gmra.mxu0 %vm2414_vm5, %v6577_v42 }
 0x3a3   : > { %v2257_v6 = vpop.f32.mrf.mxu1  ;;  %2575 = vmatprep.mubr.f32.mxu1 %v7244_v35  ;;  %2833 = vmatprep.mubr.f32.mxu0 %v7244_v35 }
 0x3a4   : > { %v3244_v6 = vld [vmem:[#allocation7 + $0x78] sm:$0xff] }
 0x3a9   : > { %v6585_v41 = vpop.f32.mrf.mxu1 }
 0x3aa   : > { %4328 = vmatmul.mubr.msk.f32.gmra.mxu1 %vm2414_vm5, %v6585_v41  ;;  %4352 = vmatmul.mubr.msk.f32.gmra.mxu0 %vm2414_vm5, %v6585_v41 }
 0x3ab   : > { %v2262_v15 = vpop.f32.mrf.mxu1  ;;  %2644 = vmatprep.mubr.f32.mxu1 %v7244_v35  ;;  %3031 = vmatprep.mubr.f32.mxu0 %v7244_v35 }
 0x3ae   : > { %4329 = vmatmul.mubr.msk.f32.vlgmr.msra.gmra.mxu1 %vm2414_vm5, %v6320_v33  ;;  %4365 = vmatmul.mubr.msk.f32.vlgmr.msra.gmra.mxu0 %vm2414_vm5, %v6320_v33 }
 0x3af   : > { %2841 = vmatpush1.msra.mxu1 %v2410_v5  ;;  %2648 = vmatprep.mubr.f32.mxu1 %v7244_v35  ;;  %v3242_v5 = vld [vmem:[#allocation7 + $0x68] sm:$0xff] }
 0x3b0   : > { %3035 = vmatprep.mubr.f32.mxu0 %v7244_v35  ;;  %2842 = vmatprep.subr.mxu1 %v2401_v7 }
 0x3b1   : > { %2843 = vmatpush1.msra.mxu1 %v2400_v56 }
 0x3b2   : > { %4330 = vmatmul.mubr.msk.f32.gmra.mxu1 %vm2414_vm5, %v6364_v59  ;;  %4366 = vmatmul.mubr.msk.f32.gmra.mxu0 %vm2414_vm5, %v6364_v59 }
 0x3b3   : > { %2654 = vmatprep.mubr.f32.mxu1 %v7244_v35  ;;  %2844 = vmatprep.subr.mxu1 %v2391_v21  ;;  %v3241_v21 = vld [vmem:[#allocation7 + $0x60] sm:$0xff] }
 0x3b4   : > { %3039 = vmatprep.mubr.f32.mxu0 %v7244_v35  ;;  %2845 = vmatpush1.msra.mxu1 %v2390_v14 }
 0x3b5   : > { %2846 = vmatprep.subr.mxu1 %v2381_v27  ;;  %v3240_v27 = vld [vmem:[#allocation7 + $0x58] sm:$0xff] }
 0x3b6   : > { %4331 = vmatmul.mubr.msk.f32.gmra.mxu1 %vm2414_vm5, %v6396_v34  ;;  %4367 = vmatmul.mubr.msk.f32.gmra.mxu0 %vm2414_vm5, %v6396_v34 }
 0x3b7   : > { %2660 = vmatprep.mubr.f32.mxu1 %v7244_v35  ;;  %2847 = vmatpush1.msra.mxu1 %v2380_v38  ;;  %v3239_v38 = vld [vmem:[#allocation7 + $0x50] sm:$0xff] }
 0x3b8   : > { %3043 = vmatprep.mubr.f32.mxu0 %v7244_v35  ;;  %2848 = vmatprep.subr.mxu1 %v2371_v16 }
 0x3b9   : > { %2849 = vmatpush1.msra.mxu1 %v2370_v0 }
 0x3ba   : > { %4332 = vmatmul.mubr.msk.f32.gmra.mxu1 %vm2414_vm5, %v6440_v17  ;;  %4368 = vmatmul.mubr.msk.f32.gmra.mxu0 %vm2414_vm5, %v6440_v17 }
 0x3bb   : > { %2666 = vmatprep.mubr.f32.mxu1 %v7244_v35  ;;  %3047 = vmatprep.mubr.f32.mxu0 %v7244_v35 }
 0x3bc   : > { %2850 = vmatprep.subr.mxu1 %v2361_v12  ;;  %v3238_v12 = vld [vmem:[#allocation7 + $0x48] sm:$0xff] }
 0x3bd   : > { %2851 = vmatpush1.msra.mxu1 %v2360_v44 }
 0x3be   : > { %4333 = vmatmul.mubr.msk.f32.gmra.mxu1 %vm2414_vm5, %v6484_v57  ;;  %4369 = vmatmul.mubr.msk.f32.gmra.mxu0 %vm2414_vm5, %v6484_v57 }
 0x3bf   : > { %2672 = vmatprep.mubr.f32.mxu1 %v7244_v35  ;;  %3053 = vmatprep.mubr.f32.mxu0 %v7244_v35 }
 0x3c0   : > { %2852 = vmatprep.subr.mxu1 %v2351_v18 }
 0x3c1   : > { %2853 = vmatpush1.msra.mxu1 %v2350_v28  ;;  %v3237_v28 = vld [vmem:[#allocation7 + $0x40] sm:$0xff] }
 0x3c2   : > { %4334 = vmatmul.mubr.msk.f32.gmra.mxu1 %vm2414_vm5, %v6528_v49  ;;  %4370 = vmatmul.mubr.msk.f32.gmra.mxu0 %vm2414_vm5, %v6528_v49 }
 0x3c3   : > { %2678 = vmatprep.mubr.f32.mxu1 %v7244_v35  ;;  %2854 = vmatprep.subr.mxu1 %v2341_v58  ;;  %v3236_v58 = vld [vmem:[#allocation7 + $0x38] sm:$0xff] }
 0x3c4   : > { %3059 = vmatprep.mubr.f32.mxu0 %v7244_v35  ;;  %2855 = vmatpush1.msra.mxu1 %v2340_v3 }
 0x3c5   : > { %2856 = vmatprep.subr.mxu1 %v2331_v54  ;;  %v3235_v54 = vld [vmem:[#allocation7 + $0x30] sm:$0xff] }
 0x3c6   : > { %4335 = vmatmul.mubr.msk.f32.gmra.mxu1 %vm2414_vm5, %v6545_v1  ;;  %4371 = vmatmul.mubr.msk.f32.gmra.mxu0 %vm2414_vm5, %v6545_v1 }
 0x3c7   : > { %2684 = vmatprep.mubr.f32.mxu1 %v7244_v35  ;;  %2857 = vmatpush1.msra.mxu1 %v2330_v19 }
 0x3c8   : > { %3065 = vmatprep.mubr.f32.mxu0 %v7244_v35  ;;  %2858 = vmatprep.subr.mxu1 %v2321_v2 }
 0x3c9   : > { %2859 = vmatpush1.msra.mxu1 %v2320_v60  ;;  %v3234_v60 = vld [vmem:[#allocation7 + $0x28] sm:$0xff] }
 0x3ca   : > { %4336 = vmatmul.mubr.msk.f32.gmra.mxu1 %vm2414_vm5, %v6553_v63  ;;  %4372 = vmatmul.mubr.msk.f32.gmra.mxu0 %vm2414_vm5, %v6553_v63 }
 0x3cb   : > { %2690 = vmatprep.mubr.f32.mxu1 %v7244_v35  ;;  %3071 = vmatprep.mubr.f32.mxu0 %v7244_v35 }
 0x3cc   : > { %2860 = vmatprep.subr.mxu1 %v2311_v29 }
 0x3cd   : > { %2861 = vmatpush1.msra.mxu1 %v2310_v62 }
 0x3ce   : > { %4337 = vmatmul.mubr.msk.f32.gmra.mxu1 %vm2414_vm5, %v6561_v4  ;;  %4373 = vmatmul.mubr.msk.f32.gmra.mxu0 %vm2414_vm5, %v6561_v4 }
 0x3cf   : > { %2696 = vmatprep.mubr.f32.mxu1 %v7244_v35  ;;  %3077 = vmatprep.mubr.f32.mxu0 %v7244_v35 }
 0x3d0   : > { %2862 = vmatprep.subr.mxu1 %v2301_v53  ;;  %v3233_v53 = vld [vmem:[#allocation7 + $0x20] sm:$0xff] }
 0x3d1   : > { %2863 = vmatpush1.msra.mxu1 %v2300_v45  ;;  %v3232_v45 = vld [vmem:[#allocation7 + $0x18] sm:$0xff] }
 0x3d2   : > { %4338 = vmatmul.mubr.msk.f32.gmra.mxu1 %vm2414_vm5, %v6569_v52  ;;  %4374 = vmatmul.mubr.msk.f32.gmra.mxu0 %vm2414_vm5, %v6569_v52 }
 0x3d3   : > { %2700 = vmatprep.mubr.f32.mxu1 %v7244_v35  ;;  %2864 = vmatprep.subr.mxu1 %v2291_v24  ;;  %v3231_v24 = vld [vmem:[#allocation7 + $0x10] sm:$0xff] }
 0x3d4   : > { %3083 = vmatprep.mubr.f32.mxu0 %v7244_v35  ;;  %2865 = vmatpush1.msra.mxu1 %v2290_v10 }
 0x3d5   : > { %2866 = vmatprep.subr.mxu1 %v2281_v9 }
 0x3d6   : > { %4339 = vmatmul.mubr.msk.f32.gmra.mxu1 %vm2414_vm5, %v6577_v42  ;;  %4375 = vmatmul.mubr.msk.f32.gmra.mxu0 %vm2414_vm5, %v6577_v42 }
 0x3d7   : > { %2704 = vmatprep.mubr.f32.mxu1 %v7244_v35  ;;  %2867 = vmatpush1.msra.mxu1 %v2280_v26  ;;  %v3230_v26 = vld [vmem:[#allocation7 + $0x8] sm:$0xff] }
 0x3d8   : > { %3089 = vmatprep.mubr.f32.mxu0 %v7244_v35  ;;  %2868 = vmatprep.subr.mxu1 %v2271_v55 }
 0x3d9   : > { %2869 = vmatpush1.msra.mxu1 %v2270_v46 }
 0x3da   : > { %4340 = vmatmul.mubr.msk.f32.gmra.mxu1 %vm2414_vm5, %v6585_v41  ;;  %4376 = vmatmul.mubr.msk.f32.gmra.mxu0 %vm2414_vm5, %v6585_v41 }
 0x3db   : > { %2902 = vmatprep.mubr.f32.mxu1 %v7244_v35  ;;  %3263 = vmatprep.subr.mxu1 %v7244_v35 }
 0x3dc   : > { %3478 = vmatprep.mubr.f32.mxu0 %v7244_v35 }
 0x3de   : > { %4353 = vmatmul.mubr.msk.f32.vlgmr.msra.gmra.mxu1 %vm2414_vm5, %v6320_v33 }
 0x3df   : > { %2906 = vmatprep.mubr.f32.mxu1 %v7244_v35  ;;  %3264 = vmatpush1.msra.mxu1 %v3244_v6 }
 0x3e0   : > { %3265 = vmatprep.subr.mxu1 %v7244_v35 }
 0x3e2   : > { %4354 = vmatmul.mubr.msk.f32.gmra.mxu1 %vm2414_vm5, %v6364_v59 }
 0x3e3   : > { %2910 = vmatprep.mubr.f32.mxu1 %v7244_v35 }
 0x3e6   : > { %4355 = vmatmul.mubr.msk.f32.gmra.mxu1 %vm2414_vm5, %v6396_v34 }
 0x3e7   : > { %2914 = vmatprep.mubr.f32.mxu1 %v7244_v35 }
 0x3ea   : > { %4356 = vmatmul.mubr.msk.f32.gmra.mxu1 %vm2414_vm5, %v6440_v17 }
 0x3eb   : > { %2920 = vmatprep.mubr.f32.mxu1 %v7244_v35 }
 0x3ee   : > { %4357 = vmatmul.mubr.msk.f32.gmra.mxu1 %vm2414_vm5, %v6484_v57 }
 0x3ef   : > { %2926 = vmatprep.mubr.f32.mxu1 %v7244_v35 }
 0x3f2   : > { %4358 = vmatmul.mubr.msk.f32.gmra.mxu1 %vm2414_vm5, %v6528_v49 }
 0x3f3   : > { %2932 = vmatprep.mubr.f32.mxu1 %v7244_v35 }
 0x3f6   : > { %4359 = vmatmul.mubr.msk.f32.gmra.mxu1 %vm2414_vm5, %v6545_v1 }
 0x3f7   : > { %2938 = vmatprep.mubr.f32.mxu1 %v7244_v35 }
 0x3fa   : > { %4360 = vmatmul.mubr.msk.f32.gmra.mxu1 %vm2414_vm5, %v6553_v63 }
 0x3fb   : > { %2944 = vmatprep.mubr.f32.mxu1 %v7244_v35 }
 0x3fe   : > { %4361 = vmatmul.mubr.msk.f32.gmra.mxu1 %vm2414_vm5, %v6561_v4 }
 0x3ff   : > { %2950 = vmatprep.mubr.f32.mxu1 %v7244_v35 }
 0x402   : > { %4362 = vmatmul.mubr.msk.f32.gmra.mxu1 %vm2414_vm5, %v6569_v52 }
 0x403   : > { %2956 = vmatprep.mubr.f32.mxu1 %v7244_v35 }
 0x406   : > { %4363 = vmatmul.mubr.msk.f32.gmra.mxu1 %vm2414_vm5, %v6577_v42 }
 0x407   : > { %2962 = vmatprep.mubr.f32.mxu1 %v7244_v35 }
 0x40a   : > { %4364 = vmatmul.mubr.msk.f32.gmra.mxu1 %vm2414_vm5, %v6585_v41  ;;  %v3243_v41 = vld [vmem:[#allocation7 + $0x70] sm:$0xff] }
 0x40b   : > { %3266 = vmatpush1.msra.mxu1 %v3243_v41 }
 0x40c   : > { %3267 = vmatprep.subr.mxu1 %v7244_v35 }
 0x40d   : > { %3268 = vmatpush1.msra.mxu1 %v3242_v5 }
 0x40e   : > { %3269 = vmatprep.subr.mxu1 %v7244_v35 }
 0x40f   : > { %3270 = vmatpush1.msra.mxu1 %v3241_v21 }
 0x410   : > { %3271 = vmatprep.subr.mxu1 %v7244_v35 }
 0x411   : > { %3272 = vmatpush1.msra.mxu1 %v3240_v27 }
 0x412   : > { %3273 = vmatprep.subr.mxu1 %v7244_v35 }
 0x413   : > { %3274 = vmatpush1.msra.mxu1 %v3239_v38 }
 0x414   : > { %v2775_v33 = vpop.f32.mrf.mxu0  ;;  %v6788_v57 = vpop.f32.mrf.mxu1  ;;  %3275 = vmatprep.subr.mxu1 %v7244_v35 }
 0x415   : > { %3276 = vmatpush1.msra.mxu1 %v3238_v12 }
 0x416   : > { %v2776_v59 = vpop.f32.mrf.mxu0  ;;  %v6790_v47 = vpop.f32.mrf.mxu1  ;;  %3277 = vmatprep.subr.mxu1 %v7244_v35 }
 0x417   : > { %3278 = vmatpush1.msra.mxu1 %v3237_v28 }
 0x418   : > { %3279 = vmatprep.subr.mxu1 %v7244_v35 }
 0x419   : > { %3280 = vmatpush1.msra.mxu1 %v3236_v58 }
 0x41a   : > { %3281 = vmatprep.subr.mxu1 %v7244_v35 }
 0x41b   : > { %3282 = vmatpush1.msra.mxu1 %v3235_v54 }
 0x41c   : > { %v2779_v34 = vpop.f32.mrf.mxu0  ;;  %v6792_v8 = vpop.f32.mrf.mxu1  ;;  %3283 = vmatprep.subr.mxu1 %v7244_v35 }
 0x41d   : > { %3284 = vmatpush1.msra.mxu1 %v3234_v60 }
 0x41e   : > { %v2780_v17 = vpop.f32.mrf.mxu0  ;;  %v6794_v25 = vpop.f32.mrf.mxu1  ;;  %3285 = vmatprep.subr.mxu1 %v7244_v35 }
 0x41f   : > { %3286 = vmatpush1.msra.mxu1 %v3233_v53 }
 0x420   : > { %3287 = vmatprep.subr.mxu1 %v7244_v35 }
 0x421   : > { %3288 = vmatpush1.msra.mxu1 %v3232_v45 }
 0x422   : > { %v6796_v43 = vpop.f32.mrf.mxu1  ;;  %v6798_v40 = vpop.f32.mrf.mxu0  ;;  %3289 = vmatprep.subr.mxu1 %v7244_v35 }
 0x423   : > { %3290 = vmatpush1.msra.mxu1 %v3231_v24 }
 0x424   : > { %v6800_v51 = vpop.f32.mrf.mxu1  ;;  %v6804_v31 = vpop.f32.mrf.mxu0  ;;  %3291 = vmatprep.subr.mxu1 %v7244_v35 }
 0x425   : > { %3292 = vmatpush1.msra.mxu1 %v3230_v26 }
 0x426   : > { %3293 = vmatprep.subr.mxu1 %v7244_v35 }
 0x42a   : > { %v6802_v11 = vpop.f32.mrf.mxu1  ;;  %v6806_v32 = vpop.f32.mrf.mxu0 }
 0x42c   : > { %v6808_v61 = vpop.f32.mrf.mxu1  ;;  %v6812_v23 = vpop.f32.mrf.mxu0 }
 0x432   : > { %v6810_v30 = vpop.f32.mrf.mxu1  ;;  %v6814_v49 = vpop.f32.mrf.mxu0 }
 0x434   : > { %v6816_v13 = vpop.f32.mrf.mxu1  ;;  %v6820_v37 = vpop.f32.mrf.mxu0 }
 0x43a   : > { %v6818_v20 = vpop.f32.mrf.mxu1  ;;  %v6822_v36 = vpop.f32.mrf.mxu0 }
 0x43c   : > { %v6824_v1 = vpop.f32.mrf.mxu1  ;;  %v6828_v63 = vpop.f32.mrf.mxu0 }
 0x442   : > { %v6826_v22 = vpop.f32.mrf.mxu1  ;;  %v6830_v39 = vpop.f32.mrf.mxu0 }
 0x444   : > { %v6832_v4 = vpop.f32.mrf.mxu1  ;;  %v6836_v52 = vpop.f32.mrf.mxu0 }
 0x44a   : > { %v6834_v48 = vpop.f32.mrf.mxu1  ;;  %v6838_v50 = vpop.f32.mrf.mxu0 }
 0x44c   : > { %v6840_v42 = vpop.f32.mrf.mxu1  ;;  %v6843_v7 = vpop.f32.mrf.mxu0 }
 0x452   : > { %v2565_v15 = vpop.f32.mrf.mxu1  ;;  %v6846_v14 = vpop.f32.mrf.mxu0 }
 0x453   : > { %7329 = vst [vmem:[#allocation15_spill] sm:$0xff] %v6846_v14 }
 0x454   : > { %v2566_v56 = vpop.f32.mrf.mxu1  ;;  %v6850_v16 = vpop.f32.mrf.mxu0 }
 0x455   : > { %7330 = vst [vmem:[#allocation17_spill] sm:$0xff] %v6850_v16 }
 0x45a   : > { %v2569_v0 = vpop.f32.mrf.mxu1  ;;  %v6853_v44 = vpop.f32.mrf.mxu0 }
 0x45b   : > { %7331 = vst [vmem:[#allocation49_spill] sm:$0xff] %v6853_v44 }
 0x45c   : > { %v2570_v18 = vpop.f32.mrf.mxu1  ;;  %v2827_v3 = vpop.f32.mrf.mxu0 }
 0x462   : > { %v2573_v19 = vpop.f32.mrf.mxu1  ;;  %v2831_v2 = vpop.f32.mrf.mxu0 }
 0x464   : > { %v2574_v29 = vpop.f32.mrf.mxu1  ;;  %v2832_v62 = vpop.f32.mrf.mxu0 }
 0x46a   : > { %v2577_v10 = vpop.f32.mrf.mxu1  ;;  %v2835_v9 = vpop.f32.mrf.mxu0 }
 0x46c   : > { %v2578_v55 = vpop.f32.mrf.mxu1  ;;  %v2836_v46 = vpop.f32.mrf.mxu0 }
 0x46e   : > { %v2646_v33 = vpop.f32.mrf.mxu1  ;;  %v3033_v59 = vpop.f32.mrf.mxu0 }
 0x470   : > { %v2647_v34 = vpop.f32.mrf.mxu1  ;;  %v3034_v17 = vpop.f32.mrf.mxu0 }
 0x472   : > { %v2650_v6 = vpop.f32.mrf.mxu1  ;;  %v3037_v41 = vpop.f32.mrf.mxu0 }
 0x474   : > { %v2652_v15 = vpop.f32.mrf.mxu1  ;;  %v3038_v5 = vpop.f32.mrf.mxu0 }
 0x476   : > { %v2656_v56 = vpop.f32.mrf.mxu1  ;;  %v3041_v21 = vpop.f32.mrf.mxu0 }
 0x478   : > { %v2658_v27 = vpop.f32.mrf.mxu1  ;;  %v3042_v38 = vpop.f32.mrf.mxu0 }
 0x47a   : > { %v2662_v0 = vpop.f32.mrf.mxu1  ;;  %v3045_v12 = vpop.f32.mrf.mxu0 }
 0x47c   : > { %v2664_v18 = vpop.f32.mrf.mxu1  ;;  %v3046_v28 = vpop.f32.mrf.mxu0 }
 0x47e   : > { %v2668_v58 = vpop.f32.mrf.mxu1  ;;  %v3049_v45 = vpop.f32.mrf.mxu0 }
 0x480   : > { %v6865_v54 = vpop.f32.mrf.mxu1  ;;  %v3051_v26 = vpop.f32.mrf.mxu0 }
 0x482   : > { %v6867_v19 = vpop.f32.mrf.mxu1  ;;  %v3055_v59 = vpop.f32.mrf.mxu0 }
 0x484   : > { %v6869_v2 = vpop.f32.mrf.mxu1  ;;  %v3057_v41 = vpop.f32.mrf.mxu0 }
 0x486   : > { %v6871_v60 = vpop.f32.mrf.mxu1  ;;  %v3061_v38 = vpop.f32.mrf.mxu0 }
 0x488   : > { %v6873_v29 = vpop.f32.mrf.mxu1  ;;  %v6884_v44 = vpop.f32.mrf.mxu0 }
 0x48a   : > { %v6875_v62 = vpop.f32.mrf.mxu1 }
 0x48c   : > { %v6877_v53 = vpop.f32.mrf.mxu1 }
 0x48e   : > { %v6879_v24 = vpop.f32.mrf.mxu1 }
 0x490   : > { %v2694_v10 = vpop.f32.mrf.mxu1 }
 0x491   : > { %v3111_v9 = vadd.f32 %v2694_v10, %v6840_v42  ;;  %v3096_v42 = vadd.f32 %v2650_v6, %v6788_v57  ;;  %v3067_v10 = vpop.f32.mrf.mxu0  ;;  %v3246_v57 = vld [vmem:[#allocation7 + $0x88] sm:$0xf] }
 0x492   : > { %v2698_v55 = vpop.f32.mrf.mxu1 }
 0x493   : > { %v6882_v46 = vadd.f32 %v3111_v9, %v2827_v3  ;;  %v3097_v3 = vadd.f32 %v2652_v15, %v6790_v47  ;;  %v3100_v47 = vadd.f32 %v2662_v0, %v6796_v43  ;;  %v3245_v15 = vld [vmem:[#allocation7 + $0x80] sm:$0xff] }
 0x494   : > { %v2699_v33 = vpop.f32.mrf.mxu1 }
 0x495   : > { %v3098_v33 = vadd.f32 %v2656_v56, %v6792_v8  ;;  %v3101_v56 = vadd.f32 %v2664_v18, %v6800_v51 }
 0x496   : > { %v2702_v34 = vpop.f32.mrf.mxu1 }
 0x497   : > { %v3112_v34 = vadd.f32 %v3096_v42, %v6798_v40  ;;  %v3114_v40 = vadd.f32 %v3098_v33, %v6806_v32  ;;  %v3116_v32 = vadd.f32 %v3100_v47, %v6814_v49  ;;  %v3103_v33 = vadd.f32 %v6865_v54, %v6808_v61 }
 0x498   : > { %v2703_v17 = vpop.f32.mrf.mxu1  ;;  %v3117_v18 = vadd.f32 %v3101_v56, %v6820_v37  ;;  %v3105_v61 = vadd.f32 %v6869_v2, %v6816_v13 }
 0x499   : > { %v3229_v17 = vld [vmem:[#allocation7] sm:$0xff] }
 0x49a   : > { %v2706_v5 = vpop.f32.mrf.mxu1  ;;  %3294 = vmatpush1.msra.mxu1 %v3229_v17 }
 0x49b   : > { %v6890_v5 = vpop.f32.mrf.mxu0  ;;  %3323 = vmatprep.subr.mxu1 %v7244_v35 }
 0x49c   : > { %v2707_v21 = vpop.f32.mrf.mxu1  ;;  %4377 = vmatpush2.msk.msra.mxu1 %vm516_vm0, %v3246_v57 }
 0x49d   : > { %3325 = vmatprep.subr.mxu1 %v7244_v35 }
 0x49e   : > { %v2904_v12 = vpop.f32.mrf.mxu1  ;;  %3326 = vmatpush2.msra.mxu1 %v3245_v15 }
 0x49f   : > { %v3099_v12 = vadd.f32 %v2658_v27, %v6794_v25  ;;  %v3073_v25 = vpop.f32.mrf.mxu0 }
 0x4a0   : > { %v2905_v28 = vpop.f32.mrf.mxu1 }
 0x4a1   : > { %v3115_v42 = vadd.f32 %v3099_v12, %v6812_v23 }
 0x4a2   : > { %v2908_v16 = vpop.f32.mrf.mxu1 }
 0x4a4   : > { %v2909_v14 = vpop.f32.mrf.mxu1 }
 0x4a5   : > { %v3113_v14 = vadd.f32 %v3097_v3, %v6804_v31 }
 0x4a6   : > { %v2912_v55 = vpop.f32.mrf.mxu1 }
 0x4a7   : > { %v3102_v55 = vadd.f32 %v2668_v58, %v6802_v11  ;;  %v3104_v11 = vadd.f32 %v6867_v19, %v6810_v30  ;;  %v3119_v30 = vadd.f32 %v3103_v33, %v6828_v63  ;;  %v7333_v33 = vld [vmem:[#allocation17_spill] sm:$0xff] }
 0x4a8   : > { %v2913_v9 = vpop.f32.mrf.mxu1 }
 0x4a9   : > { %v3118_v58 = vadd.f32 %v3102_v55, %v6822_v36  ;;  %v3106_v36 = vadd.f32 %v6871_v60, %v6818_v20  ;;  %v3120_v2 = vadd.f32 %v3104_v11, %v6830_v39 }
 0x4aa   : > { %v2916_v21 = vpop.f32.mrf.mxu1 }
 0x4ab   : > { %v3128_v16 = vadd.f32 %v3112_v34, %v2916_v21  ;;  %v3075_v34 = vpop.f32.mrf.mxu0 }
 0x4ac   : > { %v2918_v6 = vpop.f32.mrf.mxu1 }
 0x4ad   : > { %v3129_v8 = vadd.f32 %v3113_v14, %v2918_v6  ;;  %v3144_v31 = vadd.f32 %v3128_v16, %v3049_v45  ;;  %v3079_v54 = vpop.f32.mrf.mxu0 }
 0x4ae   : > { %v2922_v27 = vpop.f32.mrf.mxu1 }
 0x4af   : > { %v3130_v28 = vadd.f32 %v3114_v40, %v2922_v27  ;;  %v3145_v9 = vadd.f32 %v3129_v8, %v3051_v26  ;;  %v3160_v17 = vmax.f32 %v3144_v31, 0.0  ;;  %v3081_v8 = vpop.f32.mrf.mxu0  ;;  %v3121_v40 = vadd.f32 %v3105_v61, %v6836_v52 }
 0x4b0   : > { %v2924_v3 = vpop.f32.mrf.mxu1  ;;  %v3122_v27 = vadd.f32 %v3106_v36, %v6838_v50  ;;  %v3110_v50 = vadd.f32 %v6879_v24, %v6834_v48 }
 0x4b1   : > { %v3146_v43 = vadd.f32 %v3130_v28, %v3055_v59  ;;  %v3131_v0 = vadd.f32 %v3115_v42, %v2924_v3  ;;  %v3161_v26 = vmax.f32 %v3145_v9, 0.0  ;;  %v3085_v52 = vpop.f32.mrf.mxu0 }
 0x4b2   : > { %v2928_v51 = vpop.f32.mrf.mxu1 }
 0x4b3   : > { %v3162_v45 = vmax.f32 %v3146_v43, 0.0  ;;  %v3147_v21 = vadd.f32 %v3131_v0, %v3057_v41  ;;  %v3132_v16 = vadd.f32 %v3116_v32, %v2928_v51 }
 0x4b4   : > { %v2930_v23 = vpop.f32.mrf.mxu1 }
 0x4b5   : > { %v3163_v59 = vmax.f32 %v3147_v21, 0.0  ;;  %v3133_v49 = vadd.f32 %v3117_v18, %v2930_v23  ;;  %v6909_v12 = vmax.f32 %v3160_v17, %v3162_v45  ;;  %v3148_v14 = vadd.f32 %v3132_v16, %v3061_v38  ;;  %v7334_v16 = vld [vmem:[#allocation49_spill] sm:$0xff] }
 0x4b6   : > { %v2934_v37 = vpop.f32.mrf.mxu1  ;;  %v3107_v38 = vadd.f32 %v6873_v29, %v6824_v1  ;;  %v3109_v1 = vadd.f32 %v6877_v53, %v6832_v4  ;;  %v7332_v4 = vld [vmem:[#allocation15_spill] sm:$0xff]  ;;  %v3126_v48 = vadd.f32 %v3110_v50, %v7334_v16  ;;  %v3353_v50 = vld [vmem:[#allocation8 + $0x28] sm:$0xff] }
 0x4b7   : > { %v3134_v57 = vadd.f32 %v3118_v58, %v2934_v37  ;;  %3192 = vrot.lane.b32.xlu0 %v6909_v12, %s4842_s25  ;;  %v6916_v19 = vmax.f32 %v3161_v26, %v3163_v59  ;;  %v3149_v6 = vadd.f32 %v3133_v49, %v6884_v44  ;;  %v3164_v15 = vmax.f32 %v3148_v14, 0.0  ;;  %v3393_v37 = vld [vmem:[#allocation8 + $0x168] sm:$0xff]  ;;  %v3380_v16 = vld [vmem:[#allocation8 + $0x100] sm:$0xff] }
 0x4b8   : > { %v2936_v41 = vpop.f32.mrf.mxu1  ;;  %v3108_v44 = vadd.f32 %v6875_v62, %v6826_v22  ;;  %v3123_v22 = vadd.f32 %v3107_v38, %v6843_v7  ;;  %v3125_v51 = vadd.f32 %v3109_v1, %v7333_v33  ;;  %v3389_v14 = vld [vmem:[#allocation8 + $0x148] sm:$0xff]  ;;  %v3368_v1 = vld [vmem:[#allocation8 + $0xa0] sm:$0xff]  ;;  %v3391_v33 = vld [vmem:[#allocation8 + $0x158] sm:$0xff] }
 0x4b9   : > { %v3150_v47 = vadd.f32 %v3134_v57, %v3067_v10  ;;  %v3135_v13 = vadd.f32 %v3119_v30, %v2936_v41  ;;  %3194 = vrot.lane.b32.xlu1 %v6916_v19, %s4842_s25  ;;  %v3165_v31 = vmax.f32 %v3149_v6, 0.0  ;;  %v3388_v30 = vld [vmem:[#allocation8 + $0x140] sm:$0xff] }
 0x4ba   : > { %v2940_v63 = vpop.f32.mrf.mxu1  ;;  %v3124_v53 = vadd.f32 %v3108_v44, %v7332_v4 }
 0x4bb   : > { %v3166_v56 = vmax.f32 %v3150_v47, 0.0  ;;  %v3151_v20 = vadd.f32 %v3135_v13, %v6890_v5  ;;  %v3136_v60 = vadd.f32 %v3120_v2, %v2940_v63  ;;  %v3384_v47 = vld [vmem:[#allocation8 + $0x120] sm:$0xff] }
 0x4bc   : > { %v2942_v10 = vpop.f32.mrf.mxu1  ;;  %v3396_v13 = vld [vmem:[#allocation8 + $0x180] sm:$0xff] }
 0x4bd   : > { %v3167_v39 = vmax.f32 %v3151_v20, 0.0  ;;  %v3137_v28 = vadd.f32 %v3121_v40, %v2942_v10  ;;  %v6931_v42 = vmax.f32 %v3164_v15, %v3166_v56  ;;  %v3152_v55 = vadd.f32 %v3136_v60, %v3073_v25  ;;  %v3087_v25 = vpop.f32.mrf.mxu0  ;;  %3531 = vmatprep.subr.mxu1 %v3396_v13  ;;  %v3379_v56 = vld [vmem:[#allocation8 + $0xf8] sm:$0xff]  ;;  %v3378_v60 = vld [vmem:[#allocation8 + $0xf0] sm:$0xff] }
 0x4be   : > { %v2946_v29 = vpop.f32.mrf.mxu1 }
 0x4bf   : > { %v3138_v3 = vadd.f32 %v3122_v27, %v2946_v29  ;;  %3196 = vrot.lane.b32.xlu0 %v6931_v42, %s4842_s25  ;;  %v6938_v62 = vmax.f32 %v3165_v31, %v3167_v39  ;;  %v3153_v9 = vadd.f32 %v3137_v28, %v3075_v34  ;;  %v3168_v18 = vmax.f32 %v3152_v55, 0.0  ;;  %v3091_v58 = vpop.f32.mrf.mxu0  ;;  %v3374_v27 = vld [vmem:[#allocation8 + $0xd0] sm:$0xff]  ;;  %v3373_v31 = vld [vmem:[#allocation8 + $0xc8] sm:$0xff]  ;;  %v3363_v29 = vld [vmem:[#allocation8 + $0x78] sm:$0xff] }
 0x4c0   : > { %v2948_v5 = vpop.f32.mrf.mxu1  ;;  %v3369_v28 = vld [vmem:[#allocation8 + $0xa8] sm:$0xff]  ;;  %v3359_v55 = vld [vmem:[#allocation8 + $0x58] sm:$0xff] }
 0x4c1   : > { %v3154_v43 = vadd.f32 %v3138_v3, %v3079_v54  ;;  %v3139_v0 = vadd.f32 %v3123_v22, %v2948_v5  ;;  %3198 = vrot.lane.b32.xlu1 %v6938_v62, %s4842_s25  ;;  %v3169_v24 = vmax.f32 %v3153_v9, 0.0  ;;  %v3394_v54 = vld [vmem:[#allocation8 + $0x170] sm:$0xff]  ;;  %v3093_v2 = vpop.f32.mrf.mxu0  ;;  %v3349_v5 = vld [vmem:[#allocation8 + $0x8] sm:$0xff]  ;;  %v3348_v9 = vld [vmem:[#allocation8] sm:$0xff] }
 0x4c2   : > { %v2952_v32 = vpop.f32.mrf.mxu1  ;;  %3426 = vmatprep.subr.mxu0 %v3394_v54  ;;  %v3358_v3 = vld [vmem:[#allocation8 + $0x50] sm:$0xff] }
 0x4c3   : > { %v3170_v7 = vmax.f32 %v3154_v43, 0.0  ;;  %v3155_v17 = vadd.f32 %v3139_v0, %v3081_v8  ;;  %v3140_v45 = vadd.f32 %v3124_v53, %v2952_v32  ;;  %3427 = vmatpush1.msra.mxu0 %v3393_v37  ;;  %v3383_v8 = vld [vmem:[#allocation8 + $0x118] sm:$0xff]  ;;  %v3354_v22 = vld [vmem:[#allocation8 + $0x30] sm:$0xff]  ;;  %v3360_v37 = vld [vmem:[#allocation8 + $0x60] sm:$0xff] }
 0x4c4   : > { %v2954_v21 = vpop.f32.mrf.mxu1  ;;  %3428 = vmatprep.subr.mxu0 %v3389_v14  ;;  %v3395_v32 = vld [vmem:[#allocation8 + $0x178] sm:$0xff] }
 0x4c5   : > { %v3171_v34 = vmax.f32 %v3155_v17, 0.0  ;;  %v3141_v11 = vadd.f32 %v3125_v51, %v2954_v21  ;;  %v6947_v23 = vmax.f32 %v3168_v18, %v3170_v7  ;;  %v3156_v59 = vadd.f32 %v3140_v45, %v3085_v52  ;;  %3429 = vmatpush1.msra.mxu0 %v3388_v30  ;;  %v3364_v52 = vld [vmem:[#allocation8 + $0x80] sm:$0xff]  ;;  %v3390_v51 = vld [vmem:[#allocation8 + $0x150] sm:$0xff]  ;;  %v3385_v7 = vld [vmem:[#allocation8 + $0x128] sm:$0xff] }
 0x4c6   : > { %v2958_v26 = vpop.f32.mrf.mxu1  ;;  %3430 = vmatprep.subr.mxu0 %v3384_v47  ;;  %v3386_v18 = vld [vmem:[#allocation8 + $0x130] sm:$0xff]  ;;  %v3381_v17 = vld [vmem:[#allocation8 + $0x108] sm:$0xff] }
 0x4c7   : > { %v3142_v49 = vadd.f32 %v3126_v48, %v2958_v26  ;;  %3200 = vrot.lane.b32.xlu0 %v6947_v23, %s4842_s25  ;;  %v6951_v61 = vmax.f32 %v3169_v24, %v3171_v34  ;;  %v3157_v36 = vadd.f32 %v3141_v11, %v3087_v25  ;;  %v3172_v63 = vmax.f32 %v3156_v59, 0.0  ;;  %3431 = vmatpush1.msra.mxu0 %v3383_v8  ;;  %v3376_v48 = vld [vmem:[#allocation8 + $0xe0] sm:$0xff]  ;;  %v3375_v34 = vld [vmem:[#allocation8 + $0xd8] sm:$0xff]  ;;  %v3366_v26 = vld [vmem:[#allocation8 + $0x90] sm:$0xff] }
 0x4c8   : > { %v2960_v57 = vpop.f32.mrf.mxu1  ;;  %3432 = vmatprep.subr.mxu0 %v3379_v56  ;;  %v3371_v11 = vld [vmem:[#allocation8 + $0xb8] sm:$0xff]  ;;  %v3365_v59 = vld [vmem:[#allocation8 + $0x88] sm:$0xff]  ;;  %v3392_v8 = vld [vmem:[#allocation8 + $0x160] sm:$0xff] }
 0x4c9   : > { %v3158_v41 = vadd.f32 %v3142_v49, %v3091_v58  ;;  %v3143_v6 = vadd.f32 %v6882_v46, %v2960_v57  ;;  %3202 = vrot.lane.b32.xlu1 %v6951_v61, %s4842_s25  ;;  %v3173_v46 = vmax.f32 %v3157_v36, 0.0  ;;  %3433 = vmatpush1.msra.mxu0 %v3378_v60  ;;  %v3370_v58 = vld [vmem:[#allocation8 + $0xb0] sm:$0xff]  ;;  %v3361_v49 = vld [vmem:[#allocation8 + $0x68] sm:$0xff]  ;;  %v3356_v57 = vld [vmem:[#allocation8 + $0x40] sm:$0xff] }
 0x4ca   : > { %v2964_v38 = vpop.f32.mrf.mxu1  ;;  %3434 = vmatprep.subr.mxu0 %v3374_v27  ;;  %v3355_v36 = vld [vmem:[#allocation8 + $0x38] sm:$0xff]  ;;  %v3372_v56 = vld [vmem:[#allocation8 + $0xc0] sm:$0xff]  ;;  %v3362_v60 = vld [vmem:[#allocation8 + $0x70] sm:$0xff] }
 0x4cb   : > { %v3174_v40 = vmax.f32 %v3158_v41, 0.0  ;;  %v3159_v15 = vadd.f32 %v3143_v6, %v3093_v2  ;;  %3435 = vmatpush1.msra.mxu0 %v3373_v31  ;;  %v3351_v41 = vld [vmem:[#allocation8 + $0x18] sm:$0xff]  ;;  %v3350_v6 = vld [vmem:[#allocation8 + $0x10] sm:$0xff]  ;;  %v3397_v38 = vld [vmem:[#allocation8 + $0x188] sm:$0xff] }
 0x4cc   : > { %v2965_v20 = vpop.f32.mrf.mxu1  ;;  %3436 = vmatprep.subr.mxu0 %v3369_v28 }
 0x4cd   : > { %v3175_v44 = vmax.f32 %v3159_v15, 0.0  ;;  %v6956_v10 = vmax.f32 %v3172_v63, %v3174_v40  ;;  %3437 = vmatpush1.msra.mxu0 %v3368_v1  ;;  %v3387_v63 = vld [vmem:[#allocation8 + $0x138] sm:$0xff]  ;;  %v3382_v40 = vld [vmem:[#allocation8 + $0x110] sm:$0xff]  ;;  %v3377_v15 = vld [vmem:[#allocation8 + $0xe8] sm:$0xff] }
 0x4ce   : > { %3438 = vmatprep.subr.mxu0 %v3364_v52  ;;  %v3367_v20 = vld [vmem:[#allocation8 + $0x98] sm:$0xff] }
 0x4cf   : > { %3204 = vrot.lane.b32.xlu0 %v6956_v10, %s4842_s25  ;;  %v6960_v39 = vmax.f32 %v3173_v46, %v3175_v44  ;;  %3439 = vmatpush1.msra.mxu0 %v3363_v29  ;;  %v3357_v46 = vld [vmem:[#allocation8 + $0x48] sm:$0xff]  ;;  %v3352_v44 = vld [vmem:[#allocation8 + $0x20] sm:$0xff] }
 0x4d0   : > { %3440 = vmatprep.subr.mxu0 %v3359_v55 }
 0x4d1   : > { %3206 = vrot.lane.b32.xlu1 %v6960_v39, %s4842_s25  ;;  %3441 = vmatpush1.msra.mxu0 %v3358_v3  ;;  %s7131_s25 = scalar_lea.hbm %s7174_s8, %s4410_s26 }
 0x4d2   : > { %3442 = vmatprep.subr.mxu0 %v3354_v22 }
 0x4d3   : > { %3443 = vmatpush1.msra.mxu0 %v3353_v50 }
 0x4d4   : > { %3444 = vmatprep.subr.mxu0 %v3349_v5 }
 0x4d5   : > { %3445 = vmatpush1.msra.mxu0 %v3348_v9 }
 0x4d6   : > { %3479 = vmatmul.mubr.f32.vlgmr.msra.gmra.mxu0 %v7244_v35  ;;  %4463 = vmatprep.subr.mxu0 %v3397_v38 }
 0x4d7   : > { %3483 = vmatprep.mubr.f32.mxu0 %v7244_v35  ;;  %4464 = vmatpush3.msra.mxu0 %v3397_v38 }
 0x4d8   : > { %4465 = vmatprep.subr.mxu0 %v3392_v8 }
 0x4d9   : > { %4466 = vmatpush3.msra.mxu0 %v3392_v8 }
 0x4da   : > { %3484 = vmatmul.mubr.f32.gmra.mxu0 %v7244_v35  ;;  %4467 = vmatprep.subr.mxu0 %v3387_v63 }
 0x4db   : > { %3489 = vmatprep.mubr.f32.mxu0 %v7244_v35  ;;  %4468 = vmatpush3.msra.mxu0 %v3387_v63  ;;  %v3758_v63 = vld [vmem:[%s7172_s6 + $0x8] sm:$0xff] }
 0x4dc   : > { %4469 = vmatprep.subr.mxu0 %v3382_v40 }
 0x4dd   : > { %4470 = vmatpush3.msra.mxu0 %v3382_v40 }
 0x4de   : > { %4471 = vmatprep.subr.mxu0 %v3377_v15 }
 0x4df   : > { %4472 = vmatpush3.msra.mxu0 %v3377_v15 }
 0x4e0   : > { %4473 = vmatprep.subr.mxu0 %v3372_v56 }
 0x4e1   : > { %4474 = vmatpush3.msra.mxu0 %v3372_v56 }
 0x4e2   : > { %4475 = vmatprep.subr.mxu0 %v3367_v20 }
 0x4e3   : > { %4476 = vmatpush3.msra.mxu0 %v3367_v20 }
 0x4e4   : > { %4477 = vmatprep.subr.mxu0 %v3362_v60 }
 0x4e5   : > { %4478 = vmatpush3.msra.mxu0 %v3362_v60 }
 0x4e6   : > { %4479 = vmatprep.subr.mxu0 %v3357_v46 }
 0x4e7   : > { %4480 = vmatpush3.msra.mxu0 %v3357_v46  ;;  %v3757_v46 = vld [vmem:[%s7172_s6] sm:$0xff] }
 0x4e8   : > { %4481 = vmatprep.subr.mxu0 %v3352_v44 }
 0x4e9   : > { %4482 = vmatpush3.msra.mxu0 %v3352_v44 }
 0x4ea   : > { %4522 = vmatprep.subr.mxu0 %v7244_v35 }
 0x529   : > { %v3193_v43 = vpop.permute.xlu0 %3192 }
 0x52b   : > { %v3195_v0 = vpop.permute.xlu1 %3194 }
 0x52c   : > { %v3209_v4 = vsel %vm3208_vm6, %v3193_v43, %v3195_v0  ;;  %v3222_v53 = vmax.f32 %v6916_v19, %v3195_v0  ;;  %v3768_v43 = vld [vmem:[%s7172_s6 + $0x58] sm:$0x3]  ;;  %v3767_v0 = vld [vmem:[%s7172_s6 + $0x50] sm:$0xff] }
 0x52d   : > { %v3221_v25 = vmax.f32 %v6909_v12, %v3209_v4  ;;  %v3766_v4 = vld [vmem:[%s7172_s6 + $0x48] sm:$0xff] }
 0x52e   : > { %4378 = vmatprep.mubr.msk.f32.mxu1 %vm3247_vm7, %v3222_v53  ;;  %v3765_v53 = vld [vmem:[%s7172_s6 + $0x40] sm:$0xff] }
 0x52f   : > { %3328 = vmatmul.mubr.f32.vlgmr.msra.gmra.mxu1 %v3221_v25  ;;  %v3764_v25 = vld [vmem:[%s7172_s6 + $0x38] sm:$0xff] }
 0x530   : > { %3532 = vmatpush1.msra.mxu1 %v3395_v32  ;;  %v3763_v32 = vld [vmem:[%s7172_s6 + $0x30] sm:$0xff] }
 0x531   : > { %3533 = vmatprep.subr.mxu1 %v3391_v33  ;;  %v3197_v45 = vpop.permute.xlu0 %3196  ;;  %v3762_v33 = vld [vmem:[%s7172_s6 + $0x28] sm:$0xff] }
 0x532   : > { %3534 = vmatpush1.msra.mxu1 %v3390_v51  ;;  %v3761_v51 = vld [vmem:[%s7172_s6 + $0x20] sm:$0xff] }
 0x533   : > { %v3199_v21 = vpop.permute.xlu1 %3198  ;;  %3535 = vmatprep.subr.mxu1 %v3386_v18  ;;  %v3760_v18 = vld [vmem:[%s7172_s6 + $0x18] sm:$0xff] }
 0x534   : > { %v3210_v19 = vsel %vm3208_vm6, %v3197_v45, %v3199_v21  ;;  %v3224_v12 = vmax.f32 %v6938_v62, %v3199_v21  ;;  %3536 = vmatpush1.msra.mxu1 %v3385_v7  ;;  %v3759_v7 = vld [vmem:[%s7172_s6 + $0x10] sm:$0xff] }
 0x535   : > { %v3223_v24 = vmax.f32 %v6931_v42, %v3210_v19  ;;  %3537 = vmatprep.subr.mxu1 %v3381_v17 }
 0x536   : > { %4379 = vmatprep.mubr.msk.f32.mxu1 %vm3247_vm7, %v3224_v12  ;;  %3538 = vmatpush1.msra.mxu1 %v3380_v16 }
 0x537   : > { %3333 = vmatmul.mubr.f32.gmra.mxu1 %v3223_v24  ;;  %3539 = vmatprep.subr.mxu1 %v3376_v48 }
 0x538   : > { %3540 = vmatpush1.msra.mxu1 %v3375_v34 }
 0x539   : > { %3541 = vmatprep.subr.mxu1 %v3371_v11  ;;  %v3201_v62 = vpop.permute.xlu0 %3200 }
 0x53a   : > { %3542 = vmatpush1.msra.mxu1 %v3370_v58 }
 0x53b   : > { %v3203_v54 = vpop.permute.xlu1 %3202  ;;  %3543 = vmatprep.subr.mxu1 %v3366_v26 }
 0x53c   : > { %v3211_v42 = vsel %vm3208_vm6, %v3201_v62, %v3203_v54  ;;  %v3226_v14 = vmax.f32 %v6951_v61, %v3203_v54  ;;  %3544 = vmatpush1.msra.mxu1 %v3365_v59 }
 0x53d   : > { %v3225_v30 = vmax.f32 %v6947_v23, %v3211_v42  ;;  %3545 = vmatprep.subr.mxu1 %v3361_v49 }
 0x53e   : > { %4380 = vmatprep.mubr.msk.f32.mxu1 %vm3247_vm7, %v3226_v14  ;;  %3546 = vmatpush1.msra.mxu1 %v3360_v37 }
 0x53f   : > { %3338 = vmatmul.mubr.f32.gmra.mxu1 %v3225_v30  ;;  %3547 = vmatprep.subr.mxu1 %v3356_v57 }
 0x540   : > { %3548 = vmatpush1.msra.mxu1 %v3355_v36 }
 0x541   : > { %3549 = vmatprep.subr.mxu1 %v3351_v41  ;;  %v3205_v47 = vpop.permute.xlu0 %3204 }
 0x542   : > { %3550 = vmatpush1.msra.mxu1 %v3350_v6 }
 0x543   : > { %v3207_v13 = vpop.permute.xlu1 %3206  ;;  %4495 = vmatprep.subr.msk.mxu1 %vm3776_vm9, %v3768_v43 }
 0x544   : > { %v3212_v61 = vsel %vm3208_vm6, %v3205_v47, %v3207_v13  ;;  %v3228_v2 = vmax.f32 %v6960_v39, %v3207_v13 }
 0x545   : > { %v3227_v23 = vmax.f32 %v6956_v10, %v3212_v61 }
 0x546   : > { %4381 = vmatprep.mubr.msk.f32.mxu1 %vm3247_vm7, %v3228_v2 }
 0x547   : > { %3343 = vmatmul.mubr.f32.gmra.mxu1 %v3227_v23 }
 0x548   : > { %3583 = vmatprep.mubr.f32.mxu1 %v7244_v35 }
 0x54b   : > { %3584 = vmatmul.mubr.f32.vlgmr.msra.gmra.mxu1 %v7244_v35 }
 0x54c   : > { %3587 = vmatprep.mubr.f32.mxu1 %v7244_v35  ;;  %4496 = vmatpush3.msk.msra.mxu1 %vm3776_vm9, %v3768_v43 }
 0x54d   : > { %4497 = vmatprep.subr.mxu1 %v3767_v0 }
 0x54e   : > { %4498 = vmatpush3.msra.mxu1 %v3767_v0 }
 0x54f   : > { %3588 = vmatmul.mubr.f32.gmra.mxu1 %v7244_v35  ;;  %4499 = vmatprep.subr.mxu1 %v3766_v4 }
 0x550   : > { %3591 = vmatprep.mubr.f32.mxu1 %v7244_v35  ;;  %4500 = vmatpush3.msra.mxu1 %v3766_v4 }
 0x551   : > { %4501 = vmatprep.subr.mxu1 %v3765_v53 }
 0x552   : > { %4502 = vmatpush3.msra.mxu1 %v3765_v53  ;;  %v4401_v53 = vld [vmem:[%s7173_s7 + $0x60] sm:$0xff] }
 0x553   : > { %4503 = vmatprep.subr.mxu1 %v3764_v25 }
 0x554   : > { %4504 = vmatpush3.msra.mxu1 %v3764_v25 }
 0x555   : > { %4505 = vmatprep.subr.mxu1 %v3763_v32 }
 0x556   : > { %4506 = vmatpush3.msra.mxu1 %v3763_v32 }
 0x557   : > { %4507 = vmatprep.subr.mxu1 %v3762_v33 }
 0x558   : > { %4508 = vmatpush3.msra.mxu1 %v3762_v33  ;;  %v4400_v33 = vld [vmem:[%s7173_s7 + $0x58] sm:$0xff] }
 0x559   : > { %4509 = vmatprep.subr.mxu1 %v3761_v51 }
 0x55a   : > { %4510 = vmatpush3.msra.mxu1 %v3761_v51 }
 0x55b   : > { %4511 = vmatprep.subr.mxu1 %v3760_v18 }
 0x55c   : > { %4512 = vmatpush3.msra.mxu1 %v3760_v18 }
 0x55d   : > { %4513 = vmatprep.subr.mxu1 %v3759_v7 }
 0x55e   : > { %4514 = vmatpush3.msra.mxu1 %v3759_v7  ;;  %v4399_v7 = vld [vmem:[%s7173_s7 + $0x50] sm:$0xff] }
 0x55f   : > { %4515 = vmatprep.subr.mxu1 %v3758_v63 }
 0x560   : > { %4516 = vmatpush3.msra.mxu1 %v3758_v63 }
 0x561   : > { %4517 = vmatprep.subr.mxu1 %v3757_v46 }
 0x562   : > { %4518 = vmatpush3.msra.mxu1 %v3757_v46 }
 0x563   : > { %4541 = vmatprep.subr.mxu1 %v7244_v35 }
 0x596   : > { %v6990_v10 = vpop.f32.mrf.mxu0 }
 0x598   : > { %v3482_v27 = vpop.f32.mrf.mxu0 }
 0x59a   : > { %v3485_v17 = vpop.f32.mrf.mxu0 }
 0x59c   : > { %v3487_v45 = vpop.f32.mrf.mxu0 }
 0x59d   : > { %v3725_v23 = vadd.f32 %v3487_v45, %v6990_v10  ;;  %v4398_v45 = vld [vmem:[%s7173_s7 + $0x48] sm:$0xff] }
 0x5ef   : > { %v3329_v31 = vpop.f32.mrf.mxu1 }
 0x5f0   : > { %4382 = vmatmul.mubr.msk.f32.gmra.mxu0 %vm3398_vm8, %v3329_v31  ;;  %4386 = vmatmul.mubr.msk.f32.gmra.mxu1 %vm3398_vm8, %v3329_v31 }
 0x5f1   : > { %v3331_v39 = vpop.f32.mrf.mxu1  ;;  %3495 = vmatprep.mubr.f32.mxu0 %v7244_v35  ;;  %3596 = vmatprep.mubr.f32.mxu1 %v7244_v35 }
 0x5f7   : > { %v3334_v28 = vpop.f32.mrf.mxu1 }
 0x5f8   : > { %4383 = vmatmul.mubr.msk.f32.gmra.mxu0 %vm3398_vm8, %v3334_v28  ;;  %4387 = vmatmul.mubr.msk.f32.gmra.mxu1 %vm3398_vm8, %v3334_v28 }
 0x5f9   : > { %v3336_v1 = vpop.f32.mrf.mxu1  ;;  %3501 = vmatprep.mubr.f32.mxu0 %v7244_v35  ;;  %3602 = vmatprep.mubr.f32.mxu1 %v7244_v35 }
 0x5fa   : > { %v4404_v1 = vld [vmem:[%s7173_s7 + $0x78] sm:$0xf] }
 0x5ff   : > { %v3339_v52 = vpop.f32.mrf.mxu1 }
 0x600   : > { %4384 = vmatmul.mubr.msk.f32.gmra.mxu0 %vm3398_vm8, %v3339_v52  ;;  %4388 = vmatmul.mubr.msk.f32.gmra.mxu1 %vm3398_vm8, %v3339_v52 }
 0x601   : > { %v3341_v29 = vpop.f32.mrf.mxu1  ;;  %3506 = vmatprep.mubr.f32.mxu0 %v7244_v35  ;;  %3608 = vmatprep.mubr.f32.mxu1 %v7244_v35 }
 0x607   : > { %v3344_v55 = vpop.f32.mrf.mxu1 }
 0x608   : > { %4385 = vmatmul.mubr.msk.f32.gmra.mxu0 %vm3398_vm8, %v3344_v55  ;;  %4389 = vmatmul.mubr.msk.f32.gmra.mxu1 %vm3398_vm8, %v3344_v55 }
 0x609   : > { %v3346_v3 = vpop.f32.mrf.mxu1  ;;  %3510 = vmatprep.mubr.f32.mxu0 %v7244_v35  ;;  %3614 = vmatprep.mubr.f32.mxu1 %v7244_v35 }
 0x60b   : > { %v3585_v22 = vpop.f32.mrf.mxu1 }
 0x60c   : > { %3511 = vmatmul.mubr.f32.gmra.mxu0 %v7244_v35  ;;  %3615 = vmatmul.mubr.f32.gmra.mxu1 %v7244_v35 }
 0x60d   : > { %3514 = vmatprep.mubr.f32.mxu0 %v7244_v35  ;;  %v3586_v50 = vpop.f32.mrf.mxu1  ;;  %3619 = vmatprep.mubr.f32.mxu1 %v7244_v35 }
 0x60e   : > { %v4402_v50 = vld [vmem:[%s7173_s7 + $0x68] sm:$0xff] }
 0x60f   : > { %v3589_v5 = vpop.f32.mrf.mxu1 }
 0x610   : > { %3515 = vmatmul.mubr.f32.gmra.mxu0 %v7244_v35  ;;  %3620 = vmatmul.mubr.f32.gmra.mxu1 %v7244_v35 }
 0x611   : > { %4483 = vmatprep.mubr.f32.mxu0 %v7244_v35  ;;  %v3590_v9 = vpop.f32.mrf.mxu1 }
 0x614   : > { %4484 = vmatmul.mubr.f32.vlgmr.msra.gmra.mxu0 %v7244_v35 }
 0x615   : > { %4486 = vmatprep.mubr.msk.f32.mxu0 %vm3398_vm8, %v3329_v31  ;;  %4523 = vmatpush3.msk.msra.mxu0 %vm516_vm0, %v4404_v1 }
 0x616   : > { %4524 = vmatprep.subr.mxu0 %v7244_v35 }
 0x618   : > { %4487 = vmatmul.mubr.msk.f32.gmra.mxu0 %vm3398_vm8, %v3334_v28 }
 0x619   : > { %4489 = vmatprep.mubr.msk.f32.mxu0 %vm3398_vm8, %v3339_v52  ;;  %v4403_v52 = vld [vmem:[%s7173_s7 + $0x70] sm:$0xff] }
 0x61a   : > { %4525 = vmatpush3.msra.mxu0 %v4403_v52 }
 0x61b   : > { %4526 = vmatprep.subr.mxu0 %v7244_v35 }
 0x61c   : > { %4490 = vmatmul.mubr.msk.f32.gmra.mxu0 %vm3398_vm8, %v3344_v55 }
 0x61d   : > { %4492 = vmatprep.mubr.f32.mxu0 %v7244_v35  ;;  %4527 = vmatpush3.msra.mxu0 %v4402_v50 }
 0x61e   : > { %4528 = vmatprep.subr.mxu0 %v7244_v35 }
 0x61f   : > { %4529 = vmatpush3.msra.mxu0 %v4401_v53 }
 0x620   : > { %4493 = vmatmul.mubr.f32.gmra.mxu0 %v7244_v35  ;;  %4530 = vmatprep.subr.mxu0 %v7244_v35 }
 0x621   : > { %4531 = vmatpush3.msra.mxu0 %v4400_v33  ;;  %4538 = vmatprep.mubr.msk.f32.mxu0 %vm4844_vm11, %v7244_v35 }
 0x622   : > { %4532 = vmatprep.subr.mxu0 %v7244_v35 }
 0x623   : > { %4533 = vmatpush3.msra.mxu0 %v4399_v7 }
 0x624   : > { %4534 = vmatprep.subr.mxu0 %v7244_v35 }
 0x625   : > { %4535 = vmatpush3.msra.mxu0 %v4398_v45 }
 0x626   : > { %4536 = vmatprep.subr.mxu0 %v7244_v35 }
 0x6b0   : > { %v3593_v21 = vpop.f32.mrf.mxu1  ;;  %v3491_v19 = vpop.f32.mrf.mxu0 }
 0x6b1   : > { %v3729_v56 = vadd.f32 %v3725_v23, %v3593_v21 }
 0x6b2   : > { %v3595_v16 = vpop.f32.mrf.mxu1  ;;  %v3493_v12 = vpop.f32.mrf.mxu0 }
 0x6b3   : > { %v3726_v38 = vadd.f32 %v3493_v12, %v3485_v17 }
 0x6b8   : > { %v3497_v48 = vpop.f32.mrf.mxu0  ;;  %v3598_v24 = vpop.f32.mrf.mxu1 }
 0x6b9   : > { %v3730_v40 = vadd.f32 %v3726_v38, %v3598_v24  ;;  %v3861_v24 = vld [vmem:[%s7173_s7 + $0x30] sm:$0xff] }
 0x6ba   : > { %v3499_v34 = vpop.f32.mrf.mxu0  ;;  %v3600_v11 = vpop.f32.mrf.mxu1 }
 0x6bb   : > { %v3727_v10 = vadd.f32 %v3499_v34, %v3491_v19  ;;  %v3733_v27 = vadd.f32 %v3729_v56, %v3600_v11  ;;  %v3860_v34 = vld [vmem:[%s7173_s7 + $0x28] sm:$0xff]  ;;  %v3859_v11 = vld [vmem:[%s7173_s7 + $0x20] sm:$0xff] }
 0x6c0   : > { %v3503_v58 = vpop.f32.mrf.mxu0  ;;  %v3604_v26 = vpop.f32.mrf.mxu1 }
 0x6c1   : > { %v3731_v29 = vadd.f32 %v3727_v10, %v3604_v26  ;;  %v3858_v58 = vld [vmem:[%s7173_s7 + $0x18] sm:$0xff]  ;;  %v3857_v26 = vld [vmem:[%s7173_s7 + $0x10] sm:$0xff] }
 0x6c2   : > { %v3504_v59 = vpop.f32.mrf.mxu0  ;;  %v3606_v49 = vpop.f32.mrf.mxu1 }
 0x6c3   : > { %v3728_v20 = vadd.f32 %v3504_v59, %v3497_v48  ;;  %v3734_v60 = vadd.f32 %v3730_v40, %v3606_v49  ;;  %v3862_v48 = vld [vmem:[%s7173_s7 + $0x38] sm:$0xf]  ;;  %v4397_v59 = vld [vmem:[%s7173_s7 + $0x40] sm:$0xff]  ;;  %v3856_v49 = vld [vmem:[%s7173_s7 + $0x8] sm:$0xff] }
 0x6c4   : > { %4537 = vmatpush3.msra.mxu0 %v4397_v59 }
 0x6c8   : > { %v3508_v62 = vpop.f32.mrf.mxu0  ;;  %v3610_v54 = vpop.f32.mrf.mxu1 }
 0x6c9   : > { %v3732_v31 = vadd.f32 %v3728_v20, %v3610_v54  ;;  %v3855_v62 = vld [vmem:[%s7173_s7] sm:$0xff] }
 0x6ca   : > { %v3509_v37 = vpop.f32.mrf.mxu0  ;;  %v3612_v42 = vpop.f32.mrf.mxu1 }
 0x6cb   : > { %v3735_v5 = vadd.f32 %v3731_v29, %v3612_v42 }
 0x6cc   : > { %v3512_v14 = vpop.f32.mrf.mxu0  ;;  %v3616_v57 = vpop.f32.mrf.mxu1 }
 0x6ce   : > { %v3513_v30 = vpop.f32.mrf.mxu0  ;;  %v3617_v36 = vpop.f32.mrf.mxu1 }
 0x6cf   : > { %v3736_v55 = vadd.f32 %v3732_v31, %v3617_v36 }
 0x6d0   : > { %v3516_v41 = vpop.f32.mrf.mxu0  ;;  %v3621_v6 = vpop.f32.mrf.mxu1 }
 0x6d2   : > { %v3517_v47 = vpop.f32.mrf.mxu0  ;;  %v3622_v13 = vpop.f32.mrf.mxu1 }
 0x6d4   : > { %v4485_v61 = vpop.f32.mrf.mxu0 }
 0x6d6   : > { %v3690_v2 = vpop.f32.mrf.mxu0 }
 0x6d8   : > { %v4488_v8 = vpop.f32.mrf.mxu0 }
 0x6da   : > { %v3698_v15 = vpop.f32.mrf.mxu0 }
 0x6dc   : > { %v4491_v44 = vpop.f32.mrf.mxu0 }
 0x6dd   : > { %v3738_v39 = vadd.f32 %v4491_v44, %v3734_v60 }
 0x6de   : > { %v3706_v28 = vpop.f32.mrf.mxu0 }
 0x6df   : > { %v3737_v3 = vadd.f32 %v3733_v27, %v3706_v28  ;;  %v3742_v9 = vmax.f32 %v3738_v39, 0.0 }
 0x6e0   : > { %v4494_v22 = vpop.f32.mrf.mxu0 }
 0x6e1   : > { %v3741_v43 = vmax.f32 %v3737_v3, 0.0  ;;  %v3740_v0 = vadd.f32 %v4494_v22, %v3736_v55 }
 0x6e2   : > { %v3716_v4 = vpop.f32.mrf.mxu0 }
 0x6e3   : > { %v3745_v25 = vmax.f32 %v3741_v43, %v3742_v9  ;;  %v3739_v32 = vadd.f32 %v3735_v5, %v3716_v4  ;;  %v3744_v51 = vmax.f32 %v3740_v0, 0.0 }
 0x6e5   : > { %v3743_v18 = vmax.f32 %v3739_v32, 0.0  ;;  %3749 = vrot.lane.b32.xlu0 %v3745_v25, %s4843_s22 }
 0x6e7   : > { %v3746_v17 = vmax.f32 %v3743_v18, %v3744_v51 }
 0x6e9   : > { %3751 = vrot.lane.b32.xlu1 %v3746_v17, %s4843_s22  ;;  %s357_s22 = scalar_lea.vmem [#allocation10], %s4152_s12 }
 0x6ea   : > { %s4040_s13 = sshll.u32 %s357_s22, 4  ;;  %s4041_s13 = int_to_ptr.vmem [resolvable:$true] %s4040_s13 }
 0x6eb   : > { %s4756_s19 = scalar_lea.vmem %s4041_s13, 128  ;;  %p4763_p0 = scmp.lt.s32.totalorder %s4041_s13, %s4761_s10 }
 0x6ec   : > { %p4757_p8 = scmp.ne.s32.totalorder %s4041_s13, %s4756_s19  ;;  %p4764_p2 = scmp.lt.s32.totalorder %s4762_s17, %s4756_s19 }
 0x6ee   : > { %p4758_p11 = pnand %p4757_p8, %p4929_p5  ;;  %p4765_p3 = por %p4764_p2, %p4763_p0 }
 0x6f0   : > { %p4759_p1 = pneg %p4758_p11 }
 0x6f2   : > { %p4766_p13 = pnand %p4765_p3, %p4759_p1 }
 0x757   : > { %v3750_v21 = vpop.permute.xlu0 %3749 }
 0x758   : > { %v3755_v16 = vmax.f32 %v3745_v25, %v3750_v21 }
 0x75a   : > { %4519 = vmatprep.mubr.msk.f32.mxu1 %vm3769_vm10, %v3755_v16 }
 0x75b   : > { %v3752_v19 = vpop.permute.xlu1 %3751 }
 0x75c   : > { %v3756_v12 = vmax.f32 %v3746_v17, %v3752_v19 }
 0x75e   : > { %4520 = vmatmul.mubr.msk.f32.vlgmr.msra.gmra.mxu1 %vm3769_vm10, %v3756_v12 }
 0x75f   : > { %4542 = vmatpush3.msk.msra.mxu1 %vm516_vm0, %v3862_v48  ;;  %4557 = vmatprep.mubr.msk.f32.mxu1 %vm4844_vm11, %v7244_v35 }
 0x760   : > { %4543 = vmatprep.subr.mxu1 %v7244_v35 }
 0x761   : > { %4544 = vmatpush3.msra.mxu1 %v3861_v24 }
 0x762   : > { %4545 = vmatprep.subr.mxu1 %v7244_v35 }
 0x763   : > { %4546 = vmatpush3.msra.mxu1 %v3860_v34 }
 0x764   : > { %4547 = vmatprep.subr.mxu1 %v7244_v35 }
 0x765   : > { %4548 = vmatpush3.msra.mxu1 %v3859_v11 }
 0x766   : > { %4549 = vmatprep.subr.mxu1 %v7244_v35 }
 0x767   : > { %4550 = vmatpush3.msra.mxu1 %v3858_v58 }
 0x768   : > { %4551 = vmatprep.subr.mxu1 %v7244_v35 }
 0x769   : > { %4552 = vmatpush3.msra.mxu1 %v3857_v26 }
 0x76a   : > { %4553 = vmatprep.subr.mxu1 %v7244_v35 }
 0x76b   : > { %4554 = vmatpush3.msra.mxu1 %v3856_v49 }
 0x76c   : > { %4555 = vmatprep.subr.mxu1 %v7244_v35 }
 0x76d   : > { %4556 = vmatpush3.msra.mxu1 %v3855_v62 }
 0x81e   : > { %v4521_v54 = vpop.f32.mrf.mxu1 }
 0x81f   : > { %4539 = vmatmul.mubr.msk.f32.vlgmr.msra.gmra.mxu0 %vm3872_vm12, %v4521_v54 }
 0x820   : > { %v3846_v37 = vpop.f32.mrf.mxu1 }
 0x821   : > { %4558 = vmatmul.mubr.msk.f32.vlgmr.msra.gmra.mxu1 %vm3872_vm12, %v3846_v37 }
 0x8df   : > { %v3945_v42 = vpop.f32.mrf.mxu0 }
 0x8e1   : > { %v4540_v14 = vpop.f32.mrf.mxu0  ;;  %v4021_v57 = vpop.f32.mrf.mxu1 }
 0x8e2   : > { %v4022_v30 = vadd.f32 %v4021_v57, %v3945_v42 }
 0x8e3   : > { %v4559_v35 = vpop.f32.mrf.mxu1 }
 0x8e4   : > { %4025 = vst [vmem:[%s357_s22] sm:$0xff] %v4022_v30 }
 0x8e5   : > { %4769 = shalt.err (!%p4766_p13)
}
 0x8e6   : > { %s4770_s20 = scalar_lea.hbm %s7131_s25, 128  ;;  %s4774_s26 = scalar_lea.hbm %s7174_s8, 256 }
 0x8e7   : > { %p4771_p9 = scmp.ne.s32.totalorder %s7131_s25, %s4770_s20  ;;  %p4775_p12 = scmp.lt.s32.totalorder %s7131_s25, %s7174_s8 }
 0x8e8   : > { %p4776_p10 = scmp.lt.s32.totalorder %s4774_s26, %s4770_s20 }
 0x8e9   : > { %p4772_p4 = pnand %p4771_p9, %p4929_p5 }
 0x8ea   : > { %p4777_p8 = por %p4776_p10, %p4775_p12 }
 0x8eb   : > { %p4773_p7 = pneg %p4772_p4 }
 0x8ed   : > { %p4778_p11 = pnand %p4777_p8, %p4773_p7 }
 0x8ef   : > { %4781 = shalt.err (!%p4778_p11)
}
 0x8f0   : > { %4577 = dma.vmem_to_hbm [thread:$0]  (%p4929_p5), %s4041_s13, 128, %s7131_s25, %s4027_s23  }
 0x8f1 PF: > { %p4604_p1 = scmp.ge.s32.totalorder %s4828_s30, 2  ;;  %s4052_s21 = sand.u32 1, %s4816_s27  }
 0x8f2   : > { %s4053_s19 = scalar_lea.sflag [#allocation4], %s4052_s21 }
 0x8f3   : > { %p4593_p0 = pnand %p4604_p1, %p4933_p6 }
 0x8f5   : > { %p4594_p2 = pneg %p4593_p0 }
 0x8f7   : > { %4811 = dma.done.wait (%p4594_p2), %s4053_s19, 128  }
 0x8f8   : > { %4813 = vsyncadd (%p4594_p2), %s4053_s19, 4294967168  ;;  %p21_p3 = scmp.ge.s32.totalorder %s4916_s11, 4   ;;  %s7335_s27 = smov %s4820_s28 }
 0x8f9   : > { %s7336_s28 = smov %s4824_s29  ;;  %s7337_s29 = smov %s4927_s14 }
 0x8fa   : > { %s7338_s30 = smov %s4916_s11  ;;  %23 = sbr.rel (!%p21_p3) target bundleno = 6 (0x6), region = 105 }
 0x8ff   :  { %4058 = vsyncpa [#allocation3], 1 }
 0x900   :  { %4060 = vsyncpa [#allocation3 + $0x1], 1 }
 0x901   :  { %4061 = vsyncpa [#allocation6], 1 }
 0x902   :  { %4062 = vsyncpa [#allocation9], 1 }
 0x903   :  { %4063 = vsyncpa [#allocation4], 1 }
 0x904   :  { %4065 = vsyncpa [#allocation4 + $0x1], 1 }

</bundles_post_ra>
